<compile_context>
chip_gen: v6e
topology: v6e:2x2x1
jax: 0.10.0
libtpu: 0.0.40
codegen_flags: <defaults>
</compile_context>

<pallas_src>
import functools

import jax
import jax.numpy as jnp
from jax.experimental import pallas as pl
from jax.experimental.pallas import tpu as pltpu


def _gru_mlp_kernel(x_ref,
                    wih0bd_ref, b0_ref,
                    whhbd_ref, wih1_ref,
                    bi1_ref, bn0_ref, bn1_ref,
                    w1_ref, b1_ref, w2_ref, b2_ref, w3_ref, b3_ref,
                    out_ref,
                    gi0_scratch,
                    *, T, H):
    B = x_ref.shape[0]
    G = 3 * H

    # Layer-0 input projection for ALL timesteps in one bf16 matmul against the
    # block-diagonal (T*D, T*3H) weight (off the serial recurrent chain).
    gi0_scratch[...] = (
        jnp.dot(x_ref[...].astype(jnp.bfloat16), wih0bd_ref[...],
                preferred_element_type=jnp.float32)
        + b0_ref[...])

    # Hoisted loop-invariant bias broadcasts (JAX does not CSE broadcasts).
    bi1 = jnp.broadcast_to(bi1_ref[...], (B, G))
    bn0 = jnp.broadcast_to(bn0_ref[...], (B, H))
    bn1 = jnp.broadcast_to(bn1_ref[...], (B, H))

    h0 = jnp.zeros((B, H), jnp.float32)
    h1 = jnp.zeros((B, H), jnp.float32)

    # Fully-unrolled time loop; all slices static and lane-aligned (3H % 128 == 0).
    for t in range(T):
        gi0 = gi0_scratch[:, t * G:(t + 1) * G]                   # (B, 3H) f32

        # Fused recurrent matmul: both h0_{t-1} and h1_{t-1} are known at step
        # start -> a single (B, 2H) @ (2H, 6H) bf16 MXU push on the chain.
        hcat = jnp.concatenate([h0, h1], axis=1).astype(jnp.bfloat16)
        gh = jnp.dot(hcat, whhbd_ref[...], preferred_element_type=jnp.float32)
        gh0 = gh[:, :G]
        gh1 = gh[:, G:]

        # ---- GRU layer 0 (f32 gate math on VPU/EUP) -------------------------
        r0 = jax.nn.sigmoid(gi0[:, :H] + gh0[:, :H])
        z0 = jax.nn.sigmoid(gi0[:, H:2 * H] + gh0[:, H:2 * H])
        n0 = jnp.tanh(gi0[:, 2 * H:] + r0 * (gh0[:, 2 * H:] + bn0))
        h0 = (1.0 - z0) * n0 + z0 * h0

        # ---- GRU layer 1: input projection depends on this step's h0 --------
        gi1 = jnp.dot(h0.astype(jnp.bfloat16), wih1_ref[...],
                      preferred_element_type=jnp.float32) + bi1
        r1 = jax.nn.sigmoid(gi1[:, :H] + gh1[:, :H])
        z1 = jax.nn.sigmoid(gi1[:, H:2 * H] + gh1[:, H:2 * H])
        n1 = jnp.tanh(gi1[:, 2 * H:] + r1 * (gh1[:, 2 * H:] + bn1))
        h1 = (1.0 - z1) * n1 + z1 * h1

    # ---- MLP head on out[:, -1, :] (== final hidden of the top GRU layer) ---
    y = jnp.maximum(
        jnp.dot(h1.astype(jnp.bfloat16), w1_ref[...],
                preferred_element_type=jnp.float32) + b1_ref[...], 0.0)
    y = jnp.maximum(
        jnp.dot(y.astype(jnp.bfloat16), w2_ref[...],
                preferred_element_type=jnp.float32) + b2_ref[...], 0.0)
    out_ref[...] = (
        jnp.dot(y.astype(jnp.bfloat16), w3_ref[...],
                preferred_element_type=jnp.float32) + b3_ref[...])


def prepare_params(p, *, input_dim, hidden, seq_len):
    """One-time weight prep (outside the per-call path): block-diag builds,
    bias folding, bf16 casts of all matmul operands (biases stay f32)."""
    H, D, T = hidden, input_dim, seq_len
    f32, bf16 = jnp.float32, jnp.bfloat16

    def fold_rz(bih, bhh):
        # b_hh r/z halves sit outside the r*(.) term -> fold into input bias.
        return bih + jnp.concatenate([bhh[:, :2 * H], jnp.zeros((1, H), f32)],
                                     axis=1)

    # Block-diagonal layer-0 input weight: gi0_all = x_flat @ W computes every
    # timestep's (x_t @ Wih0 + bias) in one matmul; column block t = timestep t.
    eye = jnp.eye(T, dtype=f32)
    wih0_bd = jnp.einsum("st,dg->sdtg", eye, p["wih0"]).reshape(T * D, T * 3 * H)
    b0_tiled = jnp.tile(fold_rz(p["bih0"], p["bhh0"]), (1, T))

    # Fused recurrent weight: blockdiag(Whh0, Whh1)  (2H, 6H).
    z = jnp.zeros((H, 3 * H), f32)
    whh_bd = jnp.concatenate(
        [jnp.concatenate([p["whh0"], z], axis=1),
         jnp.concatenate([z, p["whh1"]], axis=1)], axis=0)

    return dict(
        wih0_bd=wih0_bd.astype(bf16),
        b0=b0_tiled,
        whh_bd=whh_bd.astype(bf16),
        wih1=p["wih1"].astype(bf16),
        bi1=fold_rz(p["bih1"], p["bhh1"]),
        bn0=p["bhh0"][:, 2 * H:],
        bn1=p["bhh1"][:, 2 * H:],
        w1=p["w1"].astype(bf16), b1=p["b1"],
        w2=p["w2"].astype(bf16), b2=p["b2"],
        w3=p["w3"].astype(bf16), b3=p["b3"],
    )


def gru_forward(x_flat, prep, *, input_dim, hidden):
    B = x_flat.shape[0]
    T = x_flat.shape[1] // input_dim
    assert T * input_dim == x_flat.shape[1]
    assert (3 * hidden) % 128 == 0, "gate-block lane slices must be 128-aligned"
    num_outputs = prep["w3"].shape[1]

    vmem = functools.partial(pl.BlockSpec, memory_space=pltpu.MemorySpace.VMEM)
    inputs = (x_flat,
              prep["wih0_bd"], prep["b0"],
              prep["whh_bd"], prep["wih1"],
              prep["bi1"], prep["bn0"], prep["bn1"],
              prep["w1"], prep["b1"], prep["w2"], prep["b2"],
              prep["w3"], prep["b3"])

    return pl.pallas_call(
        functools.partial(_gru_mlp_kernel, T=T, H=hidden),
        out_shape=jax.ShapeDtypeStruct((B, num_outputs), jnp.float32),
        in_specs=[vmem()] * len(inputs),
        out_specs=vmem(),
        scratch_shapes=[
            pltpu.VMEM((B, T * 3 * hidden), jnp.float32),  # precomputed layer-0 gi
        ],
    )(*inputs)


def init_params(key, input_dim, hidden, layer_units, num_outputs):
    ks = jax.random.split(key, 11)
    bound = 1.0 / float(hidden) ** 0.5

    def u(k, shape, b):
        return jax.random.uniform(k, shape, jnp.float32, -b, b)

    def xavier(k, fan_in, fan_out):
        b = (6.0 / (fan_in + fan_out)) ** 0.5
        return jax.random.uniform(k, (fan_in, fan_out), jnp.float32, -b, b)

    return dict(
        # GRU layer 0 (weights stored transposed: (in, 3H))
        wih0=u(ks[0], (input_dim, 3 * hidden), bound),
        whh0=u(ks[1], (hidden, 3 * hidden), bound),
        bih0=u(ks[2], (1, 3 * hidden), bound),
        bhh0=u(ks[3], (1, 3 * hidden), bound),
        # GRU layer 1
        wih1=u(ks[4], (hidden, 3 * hidden), bound),
        whh1=u(ks[5], (hidden, 3 * hidden), bound),
        bih1=u(ks[6], (1, 3 * hidden), bound),
        bhh1=u(ks[7], (1, 3 * hidden), bound),
        # MLP head: xavier_uniform weights, zero biases (matches _init_weights)
        w1=xavier(ks[8], hidden, layer_units[0]),
        b1=jnp.zeros((1, layer_units[0]), jnp.float32),
        w2=xavier(ks[9], layer_units[0], layer_units[1]),
        b2=jnp.zeros((1, layer_units[1]), jnp.float32),
        w3=xavier(ks[10], layer_units[1], num_outputs),
        b3=jnp.zeros((1, num_outputs), jnp.float32),
    )


def reference(x_flat, p, input_dim, hidden):
    """Pure-JAX f32 re-implementation of the PyTorch forward for validation."""
    B = x_flat.shape[0]
    x = x_flat.reshape(B, -1, input_dim)
    T = x.shape[1]
    H = hidden

    def cell(xt, h, wih, whh, bih, bhh):
        gi = xt @ wih + bih
        gh = h @ whh + bhh
        r = jax.nn.sigmoid(gi[:, :H] + gh[:, :H])
        z = jax.nn.sigmoid(gi[:, H:2 * H] + gh[:, H:2 * H])
        n = jnp.tanh(gi[:, 2 * H:] + r * gh[:, 2 * H:])
        return (1.0 - z) * n + z * h

    h = jnp.zeros((B, H), jnp.float32)
    seq = []
    for t in range(T):
        h = cell(x[:, t], h, p["wih0"], p["whh0"], p["bih0"], p["bhh0"])
        seq.append(h)
    h = jnp.zeros((B, H), jnp.float32)
    for t in range(T):
        h = cell(seq[t], h, p["wih1"], p["whh1"], p["bih1"], p["bhh1"])
    y = jnp.maximum(h @ p["w1"] + p["b1"], 0.0)
    y = jnp.maximum(y @ p["w2"] + p["b2"], 0.0)
    return y @ p["w3"] + p["b3"]


if __name__ == "__main__":
    B, T, D, H = 2, 8, 4, 128          # batch, seq, input_dim, gru_hidden_size
    layer_units, num_outputs = [128, 64], 2

    key = jax.random.PRNGKey(0)
    kx, kp = jax.random.split(key)
    x = jax.random.normal(kx, (B, T * D), jnp.float32)   # non-matrix path input
    params = init_params(kp, D, H, layer_units, num_outputs)
    prep = prepare_params(params, input_dim=D, hidden=H, seq_len=T)

    out = gru_forward(x, prep, input_dim=D, hidden=H)
    jax.block_until_ready(out)

    ref = reference(x, params, D, H)
    assert out.shape == (B, num_outputs)
    # bf16 matmul operands in the kernel vs f32 reference -> loosened tolerance.
    assert jnp.allclose(out, ref, atol=5e-2, rtol=5e-2), \
        float(jnp.max(jnp.abs(out - ref)))

    print("KERNEL_OK")
</pallas_src>

<mosaic_0001>
module attributes {stable_mosaic.version = 11 : i64} {
  func.func @_gru_mlp_kernel(%arg0: memref<2x32xf32, #tpu.memory_space<vmem>>, %arg1: memref<32x3072xbf16, #tpu.memory_space<vmem>>, %arg2: memref<1x3072xf32, #tpu.memory_space<vmem>>, %arg3: memref<256x768xbf16, #tpu.memory_space<vmem>>, %arg4: memref<128x384xbf16, #tpu.memory_space<vmem>>, %arg5: memref<1x384xf32, #tpu.memory_space<vmem>>, %arg6: memref<1x128xf32, #tpu.memory_space<vmem>>, %arg7: memref<1x128xf32, #tpu.memory_space<vmem>>, %arg8: memref<128x128xbf16, #tpu.memory_space<vmem>>, %arg9: memref<1x128xf32, #tpu.memory_space<vmem>>, %arg10: memref<128x64xbf16, #tpu.memory_space<vmem>>, %arg11: memref<1x64xf32, #tpu.memory_space<vmem>>, %arg12: memref<64x2xbf16, #tpu.memory_space<vmem>>, %arg13: memref<1x2xf32, #tpu.memory_space<vmem>>, %arg14: memref<2x2xf32, #tpu.memory_space<vmem>>, %arg15: memref<2x3072xf32, #tpu.memory_space<vmem>>) attributes {dimension_semantics = [], scalar_prefetch = 0 : i64, scratch_operands = 1 : i64, tpu.core_type = #tpu.core_type<tc>} {
    %c0 = arith.constant 0 : index
    %c0_0 = arith.constant 0 : index
    %0 = vector.load %arg0[%c0, %c0_0] : memref<2x32xf32, #tpu.memory_space<vmem>>, vector<2x32xf32>
    %1 = arith.truncf %0 : vector<2x32xf32> to vector<2x32xbf16>
    %c0_1 = arith.constant 0 : index
    %c0_2 = arith.constant 0 : index
    %2 = vector.load %arg1[%c0_1, %c0_2] : memref<32x3072xbf16, #tpu.memory_space<vmem>>, vector<32x3072xbf16>
    %cst = arith.constant dense<0.000000e+00> : vector<2x3072xf32>
    %3 = tpu.matmul %1, %2, %cst {dimension_numbers = #tpu.dot_dimension_numbers<[1], [0], [0], [1], [0, 0, 1, 1], [], []>} : vector<2x32xbf16>, vector<32x3072xbf16>, vector<2x3072xf32> -> vector<2x3072xf32>
    %c0_3 = arith.constant 0 : index
    %c0_4 = arith.constant 0 : index
    %4 = vector.load %arg2[%c0_3, %c0_4] : memref<1x3072xf32, #tpu.memory_space<vmem>>, vector<1x3072xf32>
    %5 = vector.broadcast %4 : vector<1x3072xf32> to vector<2x3072xf32>
    %6 = arith.addf %3, %5 : vector<2x3072xf32>
    %c0_5 = arith.constant 0 : index
    %c0_6 = arith.constant 0 : index
    %7 = vector.load %arg15[%c0_5, %c0_6] : memref<2x3072xf32, #tpu.memory_space<vmem>>, vector<2x3072xf32>
    tpu.vector_store %arg15[%c0_5, %c0_6], %6 {strides = array<i32>} : memref<2x3072xf32, #tpu.memory_space<vmem>>, vector<2x3072xf32>,
    %c0_7 = arith.constant 0 : index
    %c0_8 = arith.constant 0 : index
    %8 = vector.load %arg5[%c0_7, %c0_8] : memref<1x384xf32, #tpu.memory_space<vmem>>, vector<1x384xf32>
    %9 = vector.shape_cast %8 : vector<1x384xf32> to vector<1x384xf32>
    %10 = vector.broadcast %9 : vector<1x384xf32> to vector<2x384xf32>
    %c0_9 = arith.constant 0 : index
    %c0_10 = arith.constant 0 : index
    %11 = vector.load %arg6[%c0_9, %c0_10] : memref<1x128xf32, #tpu.memory_space<vmem>>, vector<1x128xf32>
    %12 = vector.shape_cast %11 : vector<1x128xf32> to vector<1x128xf32>
    %13 = vector.broadcast %12 : vector<1x128xf32> to vector<2x128xf32>
    %c0_11 = arith.constant 0 : index
    %c0_12 = arith.constant 0 : index
    %14 = vector.load %arg7[%c0_11, %c0_12] : memref<1x128xf32, #tpu.memory_space<vmem>>, vector<1x128xf32>
    %15 = vector.shape_cast %14 : vector<1x128xf32> to vector<1x128xf32>
    %16 = vector.broadcast %15 : vector<1x128xf32> to vector<2x128xf32>
    %cst_13 = arith.constant 0.000000e+00 : f32
    %17 = vector.broadcast %cst_13 : f32 to vector<2x128xf32>
    %cst_14 = arith.constant 0.000000e+00 : f32
    %18 = vector.broadcast %cst_14 : f32 to vector<2x128xf32>
    %c0_15 = arith.constant 0 : index
    %c0_16 = arith.constant 0 : index
    %19 = vector.load %arg15[%c0_15, %c0_16] : memref<2x3072xf32, #tpu.memory_space<vmem>>, vector<2x384xf32>
    %20 = tpu.concatenate %17, %18 in 1 : vector<2x128xf32>, vector<2x128xf32> -> vector<2x256xf32>
    %21 = arith.truncf %20 : vector<2x256xf32> to vector<2x256xbf16>
    %c0_17 = arith.constant 0 : index
    %c0_18 = arith.constant 0 : index
    %22 = vector.load %arg3[%c0_17, %c0_18] : memref<256x768xbf16, #tpu.memory_space<vmem>>, vector<256x768xbf16>
    %cst_19 = arith.constant dense<0.000000e+00> : vector<2x768xf32>
    %23 = tpu.matmul %21, %22, %cst_19 {dimension_numbers = #tpu.dot_dimension_numbers<[1], [0], [0], [1], [0, 0, 1, 1], [], []>} : vector<2x256xbf16>, vector<256x768xbf16>, vector<2x768xf32> -> vector<2x768xf32>
    %24 = vector.extract_strided_slice %23 {offsets = [0, 0], sizes = [2, 384], strides = [1, 1]} : vector<2x768xf32> to vector<2x384xf32>
    %25 = vector.extract_strided_slice %23 {offsets = [0, 384], sizes = [2, 384], strides = [1, 1]} : vector<2x768xf32> to vector<2x384xf32>
    %26 = vector.extract_strided_slice %19 {offsets = [0, 0], sizes = [2, 128], strides = [1, 1]} : vector<2x384xf32> to vector<2x128xf32>
    %27 = vector.extract_strided_slice %24 {offsets = [0, 0], sizes = [2, 128], strides = [1, 1]} : vector<2x384xf32> to vector<2x128xf32>
    %28 = arith.addf %26, %27 : vector<2x128xf32>
    %29 = arith.negf %28 : vector<2x128xf32>
    %30 = math.exp %29 : vector<2x128xf32>
    %cst_20 = arith.constant 1.000000e+00 : f32
    %31 = vector.broadcast %cst_20 : f32 to vector<2x128xf32>
    %32 = arith.addf %31, %30 : vector<2x128xf32>
    %33 = arith.divf %31, %32 : vector<2x128xf32>
    %34 = vector.extract_strided_slice %19 {offsets = [0, 128], sizes = [2, 128], strides = [1, 1]} : vector<2x384xf32> to vector<2x128xf32>
    %35 = vector.extract_strided_slice %24 {offsets = [0, 128], sizes = [2, 128], strides = [1, 1]} : vector<2x384xf32> to vector<2x128xf32>
    %36 = arith.addf %34, %35 : vector<2x128xf32>
    %37 = arith.negf %36 : vector<2x128xf32>
    %38 = math.exp %37 : vector<2x128xf32>
    %cst_21 = arith.constant 1.000000e+00 : f32
    %39 = vector.broadcast %cst_21 : f32 to vector<2x128xf32>
    %40 = arith.addf %39, %38 : vector<2x128xf32>
    %41 = arith.divf %39, %40 : vector<2x128xf32>
    %42 = vector.extract_strided_slice %19 {offsets = [0, 256], sizes = [2, 128], strides = [1, 1]} : vector<2x384xf32> to vector<2x128xf32>
    %43 = vector.extract_strided_slice %24 {offsets = [0, 256], sizes = [2, 128], strides = [1, 1]} : vector<2x384xf32> to vector<2x128xf32>
    %44 = arith.addf %43, %13 : vector<2x128xf32>
    %45 = arith.mulf %33, %44 : vector<2x128xf32>
    %46 = arith.addf %42, %45 : vector<2x128xf32>
    %47 = math.tanh %46 : vector<2x128xf32>
    %cst_22 = arith.constant 1.000000e+00 : f32
    %48 = vector.broadcast %cst_22 : f32 to vector<2x128xf32>
    %49 = arith.subf %48, %41 : vector<2x128xf32>
    %50 = arith.mulf %49, %47 : vector<2x128xf32>
    %51 = arith.mulf %41, %17 : vector<2x128xf32>
    %52 = arith.addf %50, %51 : vector<2x128xf32>
    %53 = arith.truncf %52 : vector<2x128xf32> to vector<2x128xbf16>
    %c0_23 = arith.constant 0 : index
    %c0_24 = arith.constant 0 : index
    %54 = vector.load %arg4[%c0_23, %c0_24] : memref<128x384xbf16, #tpu.memory_space<vmem>>, vector<128x384xbf16>
    %cst_25 = arith.constant dense<0.000000e+00> : vector<2x384xf32>
    %55 = tpu.matmul %53, %54, %cst_25 {dimension_numbers = #tpu.dot_dimension_numbers<[1], [0], [0], [1], [0, 0, 1, 1], [], []>} : vector<2x128xbf16>, vector<128x384xbf16>, vector<2x384xf32> -> vector<2x384xf32>
    %56 = arith.addf %55, %10 : vector<2x384xf32>
    %57 = vector.extract_strided_slice %56 {offsets = [0, 0], sizes = [2, 128], strides = [1, 1]} : vector<2x384xf32> to vector<2x128xf32>
    %58 = vector.extract_strided_slice %25 {offsets = [0, 0], sizes = [2, 128], strides = [1, 1]} : vector<2x384xf32> to vector<2x128xf32>
    %59 = arith.addf %57, %58 : vector<2x128xf32>
    %60 = arith.negf %59 : vector<2x128xf32>
    %61 = math.exp %60 : vector<2x128xf32>
    %cst_26 = arith.constant 1.000000e+00 : f32
    %62 = vector.broadcast %cst_26 : f32 to vector<2x128xf32>
    %63 = arith.addf %62, %61 : vector<2x128xf32>
    %64 = arith.divf %62, %63 : vector<2x128xf32>
    %65 = vector.extract_strided_slice %56 {offsets = [0, 128], sizes = [2, 128], strides = [1, 1]} : vector<2x384xf32> to vector<2x128xf32>
    %66 = vector.extract_strided_slice %25 {offsets = [0, 128], sizes = [2, 128], strides = [1, 1]} : vector<2x384xf32> to vector<2x128xf32>
    %67 = arith.addf %65, %66 : vector<2x128xf32>
    %68 = arith.negf %67 : vector<2x128xf32>
    %69 = math.exp %68 : vector<2x128xf32>
    %cst_27 = arith.constant 1.000000e+00 : f32
    %70 = vector.broadcast %cst_27 : f32 to vector<2x128xf32>
    %71 = arith.addf %70, %69 : vector<2x128xf32>
    %72 = arith.divf %70, %71 : vector<2x128xf32>
    %73 = vector.extract_strided_slice %56 {offsets = [0, 256], sizes = [2, 128], strides = [1, 1]} : vector<2x384xf32> to vector<2x128xf32>
    %74 = vector.extract_strided_slice %25 {offsets = [0, 256], sizes = [2, 128], strides = [1, 1]} : vector<2x384xf32> to vector<2x128xf32>
    %75 = arith.addf %74, %16 : vector<2x128xf32>
    %76 = arith.mulf %64, %75 : vector<2x128xf32>
    %77 = arith.addf %73, %76 : vector<2x128xf32>
    %78 = math.tanh %77 : vector<2x128xf32>
    %cst_28 = arith.constant 1.000000e+00 : f32
    %79 = vector.broadcast %cst_28 : f32 to vector<2x128xf32>
    %80 = arith.subf %79, %72 : vector<2x128xf32>
    %81 = arith.mulf %80, %78 : vector<2x128xf32>
    %82 = arith.mulf %72, %18 : vector<2x128xf32>
    %83 = arith.addf %81, %82 : vector<2x128xf32>
    %c0_29 = arith.constant 0 : index
    %c384 = arith.constant 384 : index
    %84 = vector.load %arg15[%c0_29, %c384] : memref<2x3072xf32, #tpu.memory_space<vmem>>, vector<2x384xf32>
    %85 = tpu.concatenate %52, %83 in 1 : vector<2x128xf32>, vector<2x128xf32> -> vector<2x256xf32>
    %86 = arith.truncf %85 : vector<2x256xf32> to vector<2x256xbf16>
    %c0_30 = arith.constant 0 : index
    %c0_31 = arith.constant 0 : index
    %87 = vector.load %arg3[%c0_30, %c0_31] : memref<256x768xbf16, #tpu.memory_space<vmem>>, vector<256x768xbf16>
    %cst_32 = arith.constant dense<0.000000e+00> : vector<2x768xf32>
    %88 = tpu.matmul %86, %87, %cst_32 {dimension_numbers = #tpu.dot_dimension_numbers<[1], [0], [0], [1], [0, 0, 1, 1], [], []>} : vector<2x256xbf16>, vector<256x768xbf16>, vector<2x768xf32> -> vector<2x768xf32>
    %89 = vector.extract_strided_slice %88 {offsets = [0, 0], sizes = [2, 384], strides = [1, 1]} : vector<2x768xf32> to vector<2x384xf32>
    %90 = vector.extract_strided_slice %88 {offsets = [0, 384], sizes = [2, 384], strides = [1, 1]} : vector<2x768xf32> to vector<2x384xf32>
    %91 = vector.extract_strided_slice %84 {offsets = [0, 0], sizes = [2, 128], strides = [1, 1]} : vector<2x384xf32> to vector<2x128xf32>
    %92 = vector.extract_strided_slice %89 {offsets = [0, 0], sizes = [2, 128], strides = [1, 1]} : vector<2x384xf32> to vector<2x128xf32>
    %93 = arith.addf %91, %92 : vector<2x128xf32>
    %94 = arith.negf %93 : vector<2x128xf32>
    %95 = math.exp %94 : vector<2x128xf32>
    %cst_33 = arith.constant 1.000000e+00 : f32
    %96 = vector.broadcast %cst_33 : f32 to vector<2x128xf32>
    %97 = arith.addf %96, %95 : vector<2x128xf32>
    %98 = arith.divf %96, %97 : vector<2x128xf32>
    %99 = vector.extract_strided_slice %84 {offsets = [0, 128], sizes = [2, 128], strides = [1, 1]} : vector<2x384xf32> to vector<2x128xf32>
    %100 = vector.extract_strided_slice %89 {offsets = [0, 128], sizes = [2, 128], strides = [1, 1]} : vector<2x384xf32> to vector<2x128xf32>
    %101 = arith.addf %99, %100 : vector<2x128xf32>
    %102 = arith.negf %101 : vector<2x128xf32>
    %103 = math.exp %102 : vector<2x128xf32>
    %cst_34 = arith.constant 1.000000e+00 : f32
    %104 = vector.broadcast %cst_34 : f32 to vector<2x128xf32>
    %105 = arith.addf %104, %103 : vector<2x128xf32>
    %106 = arith.divf %104, %105 : vector<2x128xf32>
    %107 = vector.extract_strided_slice %84 {offsets = [0, 256], sizes = [2, 128], strides = [1, 1]} : vector<2x384xf32> to vector<2x128xf32>
    %108 = vector.extract_strided_slice %89 {offsets = [0, 256], sizes = [2, 128], strides = [1, 1]} : vector<2x384xf32> to vector<2x128xf32>
    %109 = arith.addf %108, %13 : vector<2x128xf32>
    %110 = arith.mulf %98, %109 : vector<2x128xf32>
    %111 = arith.addf %107, %110 : vector<2x128xf32>
    %112 = math.tanh %111 : vector<2x128xf32>
    %cst_35 = arith.constant 1.000000e+00 : f32
    %113 = vector.broadcast %cst_35 : f32 to vector<2x128xf32>
    %114 = arith.subf %113, %106 : vector<2x128xf32>
    %115 = arith.mulf %114, %112 : vector<2x128xf32>
    %116 = arith.mulf %106, %52 : vector<2x128xf32>
    %117 = arith.addf %115, %116 : vector<2x128xf32>
    %118 = arith.truncf %117 : vector<2x128xf32> to vector<2x128xbf16>
    %c0_36 = arith.constant 0 : index
    %c0_37 = arith.constant 0 : index
    %119 = vector.load %arg4[%c0_36, %c0_37] : memref<128x384xbf16, #tpu.memory_space<vmem>>, vector<128x384xbf16>
    %cst_38 = arith.constant dense<0.000000e+00> : vector<2x384xf32>
    %120 = tpu.matmul %118, %119, %cst_38 {dimension_numbers = #tpu.dot_dimension_numbers<[1], [0], [0], [1], [0, 0, 1, 1], [], []>} : vector<2x128xbf16>, vector<128x384xbf16>, vector<2x384xf32> -> vector<2x384xf32>
    %121 = arith.addf %120, %10 : vector<2x384xf32>
    %122 = vector.extract_strided_slice %121 {offsets = [0, 0], sizes = [2, 128], strides = [1, 1]} : vector<2x384xf32> to vector<2x128xf32>
    %123 = vector.extract_strided_slice %90 {offsets = [0, 0], sizes = [2, 128], strides = [1, 1]} : vector<2x384xf32> to vector<2x128xf32>
    %124 = arith.addf %122, %123 : vector<2x128xf32>
    %125 = arith.negf %124 : vector<2x128xf32>
    %126 = math.exp %125 : vector<2x128xf32>
    %cst_39 = arith.constant 1.000000e+00 : f32
    %127 = vector.broadcast %cst_39 : f32 to vector<2x128xf32>
    %128 = arith.addf %127, %126 : vector<2x128xf32>
    %129 = arith.divf %127, %128 : vector<2x128xf32>
    %130 = vector.extract_strided_slice %121 {offsets = [0, 128], sizes = [2, 128], strides = [1, 1]} : vector<2x384xf32> to vector<2x128xf32>
    %131 = vector.extract_strided_slice %90 {offsets = [0, 128], sizes = [2, 128], strides = [1, 1]} : vector<2x384xf32> to vector<2x128xf32>
    %132 = arith.addf %130, %131 : vector<2x128xf32>
    %133 = arith.negf %132 : vector<2x128xf32>
    %134 = math.exp %133 : vector<2x128xf32>
    %cst_40 = arith.constant 1.000000e+00 : f32
    %135 = vector.broadcast %cst_40 : f32 to vector<2x128xf32>
    %136 = arith.addf %135, %134 : vector<2x128xf32>
    %137 = arith.divf %135, %136 : vector<2x128xf32>
    %138 = vector.extract_strided_slice %121 {offsets = [0, 256], sizes = [2, 128], strides = [1, 1]} : vector<2x384xf32> to vector<2x128xf32>
    %139 = vector.extract_strided_slice %90 {offsets = [0, 256], sizes = [2, 128], strides = [1, 1]} : vector<2x384xf32> to vector<2x128xf32>
    %140 = arith.addf %139, %16 : vector<2x128xf32>
    %141 = arith.mulf %129, %140 : vector<2x128xf32>
    %142 = arith.addf %138, %141 : vector<2x128xf32>
    %143 = math.tanh %142 : vector<2x128xf32>
    %cst_41 = arith.constant 1.000000e+00 : f32
    %144 = vector.broadcast %cst_41 : f32 to vector<2x128xf32>
    %145 = arith.subf %144, %137 : vector<2x128xf32>
    %146 = arith.mulf %145, %143 : vector<2x128xf32>
    %147 = arith.mulf %137, %83 : vector<2x128xf32>
    %148 = arith.addf %146, %147 : vector<2x128xf32>
    %c0_42 = arith.constant 0 : index
    %c768 = arith.constant 768 : index
    %149 = vector.load %arg15[%c0_42, %c768] : memref<2x3072xf32, #tpu.memory_space<vmem>>, vector<2x384xf32>
    %150 = tpu.concatenate %117, %148 in 1 : vector<2x128xf32>, vector<2x128xf32> -> vector<2x256xf32>
    %151 = arith.truncf %150 : vector<2x256xf32> to vector<2x256xbf16>
    %c0_43 = arith.constant 0 : index
    %c0_44 = arith.constant 0 : index
    %152 = vector.load %arg3[%c0_43, %c0_44] : memref<256x768xbf16, #tpu.memory_space<vmem>>, vector<256x768xbf16>
    %cst_45 = arith.constant dense<0.000000e+00> : vector<2x768xf32>
    %153 = tpu.matmul %151, %152, %cst_45 {dimension_numbers = #tpu.dot_dimension_numbers<[1], [0], [0], [1], [0, 0, 1, 1], [], []>} : vector<2x256xbf16>, vector<256x768xbf16>, vector<2x768xf32> -> vector<2x768xf32>
    %154 = vector.extract_strided_slice %153 {offsets = [0, 0], sizes = [2, 384], strides = [1, 1]} : vector<2x768xf32> to vector<2x384xf32>
    %155 = vector.extract_strided_slice %153 {offsets = [0, 384], sizes = [2, 384], strides = [1, 1]} : vector<2x768xf32> to vector<2x384xf32>
    %156 = vector.extract_strided_slice %149 {offsets = [0, 0], sizes = [2, 128], strides = [1, 1]} : vector<2x384xf32> to vector<2x128xf32>
    %157 = vector.extract_strided_slice %154 {offsets = [0, 0], sizes = [2, 128], strides = [1, 1]} : vector<2x384xf32> to vector<2x128xf32>
    %158 = arith.addf %156, %157 : vector<2x128xf32>
    %159 = arith.negf %158 : vector<2x128xf32>
    %160 = math.exp %159 : vector<2x128xf32>
    %cst_46 = arith.constant 1.000000e+00 : f32
    %161 = vector.broadcast %cst_46 : f32 to vector<2x128xf32>
    %162 = arith.addf %161, %160 : vector<2x128xf32>
    %163 = arith.divf %161, %162 : vector<2x128xf32>
    %164 = vector.extract_strided_slice %149 {offsets = [0, 128], sizes = [2, 128], strides = [1, 1]} : vector<2x384xf32> to vector<2x128xf32>
    %165 = vector.extract_strided_slice %154 {offsets = [0, 128], sizes = [2, 128], strides = [1, 1]} : vector<2x384xf32> to vector<2x128xf32>
    %166 = arith.addf %164, %165 : vector<2x128xf32>
    %167 = arith.negf %166 : vector<2x128xf32>
    %168 = math.exp %167 : vector<2x128xf32>
    %cst_47 = arith.constant 1.000000e+00 : f32
    %169 = vector.broadcast %cst_47 : f32 to vector<2x128xf32>
    %170 = arith.addf %169, %168 : vector<2x128xf32>
    %171 = arith.divf %169, %170 : vector<2x128xf32>
    %172 = vector.extract_strided_slice %149 {offsets = [0, 256], sizes = [2, 128], strides = [1, 1]} : vector<2x384xf32> to vector<2x128xf32>
    %173 = vector.extract_strided_slice %154 {offsets = [0, 256], sizes = [2, 128], strides = [1, 1]} : vector<2x384xf32> to vector<2x128xf32>
    %174 = arith.addf %173, %13 : vector<2x128xf32>
    %175 = arith.mulf %163, %174 : vector<2x128xf32>
    %176 = arith.addf %172, %175 : vector<2x128xf32>
    %177 = math.tanh %176 : vector<2x128xf32>
    %cst_48 = arith.constant 1.000000e+00 : f32
    %178 = vector.broadcast %cst_48 : f32 to vector<2x128xf32>
    %179 = arith.subf %178, %171 : vector<2x128xf32>
    %180 = arith.mulf %179, %177 : vector<2x128xf32>
    %181 = arith.mulf %171, %117 : vector<2x128xf32>
    %182 = arith.addf %180, %181 : vector<2x128xf32>
    %183 = arith.truncf %182 : vector<2x128xf32> to vector<2x128xbf16>
    %c0_49 = arith.constant 0 : index
    %c0_50 = arith.constant 0 : index
    %184 = vector.load %arg4[%c0_49, %c0_50] : memref<128x384xbf16, #tpu.memory_space<vmem>>, vector<128x384xbf16>
    %cst_51 = arith.constant dense<0.000000e+00> : vector<2x384xf32>
    %185 = tpu.matmul %183, %184, %cst_51 {dimension_numbers = #tpu.dot_dimension_numbers<[1], [0], [0], [1], [0, 0, 1, 1], [], []>} : vector<2x128xbf16>, vector<128x384xbf16>, vector<2x384xf32> -> vector<2x384xf32>
    %186 = arith.addf %185, %10 : vector<2x384xf32>
    %187 = vector.extract_strided_slice %186 {offsets = [0, 0], sizes = [2, 128], strides = [1, 1]} : vector<2x384xf32> to vector<2x128xf32>
    %188 = vector.extract_strided_slice %155 {offsets = [0, 0], sizes = [2, 128], strides = [1, 1]} : vector<2x384xf32> to vector<2x128xf32>
    %189 = arith.addf %187, %188 : vector<2x128xf32>
    %190 = arith.negf %189 : vector<2x128xf32>
    %191 = math.exp %190 : vector<2x128xf32>
    %cst_52 = arith.constant 1.000000e+00 : f32
    %192 = vector.broadcast %cst_52 : f32 to vector<2x128xf32>
    %193 = arith.addf %192, %191 : vector<2x128xf32>
    %194 = arith.divf %192, %193 : vector<2x128xf32>
    %195 = vector.extract_strided_slice %186 {offsets = [0, 128], sizes = [2, 128], strides = [1, 1]} : vector<2x384xf32> to vector<2x128xf32>
    %196 = vector.extract_strided_slice %155 {offsets = [0, 128], sizes = [2, 128], strides = [1, 1]} : vector<2x384xf32> to vector<2x128xf32>
    %197 = arith.addf %195, %196 : vector<2x128xf32>
    %198 = arith.negf %197 : vector<2x128xf32>
    %199 = math.exp %198 : vector<2x128xf32>
    %cst_53 = arith.constant 1.000000e+00 : f32
    %200 = vector.broadcast %cst_53 : f32 to vector<2x128xf32>
    %201 = arith.addf %200, %199 : vector<2x128xf32>
    %202 = arith.divf %200, %201 : vector<2x128xf32>
    %203 = vector.extract_strided_slice %186 {offsets = [0, 256], sizes = [2, 128], strides = [1, 1]} : vector<2x384xf32> to vector<2x128xf32>
    %204 = vector.extract_strided_slice %155 {offsets = [0, 256], sizes = [2, 128], strides = [1, 1]} : vector<2x384xf32> to vector<2x128xf32>
    %205 = arith.addf %204, %16 : vector<2x128xf32>
    %206 = arith.mulf %194, %205 : vector<2x128xf32>
    %207 = arith.addf %203, %206 : vector<2x128xf32>
    %208 = math.tanh %207 : vector<2x128xf32>
    %cst_54 = arith.constant 1.000000e+00 : f32
    %209 = vector.broadcast %cst_54 : f32 to vector<2x128xf32>
    %210 = arith.subf %209, %202 : vector<2x128xf32>
    %211 = arith.mulf %210, %208 : vector<2x128xf32>
    %212 = arith.mulf %202, %148 : vector<2x128xf32>
    %213 = arith.addf %211, %212 : vector<2x128xf32>
    %c0_55 = arith.constant 0 : index
    %c1152 = arith.constant 1152 : index
    %214 = vector.load %arg15[%c0_55, %c1152] : memref<2x3072xf32, #tpu.memory_space<vmem>>, vector<2x384xf32>
    %215 = tpu.concatenate %182, %213 in 1 : vector<2x128xf32>, vector<2x128xf32> -> vector<2x256xf32>
    %216 = arith.truncf %215 : vector<2x256xf32> to vector<2x256xbf16>
    %c0_56 = arith.constant 0 : index
    %c0_57 = arith.constant 0 : index
    %217 = vector.load %arg3[%c0_56, %c0_57] : memref<256x768xbf16, #tpu.memory_space<vmem>>, vector<256x768xbf16>
    %cst_58 = arith.constant dense<0.000000e+00> : vector<2x768xf32>
    %218 = tpu.matmul %216, %217, %cst_58 {dimension_numbers = #tpu.dot_dimension_numbers<[1], [0], [0], [1], [0, 0, 1, 1], [], []>} : vector<2x256xbf16>, vector<256x768xbf16>, vector<2x768xf32> -> vector<2x768xf32>
    %219 = vector.extract_strided_slice %218 {offsets = [0, 0], sizes = [2, 384], strides = [1, 1]} : vector<2x768xf32> to vector<2x384xf32>
    %220 = vector.extract_strided_slice %218 {offsets = [0, 384], sizes = [2, 384], strides = [1, 1]} : vector<2x768xf32> to vector<2x384xf32>
    %221 = vector.extract_strided_slice %214 {offsets = [0, 0], sizes = [2, 128], strides = [1, 1]} : vector<2x384xf32> to vector<2x128xf32>
    %222 = vector.extract_strided_slice %219 {offsets = [0, 0], sizes = [2, 128], strides = [1, 1]} : vector<2x384xf32> to vector<2x128xf32>
    %223 = arith.addf %221, %222 : vector<2x128xf32>
    %224 = arith.negf %223 : vector<2x128xf32>
    %225 = math.exp %224 : vector<2x128xf32>
    %cst_59 = arith.constant 1.000000e+00 : f32
    %226 = vector.broadcast %cst_59 : f32 to vector<2x128xf32>
    %227 = arith.addf %226, %225 : vector<2x128xf32>
    %228 = arith.divf %226, %227 : vector<2x128xf32>
    %229 = vector.extract_strided_slice %214 {offsets = [0, 128], sizes = [2, 128], strides = [1, 1]} : vector<2x384xf32> to vector<2x128xf32>
    %230 = vector.extract_strided_slice %219 {offsets = [0, 128], sizes = [2, 128], strides = [1, 1]} : vector<2x384xf32> to vector<2x128xf32>
    %231 = arith.addf %229, %230 : vector<2x128xf32>
    %232 = arith.negf %231 : vector<2x128xf32>
    %233 = math.exp %232 : vector<2x128xf32>
    %cst_60 = arith.constant 1.000000e+00 : f32
    %234 = vector.broadcast %cst_60 : f32 to vector<2x128xf32>
    %235 = arith.addf %234, %233 : vector<2x128xf32>
    %236 = arith.divf %234, %235 : vector<2x128xf32>
    %237 = vector.extract_strided_slice %214 {offsets = [0, 256], sizes = [2, 128], strides = [1, 1]} : vector<2x384xf32> to vector<2x128xf32>
    %238 = vector.extract_strided_slice %219 {offsets = [0, 256], sizes = [2, 128], strides = [1, 1]} : vector<2x384xf32> to vector<2x128xf32>
    %239 = arith.addf %238, %13 : vector<2x128xf32>
    %240 = arith.mulf %228, %239 : vector<2x128xf32>
    %241 = arith.addf %237, %240 : vector<2x128xf32>
    %242 = math.tanh %241 : vector<2x128xf32>
    %cst_61 = arith.constant 1.000000e+00 : f32
    %243 = vector.broadcast %cst_61 : f32 to vector<2x128xf32>
    %244 = arith.subf %243, %236 : vector<2x128xf32>
    %245 = arith.mulf %244, %242 : vector<2x128xf32>
    %246 = arith.mulf %236, %182 : vector<2x128xf32>
    %247 = arith.addf %245, %246 : vector<2x128xf32>
    %248 = arith.truncf %247 : vector<2x128xf32> to vector<2x128xbf16>
    %c0_62 = arith.constant 0 : index
    %c0_63 = arith.constant 0 : index
    %249 = vector.load %arg4[%c0_62, %c0_63] : memref<128x384xbf16, #tpu.memory_space<vmem>>, vector<128x384xbf16>
    %cst_64 = arith.constant dense<0.000000e+00> : vector<2x384xf32>
    %250 = tpu.matmul %248, %249, %cst_64 {dimension_numbers = #tpu.dot_dimension_numbers<[1], [0], [0], [1], [0, 0, 1, 1], [], []>} : vector<2x128xbf16>, vector<128x384xbf16>, vector<2x384xf32> -> vector<2x384xf32>
    %251 = arith.addf %250, %10 : vector<2x384xf32>
    %252 = vector.extract_strided_slice %251 {offsets = [0, 0], sizes = [2, 128], strides = [1, 1]} : vector<2x384xf32> to vector<2x128xf32>
    %253 = vector.extract_strided_slice %220 {offsets = [0, 0], sizes = [2, 128], strides = [1, 1]} : vector<2x384xf32> to vector<2x128xf32>
    %254 = arith.addf %252, %253 : vector<2x128xf32>
    %255 = arith.negf %254 : vector<2x128xf32>
    %256 = math.exp %255 : vector<2x128xf32>
    %cst_65 = arith.constant 1.000000e+00 : f32
    %257 = vector.broadcast %cst_65 : f32 to vector<2x128xf32>
    %258 = arith.addf %257, %256 : vector<2x128xf32>
    %259 = arith.divf %257, %258 : vector<2x128xf32>
    %260 = vector.extract_strided_slice %251 {offsets = [0, 128], sizes = [2, 128], strides = [1, 1]} : vector<2x384xf32> to vector<2x128xf32>
    %261 = vector.extract_strided_slice %220 {offsets = [0, 128], sizes = [2, 128], strides = [1, 1]} : vector<2x384xf32> to vector<2x128xf32>
    %262 = arith.addf %260, %261 : vector<2x128xf32>
    %263 = arith.negf %262 : vector<2x128xf32>
    %264 = math.exp %263 : vector<2x128xf32>
    %cst_66 = arith.constant 1.000000e+00 : f32
    %265 = vector.broadcast %cst_66 : f32 to vector<2x128xf32>
    %266 = arith.addf %265, %264 : vector<2x128xf32>
    %267 = arith.divf %265, %266 : vector<2x128xf32>
    %268 = vector.extract_strided_slice %251 {offsets = [0, 256], sizes = [2, 128], strides = [1, 1]} : vector<2x384xf32> to vector<2x128xf32>
    %269 = vector.extract_strided_slice %220 {offsets = [0, 256], sizes = [2, 128], strides = [1, 1]} : vector<2x384xf32> to vector<2x128xf32>
    %270 = arith.addf %269, %16 : vector<2x128xf32>
    %271 = arith.mulf %259, %270 : vector<2x128xf32>
    %272 = arith.addf %268, %271 : vector<2x128xf32>
    %273 = math.tanh %272 : vector<2x128xf32>
    %cst_67 = arith.constant 1.000000e+00 : f32
    %274 = vector.broadcast %cst_67 : f32 to vector<2x128xf32>
    %275 = arith.subf %274, %267 : vector<2x128xf32>
    %276 = arith.mulf %275, %273 : vector<2x128xf32>
    %277 = arith.mulf %267, %213 : vector<2x128xf32>
    %278 = arith.addf %276, %277 : vector<2x128xf32>
    %c0_68 = arith.constant 0 : index
    %c1536 = arith.constant 1536 : index
    %279 = vector.load %arg15[%c0_68, %c1536] : memref<2x3072xf32, #tpu.memory_space<vmem>>, vector<2x384xf32>
    %280 = tpu.concatenate %247, %278 in 1 : vector<2x128xf32>, vector<2x128xf32> -> vector<2x256xf32>
    %281 = arith.truncf %280 : vector<2x256xf32> to vector<2x256xbf16>
    %c0_69 = arith.constant 0 : index
    %c0_70 = arith.constant 0 : index
    %282 = vector.load %arg3[%c0_69, %c0_70] : memref<256x768xbf16, #tpu.memory_space<vmem>>, vector<256x768xbf16>
    %cst_71 = arith.constant dense<0.000000e+00> : vector<2x768xf32>
    %283 = tpu.matmul %281, %282, %cst_71 {dimension_numbers = #tpu.dot_dimension_numbers<[1], [0], [0], [1], [0, 0, 1, 1], [], []>} : vector<2x256xbf16>, vector<256x768xbf16>, vector<2x768xf32> -> vector<2x768xf32>
    %284 = vector.extract_strided_slice %283 {offsets = [0, 0], sizes = [2, 384], strides = [1, 1]} : vector<2x768xf32> to vector<2x384xf32>
    %285 = vector.extract_strided_slice %283 {offsets = [0, 384], sizes = [2, 384], strides = [1, 1]} : vector<2x768xf32> to vector<2x384xf32>
    %286 = vector.extract_strided_slice %279 {offsets = [0, 0], sizes = [2, 128], strides = [1, 1]} : vector<2x384xf32> to vector<2x128xf32>
    %287 = vector.extract_strided_slice %284 {offsets = [0, 0], sizes = [2, 128], strides = [1, 1]} : vector<2x384xf32> to vector<2x128xf32>
    %288 = arith.addf %286, %287 : vector<2x128xf32>
    %289 = arith.negf %288 : vector<2x128xf32>
    %290 = math.exp %289 : vector<2x128xf32>
    %cst_72 = arith.constant 1.000000e+00 : f32
    %291 = vector.broadcast %cst_72 : f32 to vector<2x128xf32>
    %292 = arith.addf %291, %290 : vector<2x128xf32>
    %293 = arith.divf %291, %292 : vector<2x128xf32>
    %294 = vector.extract_strided_slice %279 {offsets = [0, 128], sizes = [2, 128], strides = [1, 1]} : vector<2x384xf32> to vector<2x128xf32>
    %295 = vector.extract_strided_slice %284 {offsets = [0, 128], sizes = [2, 128], strides = [1, 1]} : vector<2x384xf32> to vector<2x128xf32>
    %296 = arith.addf %294, %295 : vector<2x128xf32>
    %297 = arith.negf %296 : vector<2x128xf32>
    %298 = math.exp %297 : vector<2x128xf32>
    %cst_73 = arith.constant 1.000000e+00 : f32
    %299 = vector.broadcast %cst_73 : f32 to vector<2x128xf32>
    %300 = arith.addf %299, %298 : vector<2x128xf32>
    %301 = arith.divf %299, %300 : vector<2x128xf32>
    %302 = vector.extract_strided_slice %279 {offsets = [0, 256], sizes = [2, 128], strides = [1, 1]} : vector<2x384xf32> to vector<2x128xf32>
    %303 = vector.extract_strided_slice %284 {offsets = [0, 256], sizes = [2, 128], strides = [1, 1]} : vector<2x384xf32> to vector<2x128xf32>
    %304 = arith.addf %303, %13 : vector<2x128xf32>
    %305 = arith.mulf %293, %304 : vector<2x128xf32>
    %306 = arith.addf %302, %305 : vector<2x128xf32>
    %307 = math.tanh %306 : vector<2x128xf32>
    %cst_74 = arith.constant 1.000000e+00 : f32
    %308 = vector.broadcast %cst_74 : f32 to vector<2x128xf32>
    %309 = arith.subf %308, %301 : vector<2x128xf32>
    %310 = arith.mulf %309, %307 : vector<2x128xf32>
    %311 = arith.mulf %301, %247 : vector<2x128xf32>
    %312 = arith.addf %310, %311 : vector<2x128xf32>
    %313 = arith.truncf %312 : vector<2x128xf32> to vector<2x128xbf16>
    %c0_75 = arith.constant 0 : index
    %c0_76 = arith.constant 0 : index
    %314 = vector.load %arg4[%c0_75, %c0_76] : memref<128x384xbf16, #tpu.memory_space<vmem>>, vector<128x384xbf16>
    %cst_77 = arith.constant dense<0.000000e+00> : vector<2x384xf32>
    %315 = tpu.matmul %313, %314, %cst_77 {dimension_numbers = #tpu.dot_dimension_numbers<[1], [0], [0], [1], [0, 0, 1, 1], [], []>} : vector<2x128xbf16>, vector<128x384xbf16>, vector<2x384xf32> -> vector<2x384xf32>
    %316 = arith.addf %315, %10 : vector<2x384xf32>
    %317 = vector.extract_strided_slice %316 {offsets = [0, 0], sizes = [2, 128], strides = [1, 1]} : vector<2x384xf32> to vector<2x128xf32>
    %318 = vector.extract_strided_slice %285 {offsets = [0, 0], sizes = [2, 128], strides = [1, 1]} : vector<2x384xf32> to vector<2x128xf32>
    %319 = arith.addf %317, %318 : vector<2x128xf32>
    %320 = arith.negf %319 : vector<2x128xf32>
    %321 = math.exp %320 : vector<2x128xf32>
    %cst_78 = arith.constant 1.000000e+00 : f32
    %322 = vector.broadcast %cst_78 : f32 to vector<2x128xf32>
    %323 = arith.addf %322, %321 : vector<2x128xf32>
    %324 = arith.divf %322, %323 : vector<2x128xf32>
    %325 = vector.extract_strided_slice %316 {offsets = [0, 128], sizes = [2, 128], strides = [1, 1]} : vector<2x384xf32> to vector<2x128xf32>
    %326 = vector.extract_strided_slice %285 {offsets = [0, 128], sizes = [2, 128], strides = [1, 1]} : vector<2x384xf32> to vector<2x128xf32>
    %327 = arith.addf %325, %326 : vector<2x128xf32>
    %328 = arith.negf %327 : vector<2x128xf32>
    %329 = math.exp %328 : vector<2x128xf32>
    %cst_79 = arith.constant 1.000000e+00 : f32
    %330 = vector.broadcast %cst_79 : f32 to vector<2x128xf32>
    %331 = arith.addf %330, %329 : vector<2x128xf32>
    %332 = arith.divf %330, %331 : vector<2x128xf32>
    %333 = vector.extract_strided_slice %316 {offsets = [0, 256], sizes = [2, 128], strides = [1, 1]} : vector<2x384xf32> to vector<2x128xf32>
    %334 = vector.extract_strided_slice %285 {offsets = [0, 256], sizes = [2, 128], strides = [1, 1]} : vector<2x384xf32> to vector<2x128xf32>
    %335 = arith.addf %334, %16 : vector<2x128xf32>
    %336 = arith.mulf %324, %335 : vector<2x128xf32>
    %337 = arith.addf %333, %336 : vector<2x128xf32>
    %338 = math.tanh %337 : vector<2x128xf32>
    %cst_80 = arith.constant 1.000000e+00 : f32
    %339 = vector.broadcast %cst_80 : f32 to vector<2x128xf32>
    %340 = arith.subf %339, %332 : vector<2x128xf32>
    %341 = arith.mulf %340, %338 : vector<2x128xf32>
    %342 = arith.mulf %332, %278 : vector<2x128xf32>
    %343 = arith.addf %341, %342 : vector<2x128xf32>
    %c0_81 = arith.constant 0 : index
    %c1920 = arith.constant 1920 : index
    %344 = vector.load %arg15[%c0_81, %c1920] : memref<2x3072xf32, #tpu.memory_space<vmem>>, vector<2x384xf32>
    %345 = tpu.concatenate %312, %343 in 1 : vector<2x128xf32>, vector<2x128xf32> -> vector<2x256xf32>
    %346 = arith.truncf %345 : vector<2x256xf32> to vector<2x256xbf16>
    %c0_82 = arith.constant 0 : index
    %c0_83 = arith.constant 0 : index
    %347 = vector.load %arg3[%c0_82, %c0_83] : memref<256x768xbf16, #tpu.memory_space<vmem>>, vector<256x768xbf16>
    %cst_84 = arith.constant dense<0.000000e+00> : vector<2x768xf32>
    %348 = tpu.matmul %346, %347, %cst_84 {dimension_numbers = #tpu.dot_dimension_numbers<[1], [0], [0], [1], [0, 0, 1, 1], [], []>} : vector<2x256xbf16>, vector<256x768xbf16>, vector<2x768xf32> -> vector<2x768xf32>
    %349 = vector.extract_strided_slice %348 {offsets = [0, 0], sizes = [2, 384], strides = [1, 1]} : vector<2x768xf32> to vector<2x384xf32>
    %350 = vector.extract_strided_slice %348 {offsets = [0, 384], sizes = [2, 384], strides = [1, 1]} : vector<2x768xf32> to vector<2x384xf32>
    %351 = vector.extract_strided_slice %344 {offsets = [0, 0], sizes = [2, 128], strides = [1, 1]} : vector<2x384xf32> to vector<2x128xf32>
    %352 = vector.extract_strided_slice %349 {offsets = [0, 0], sizes = [2, 128], strides = [1, 1]} : vector<2x384xf32> to vector<2x128xf32>
    %353 = arith.addf %351, %352 : vector<2x128xf32>
    %354 = arith.negf %353 : vector<2x128xf32>
    %355 = math.exp %354 : vector<2x128xf32>
    %cst_85 = arith.constant 1.000000e+00 : f32
    %356 = vector.broadcast %cst_85 : f32 to vector<2x128xf32>
    %357 = arith.addf %356, %355 : vector<2x128xf32>
    %358 = arith.divf %356, %357 : vector<2x128xf32>
    %359 = vector.extract_strided_slice %344 {offsets = [0, 128], sizes = [2, 128], strides = [1, 1]} : vector<2x384xf32> to vector<2x128xf32>
    %360 = vector.extract_strided_slice %349 {offsets = [0, 128], sizes = [2, 128], strides = [1, 1]} : vector<2x384xf32> to vector<2x128xf32>
    %361 = arith.addf %359, %360 : vector<2x128xf32>
    %362 = arith.negf %361 : vector<2x128xf32>
    %363 = math.exp %362 : vector<2x128xf32>
    %cst_86 = arith.constant 1.000000e+00 : f32
    %364 = vector.broadcast %cst_86 : f32 to vector<2x128xf32>
    %365 = arith.addf %364, %363 : vector<2x128xf32>
    %366 = arith.divf %364, %365 : vector<2x128xf32>
    %367 = vector.extract_strided_slice %344 {offsets = [0, 256], sizes = [2, 128], strides = [1, 1]} : vector<2x384xf32> to vector<2x128xf32>
    %368 = vector.extract_strided_slice %349 {offsets = [0, 256], sizes = [2, 128], strides = [1, 1]} : vector<2x384xf32> to vector<2x128xf32>
    %369 = arith.addf %368, %13 : vector<2x128xf32>
    %370 = arith.mulf %358, %369 : vector<2x128xf32>
    %371 = arith.addf %367, %370 : vector<2x128xf32>
    %372 = math.tanh %371 : vector<2x128xf32>
    %cst_87 = arith.constant 1.000000e+00 : f32
    %373 = vector.broadcast %cst_87 : f32 to vector<2x128xf32>
    %374 = arith.subf %373, %366 : vector<2x128xf32>
    %375 = arith.mulf %374, %372 : vector<2x128xf32>
    %376 = arith.mulf %366, %312 : vector<2x128xf32>
    %377 = arith.addf %375, %376 : vector<2x128xf32>
    %378 = arith.truncf %377 : vector<2x128xf32> to vector<2x128xbf16>
    %c0_88 = arith.constant 0 : index
    %c0_89 = arith.constant 0 : index
    %379 = vector.load %arg4[%c0_88, %c0_89] : memref<128x384xbf16, #tpu.memory_space<vmem>>, vector<128x384xbf16>
    %cst_90 = arith.constant dense<0.000000e+00> : vector<2x384xf32>
    %380 = tpu.matmul %378, %379, %cst_90 {dimension_numbers = #tpu.dot_dimension_numbers<[1], [0], [0], [1], [0, 0, 1, 1], [], []>} : vector<2x128xbf16>, vector<128x384xbf16>, vector<2x384xf32> -> vector<2x384xf32>
    %381 = arith.addf %380, %10 : vector<2x384xf32>
    %382 = vector.extract_strided_slice %381 {offsets = [0, 0], sizes = [2, 128], strides = [1, 1]} : vector<2x384xf32> to vector<2x128xf32>
    %383 = vector.extract_strided_slice %350 {offsets = [0, 0], sizes = [2, 128], strides = [1, 1]} : vector<2x384xf32> to vector<2x128xf32>
    %384 = arith.addf %382, %383 : vector<2x128xf32>
    %385 = arith.negf %384 : vector<2x128xf32>
    %386 = math.exp %385 : vector<2x128xf32>
    %cst_91 = arith.constant 1.000000e+00 : f32
    %387 = vector.broadcast %cst_91 : f32 to vector<2x128xf32>
    %388 = arith.addf %387, %386 : vector<2x128xf32>
    %389 = arith.divf %387, %388 : vector<2x128xf32>
    %390 = vector.extract_strided_slice %381 {offsets = [0, 128], sizes = [2, 128], strides = [1, 1]} : vector<2x384xf32> to vector<2x128xf32>
    %391 = vector.extract_strided_slice %350 {offsets = [0, 128], sizes = [2, 128], strides = [1, 1]} : vector<2x384xf32> to vector<2x128xf32>
    %392 = arith.addf %390, %391 : vector<2x128xf32>
    %393 = arith.negf %392 : vector<2x128xf32>
    %394 = math.exp %393 : vector<2x128xf32>
    %cst_92 = arith.constant 1.000000e+00 : f32
    %395 = vector.broadcast %cst_92 : f32 to vector<2x128xf32>
    %396 = arith.addf %395, %394 : vector<2x128xf32>
    %397 = arith.divf %395, %396 : vector<2x128xf32>
    %398 = vector.extract_strided_slice %381 {offsets = [0, 256], sizes = [2, 128], strides = [1, 1]} : vector<2x384xf32> to vector<2x128xf32>
    %399 = vector.extract_strided_slice %350 {offsets = [0, 256], sizes = [2, 128], strides = [1, 1]} : vector<2x384xf32> to vector<2x128xf32>
    %400 = arith.addf %399, %16 : vector<2x128xf32>
    %401 = arith.mulf %389, %400 : vector<2x128xf32>
    %402 = arith.addf %398, %401 : vector<2x128xf32>
    %403 = math.tanh %402 : vector<2x128xf32>
    %cst_93 = arith.constant 1.000000e+00 : f32
    %404 = vector.broadcast %cst_93 : f32 to vector<2x128xf32>
    %405 = arith.subf %404, %397 : vector<2x128xf32>
    %406 = arith.mulf %405, %403 : vector<2x128xf32>
    %407 = arith.mulf %397, %343 : vector<2x128xf32>
    %408 = arith.addf %406, %407 : vector<2x128xf32>
    %c0_94 = arith.constant 0 : index
    %c2304 = arith.constant 2304 : index
    %409 = vector.load %arg15[%c0_94, %c2304] : memref<2x3072xf32, #tpu.memory_space<vmem>>, vector<2x384xf32>
    %410 = tpu.concatenate %377, %408 in 1 : vector<2x128xf32>, vector<2x128xf32> -> vector<2x256xf32>
    %411 = arith.truncf %410 : vector<2x256xf32> to vector<2x256xbf16>
    %c0_95 = arith.constant 0 : index
    %c0_96 = arith.constant 0 : index
    %412 = vector.load %arg3[%c0_95, %c0_96] : memref<256x768xbf16, #tpu.memory_space<vmem>>, vector<256x768xbf16>
    %cst_97 = arith.constant dense<0.000000e+00> : vector<2x768xf32>
    %413 = tpu.matmul %411, %412, %cst_97 {dimension_numbers = #tpu.dot_dimension_numbers<[1], [0], [0], [1], [0, 0, 1, 1], [], []>} : vector<2x256xbf16>, vector<256x768xbf16>, vector<2x768xf32> -> vector<2x768xf32>
    %414 = vector.extract_strided_slice %413 {offsets = [0, 0], sizes = [2, 384], strides = [1, 1]} : vector<2x768xf32> to vector<2x384xf32>
    %415 = vector.extract_strided_slice %413 {offsets = [0, 384], sizes = [2, 384], strides = [1, 1]} : vector<2x768xf32> to vector<2x384xf32>
    %416 = vector.extract_strided_slice %409 {offsets = [0, 0], sizes = [2, 128], strides = [1, 1]} : vector<2x384xf32> to vector<2x128xf32>
    %417 = vector.extract_strided_slice %414 {offsets = [0, 0], sizes = [2, 128], strides = [1, 1]} : vector<2x384xf32> to vector<2x128xf32>
    %418 = arith.addf %416, %417 : vector<2x128xf32>
    %419 = arith.negf %418 : vector<2x128xf32>
    %420 = math.exp %419 : vector<2x128xf32>
    %cst_98 = arith.constant 1.000000e+00 : f32
    %421 = vector.broadcast %cst_98 : f32 to vector<2x128xf32>
    %422 = arith.addf %421, %420 : vector<2x128xf32>
    %423 = arith.divf %421, %422 : vector<2x128xf32>
    %424 = vector.extract_strided_slice %409 {offsets = [0, 128], sizes = [2, 128], strides = [1, 1]} : vector<2x384xf32> to vector<2x128xf32>
    %425 = vector.extract_strided_slice %414 {offsets = [0, 128], sizes = [2, 128], strides = [1, 1]} : vector<2x384xf32> to vector<2x128xf32>
    %426 = arith.addf %424, %425 : vector<2x128xf32>
    %427 = arith.negf %426 : vector<2x128xf32>
    %428 = math.exp %427 : vector<2x128xf32>
    %cst_99 = arith.constant 1.000000e+00 : f32
    %429 = vector.broadcast %cst_99 : f32 to vector<2x128xf32>
    %430 = arith.addf %429, %428 : vector<2x128xf32>
    %431 = arith.divf %429, %430 : vector<2x128xf32>
    %432 = vector.extract_strided_slice %409 {offsets = [0, 256], sizes = [2, 128], strides = [1, 1]} : vector<2x384xf32> to vector<2x128xf32>
    %433 = vector.extract_strided_slice %414 {offsets = [0, 256], sizes = [2, 128], strides = [1, 1]} : vector<2x384xf32> to vector<2x128xf32>
    %434 = arith.addf %433, %13 : vector<2x128xf32>
    %435 = arith.mulf %423, %434 : vector<2x128xf32>
    %436 = arith.addf %432, %435 : vector<2x128xf32>
    %437 = math.tanh %436 : vector<2x128xf32>
    %cst_100 = arith.constant 1.000000e+00 : f32
    %438 = vector.broadcast %cst_100 : f32 to vector<2x128xf32>
    %439 = arith.subf %438, %431 : vector<2x128xf32>
    %440 = arith.mulf %439, %437 : vector<2x128xf32>
    %441 = arith.mulf %431, %377 : vector<2x128xf32>
    %442 = arith.addf %440, %441 : vector<2x128xf32>
    %443 = arith.truncf %442 : vector<2x128xf32> to vector<2x128xbf16>
    %c0_101 = arith.constant 0 : index
    %c0_102 = arith.constant 0 : index
    %444 = vector.load %arg4[%c0_101, %c0_102] : memref<128x384xbf16, #tpu.memory_space<vmem>>, vector<128x384xbf16>
    %cst_103 = arith.constant dense<0.000000e+00> : vector<2x384xf32>
    %445 = tpu.matmul %443, %444, %cst_103 {dimension_numbers = #tpu.dot_dimension_numbers<[1], [0], [0], [1], [0, 0, 1, 1], [], []>} : vector<2x128xbf16>, vector<128x384xbf16>, vector<2x384xf32> -> vector<2x384xf32>
    %446 = arith.addf %445, %10 : vector<2x384xf32>
    %447 = vector.extract_strided_slice %446 {offsets = [0, 0], sizes = [2, 128], strides = [1, 1]} : vector<2x384xf32> to vector<2x128xf32>
    %448 = vector.extract_strided_slice %415 {offsets = [0, 0], sizes = [2, 128], strides = [1, 1]} : vector<2x384xf32> to vector<2x128xf32>
    %449 = arith.addf %447, %448 : vector<2x128xf32>
    %450 = arith.negf %449 : vector<2x128xf32>
    %451 = math.exp %450 : vector<2x128xf32>
    %cst_104 = arith.constant 1.000000e+00 : f32
    %452 = vector.broadcast %cst_104 : f32 to vector<2x128xf32>
    %453 = arith.addf %452, %451 : vector<2x128xf32>
    %454 = arith.divf %452, %453 : vector<2x128xf32>
    %455 = vector.extract_strided_slice %446 {offsets = [0, 128], sizes = [2, 128], strides = [1, 1]} : vector<2x384xf32> to vector<2x128xf32>
    %456 = vector.extract_strided_slice %415 {offsets = [0, 128], sizes = [2, 128], strides = [1, 1]} : vector<2x384xf32> to vector<2x128xf32>
    %457 = arith.addf %455, %456 : vector<2x128xf32>
    %458 = arith.negf %457 : vector<2x128xf32>
    %459 = math.exp %458 : vector<2x128xf32>
    %cst_105 = arith.constant 1.000000e+00 : f32
    %460 = vector.broadcast %cst_105 : f32 to vector<2x128xf32>
    %461 = arith.addf %460, %459 : vector<2x128xf32>
    %462 = arith.divf %460, %461 : vector<2x128xf32>
    %463 = vector.extract_strided_slice %446 {offsets = [0, 256], sizes = [2, 128], strides = [1, 1]} : vector<2x384xf32> to vector<2x128xf32>
    %464 = vector.extract_strided_slice %415 {offsets = [0, 256], sizes = [2, 128], strides = [1, 1]} : vector<2x384xf32> to vector<2x128xf32>
    %465 = arith.addf %464, %16 : vector<2x128xf32>
    %466 = arith.mulf %454, %465 : vector<2x128xf32>
    %467 = arith.addf %463, %466 : vector<2x128xf32>
    %468 = math.tanh %467 : vector<2x128xf32>
    %cst_106 = arith.constant 1.000000e+00 : f32
    %469 = vector.broadcast %cst_106 : f32 to vector<2x128xf32>
    %470 = arith.subf %469, %462 : vector<2x128xf32>
    %471 = arith.mulf %470, %468 : vector<2x128xf32>
    %472 = arith.mulf %462, %408 : vector<2x128xf32>
    %473 = arith.addf %471, %472 : vector<2x128xf32>
    %c0_107 = arith.constant 0 : index
    %c2688 = arith.constant 2688 : index
    %474 = vector.load %arg15[%c0_107, %c2688] : memref<2x3072xf32, #tpu.memory_space<vmem>>, vector<2x384xf32>
    %475 = tpu.concatenate %442, %473 in 1 : vector<2x128xf32>, vector<2x128xf32> -> vector<2x256xf32>
    %476 = arith.truncf %475 : vector<2x256xf32> to vector<2x256xbf16>
    %c0_108 = arith.constant 0 : index
    %c0_109 = arith.constant 0 : index
    %477 = vector.load %arg3[%c0_108, %c0_109] : memref<256x768xbf16, #tpu.memory_space<vmem>>, vector<256x768xbf16>
    %cst_110 = arith.constant dense<0.000000e+00> : vector<2x768xf32>
    %478 = tpu.matmul %476, %477, %cst_110 {dimension_numbers = #tpu.dot_dimension_numbers<[1], [0], [0], [1], [0, 0, 1, 1], [], []>} : vector<2x256xbf16>, vector<256x768xbf16>, vector<2x768xf32> -> vector<2x768xf32>
    %479 = vector.extract_strided_slice %478 {offsets = [0, 0], sizes = [2, 384], strides = [1, 1]} : vector<2x768xf32> to vector<2x384xf32>
    %480 = vector.extract_strided_slice %478 {offsets = [0, 384], sizes = [2, 384], strides = [1, 1]} : vector<2x768xf32> to vector<2x384xf32>
    %481 = vector.extract_strided_slice %474 {offsets = [0, 0], sizes = [2, 128], strides = [1, 1]} : vector<2x384xf32> to vector<2x128xf32>
    %482 = vector.extract_strided_slice %479 {offsets = [0, 0], sizes = [2, 128], strides = [1, 1]} : vector<2x384xf32> to vector<2x128xf32>
    %483 = arith.addf %481, %482 : vector<2x128xf32>
    %484 = arith.negf %483 : vector<2x128xf32>
    %485 = math.exp %484 : vector<2x128xf32>
    %cst_111 = arith.constant 1.000000e+00 : f32
    %486 = vector.broadcast %cst_111 : f32 to vector<2x128xf32>
    %487 = arith.addf %486, %485 : vector<2x128xf32>
    %488 = arith.divf %486, %487 : vector<2x128xf32>
    %489 = vector.extract_strided_slice %474 {offsets = [0, 128], sizes = [2, 128], strides = [1, 1]} : vector<2x384xf32> to vector<2x128xf32>
    %490 = vector.extract_strided_slice %479 {offsets = [0, 128], sizes = [2, 128], strides = [1, 1]} : vector<2x384xf32> to vector<2x128xf32>
    %491 = arith.addf %489, %490 : vector<2x128xf32>
    %492 = arith.negf %491 : vector<2x128xf32>
    %493 = math.exp %492 : vector<2x128xf32>
    %cst_112 = arith.constant 1.000000e+00 : f32
    %494 = vector.broadcast %cst_112 : f32 to vector<2x128xf32>
    %495 = arith.addf %494, %493 : vector<2x128xf32>
    %496 = arith.divf %494, %495 : vector<2x128xf32>
    %497 = vector.extract_strided_slice %474 {offsets = [0, 256], sizes = [2, 128], strides = [1, 1]} : vector<2x384xf32> to vector<2x128xf32>
    %498 = vector.extract_strided_slice %479 {offsets = [0, 256], sizes = [2, 128], strides = [1, 1]} : vector<2x384xf32> to vector<2x128xf32>
    %499 = arith.addf %498, %13 : vector<2x128xf32>
    %500 = arith.mulf %488, %499 : vector<2x128xf32>
    %501 = arith.addf %497, %500 : vector<2x128xf32>
    %502 = math.tanh %501 : vector<2x128xf32>
    %cst_113 = arith.constant 1.000000e+00 : f32
    %503 = vector.broadcast %cst_113 : f32 to vector<2x128xf32>
    %504 = arith.subf %503, %496 : vector<2x128xf32>
    %505 = arith.mulf %504, %502 : vector<2x128xf32>
    %506 = arith.mulf %496, %442 : vector<2x128xf32>
    %507 = arith.addf %505, %506 : vector<2x128xf32>
    %508 = arith.truncf %507 : vector<2x128xf32> to vector<2x128xbf16>
    %c0_114 = arith.constant 0 : index
    %c0_115 = arith.constant 0 : index
    %509 = vector.load %arg4[%c0_114, %c0_115] : memref<128x384xbf16, #tpu.memory_space<vmem>>, vector<128x384xbf16>
    %cst_116 = arith.constant dense<0.000000e+00> : vector<2x384xf32>
    %510 = tpu.matmul %508, %509, %cst_116 {dimension_numbers = #tpu.dot_dimension_numbers<[1], [0], [0], [1], [0, 0, 1, 1], [], []>} : vector<2x128xbf16>, vector<128x384xbf16>, vector<2x384xf32> -> vector<2x384xf32>
    %511 = arith.addf %510, %10 : vector<2x384xf32>
    %512 = vector.extract_strided_slice %511 {offsets = [0, 0], sizes = [2, 128], strides = [1, 1]} : vector<2x384xf32> to vector<2x128xf32>
    %513 = vector.extract_strided_slice %480 {offsets = [0, 0], sizes = [2, 128], strides = [1, 1]} : vector<2x384xf32> to vector<2x128xf32>
    %514 = arith.addf %512, %513 : vector<2x128xf32>
    %515 = arith.negf %514 : vector<2x128xf32>
    %516 = math.exp %515 : vector<2x128xf32>
    %cst_117 = arith.constant 1.000000e+00 : f32
    %517 = vector.broadcast %cst_117 : f32 to vector<2x128xf32>
    %518 = arith.addf %517, %516 : vector<2x128xf32>
    %519 = arith.divf %517, %518 : vector<2x128xf32>
    %520 = vector.extract_strided_slice %511 {offsets = [0, 128], sizes = [2, 128], strides = [1, 1]} : vector<2x384xf32> to vector<2x128xf32>
    %521 = vector.extract_strided_slice %480 {offsets = [0, 128], sizes = [2, 128], strides = [1, 1]} : vector<2x384xf32> to vector<2x128xf32>
    %522 = arith.addf %520, %521 : vector<2x128xf32>
    %523 = arith.negf %522 : vector<2x128xf32>
    %524 = math.exp %523 : vector<2x128xf32>
    %cst_118 = arith.constant 1.000000e+00 : f32
    %525 = vector.broadcast %cst_118 : f32 to vector<2x128xf32>
    %526 = arith.addf %525, %524 : vector<2x128xf32>
    %527 = arith.divf %525, %526 : vector<2x128xf32>
    %528 = vector.extract_strided_slice %511 {offsets = [0, 256], sizes = [2, 128], strides = [1, 1]} : vector<2x384xf32> to vector<2x128xf32>
    %529 = vector.extract_strided_slice %480 {offsets = [0, 256], sizes = [2, 128], strides = [1, 1]} : vector<2x384xf32> to vector<2x128xf32>
    %530 = arith.addf %529, %16 : vector<2x128xf32>
    %531 = arith.mulf %519, %530 : vector<2x128xf32>
    %532 = arith.addf %528, %531 : vector<2x128xf32>
    %533 = math.tanh %532 : vector<2x128xf32>
    %cst_119 = arith.constant 1.000000e+00 : f32
    %534 = vector.broadcast %cst_119 : f32 to vector<2x128xf32>
    %535 = arith.subf %534, %527 : vector<2x128xf32>
    %536 = arith.mulf %535, %533 : vector<2x128xf32>
    %537 = arith.mulf %527, %473 : vector<2x128xf32>
    %538 = arith.addf %536, %537 : vector<2x128xf32>
    %539 = arith.truncf %538 : vector<2x128xf32> to vector<2x128xbf16>
    %c0_120 = arith.constant 0 : index
    %c0_121 = arith.constant 0 : index
    %540 = vector.load %arg8[%c0_120, %c0_121] : memref<128x128xbf16, #tpu.memory_space<vmem>>, vector<128x128xbf16>
    %cst_122 = arith.constant dense<0.000000e+00> : vector<2x128xf32>
    %541 = tpu.matmul %539, %540, %cst_122 {dimension_numbers = #tpu.dot_dimension_numbers<[1], [0], [0], [1], [0, 0, 1, 1], [], []>} : vector<2x128xbf16>, vector<128x128xbf16>, vector<2x128xf32> -> vector<2x128xf32>
    %c0_123 = arith.constant 0 : index
    %c0_124 = arith.constant 0 : index
    %542 = vector.load %arg9[%c0_123, %c0_124] : memref<1x128xf32, #tpu.memory_space<vmem>>, vector<1x128xf32>
    %543 = vector.broadcast %542 : vector<1x128xf32> to vector<2x128xf32>
    %544 = arith.addf %541, %543 : vector<2x128xf32>
    %cst_125 = arith.constant 0.000000e+00 : f32
    %545 = vector.broadcast %cst_125 : f32 to vector<2x128xf32>
    %546 = arith.maximumf %544, %545 : vector<2x128xf32>
    %547 = arith.truncf %546 : vector<2x128xf32> to vector<2x128xbf16>
    %c0_126 = arith.constant 0 : index
    %c0_127 = arith.constant 0 : index
    %548 = vector.load %arg10[%c0_126, %c0_127] : memref<128x64xbf16, #tpu.memory_space<vmem>>, vector<128x64xbf16>
    %cst_128 = arith.constant dense<0.000000e+00> : vector<2x64xf32>
    %549 = tpu.matmul %547, %548, %cst_128 {dimension_numbers = #tpu.dot_dimension_numbers<[1], [0], [0], [1], [0, 0, 1, 1], [], []>} : vector<2x128xbf16>, vector<128x64xbf16>, vector<2x64xf32> -> vector<2x64xf32>
    %c0_129 = arith.constant 0 : index
    %c0_130 = arith.constant 0 : index
    %550 = vector.load %arg11[%c0_129, %c0_130] : memref<1x64xf32, #tpu.memory_space<vmem>>, vector<1x64xf32>
    %551 = vector.broadcast %550 : vector<1x64xf32> to vector<2x64xf32>
    %552 = arith.addf %549, %551 : vector<2x64xf32>
    %cst_131 = arith.constant 0.000000e+00 : f32
    %553 = vector.broadcast %cst_131 : f32 to vector<2x64xf32>
    %554 = arith.maximumf %552, %553 : vector<2x64xf32>
    %555 = arith.truncf %554 : vector<2x64xf32> to vector<2x64xbf16>
    %c0_132 = arith.constant 0 : index
    %c0_133 = arith.constant 0 : index
    %556 = vector.load %arg12[%c0_132, %c0_133] : memref<64x2xbf16, #tpu.memory_space<vmem>>, vector<64x2xbf16>
    %cst_134 = arith.constant dense<0.000000e+00> : vector<2x2xf32>
    %557 = tpu.matmul %555, %556, %cst_134 {dimension_numbers = #tpu.dot_dimension_numbers<[1], [0], [0], [1], [0, 0, 1, 1], [], []>} : vector<2x64xbf16>, vector<64x2xbf16>, vector<2x2xf32> -> vector<2x2xf32>
    %c0_135 = arith.constant 0 : index
    %c0_136 = arith.constant 0 : index
    %558 = vector.load %arg13[%c0_135, %c0_136] : memref<1x2xf32, #tpu.memory_space<vmem>>, vector<1x2xf32>
    %559 = vector.broadcast %558 : vector<1x2xf32> to vector<2x2xf32>
    %560 = arith.addf %557, %559 : vector<2x2xf32>
    %c0_137 = arith.constant 0 : index
    %c0_138 = arith.constant 0 : index
    %561 = vector.load %arg14[%c0_137, %c0_138] : memref<2x2xf32, #tpu.memory_space<vmem>>, vector<2x2xf32>
    tpu.vector_store %arg14[%c0_137, %c0_138], %560 {strides = array<i32>} : memref<2x2xf32, #tpu.memory_space<vmem>>, vector<2x2xf32>,
    return
  }
}

</mosaic_0001>

<bundles_post_ra>
// kernel: tpu_custom_call.1
= control target key start
LH: loop header
LB: loop body
LE: loop exit
PB: predicated region body
PF: predicated region fallthrough
CT: control target
= control target key end

     0   :  { %19 = vsyncpa [#allocation4], 0  ;;  %s7875_s0 = inlined_call_operand.vmem [shape: f32[2,32], index: 0, kind: input, shape index: {}]   ;;  %s7876_s1 = inlined_call_operand.hbm [shape: bf16[32,3072], index: 1, kind: input, shape index: {}]   ;;  %s7877_s2 = inlined_call_operand.vmem [shape: f32[1,3072], index: 2, kind: input, shape index: {}]   ;;  %s7878_s3 = inlined_call_operand.hbm [shape: bf16[256,768], index: 3, kind: input, shape index: {}]   ;;  %s7879_s4 = inlined_call_operand.hbm [shape: bf16[128,384], index: 4, kind: input, shape index: {}]   ;;  %s7880_s5 = inlined_call_operand.vmem [shape: f32[1,384], index: 5, kind: input, shape index: {}]   ;;  %s7881_s6 = inlined_call_operand.vmem [shape: f32[1,128], index: 6, kind: input, shape index: {}]   ;;  %s7882_s7 = inlined_call_operand.vmem [shape: f32[1,128], index: 7, kind: input, shape index: {}]   ;;  %s7883_s8 = inlined_call_operand.vmem [shape: bf16[128,128], index: 8, kind: input, shape index: {}]   ;;  %s7884_s9 = inlined_call_operand.vmem [shape: f32[1,128], index: 9, kind: input, shape index: {}]   ;;  %s7885_s10 = inlined_call_operand.vmem [shape: bf16[128,64], index: 10, kind: input, shape index: {}]   ;;  %s7886_s11 = inlined_call_operand.vmem [shape: f32[1,64], index: 11, kind: input, shape index: {}]   ;;  %s7887_s12 = inlined_call_operand.vmem [shape: bf16[64,2], index: 12, kind: input, shape index: {}]   ;;  %s7888_s13 = inlined_call_operand.vmem [shape: f32[1,2], index: 13, kind: input, shape index: {}]   ;;  %s7889_s14 = inlined_call_operand.hbm [shape: f32[2,2], index: 14, kind: output, shape index: {}]  }
   0x1   :  { %20 = vsyncpa [#allocation7], 0 }
   0x2   :  { %21 = vsyncpa [#allocation5], 0  ;;  %s5538_s29 = smov [#allocation6]  }
   0x3   :  { %s43_s30 = sshll.u32 %s5538_s29, 4  ;;  %s44_s30 = int_to_ptr.vmem [resolvable:$true] %s43_s30 }
   0x4   :  { %s5460_s15 = scalar_lea.vmem %s44_s30, 12288  ;;  %p5465_p1 = scmp.lt.s32.totalorder %s44_s30, %s44_s30 }
   0x5   :  { %p5461_p0 = scmp.ne.s32.totalorder %s44_s30, %s5460_s15  ;;  %p5466_p2 = scmp.lt.s32.totalorder %s5460_s15, %s5460_s15 }
   0x7   :  { %p5467_p3 = por %p5466_p2, %p5465_p1 }
   0x9   :  { %p5468_p4 = pnand %p5467_p3, %p5461_p0 }
   0xb   :  { %5471 = shalt.err (!%p5468_p4)
}
   0xc   :  { %s5539_s16 = smov 384   ;;  %s5540_s17 = smov 24  }
   0xd   :  { %49 = dma.hbm_to_vmem [thread:$0]  %s7878_s3, 12288, %s44_s30, [#allocation7], %s5539_s16, %s5539_s16, %s5540_s17  }
   0xe   :  { %s5541_s20 = smov [#allocation3]  }
   0xf   :  { %s29_s21 = sshll.u32 %s5541_s20, 4  ;;  %s30_s21 = int_to_ptr.vmem [resolvable:$true] %s29_s21 }
  0x10   :  { %s5480_s22 = scalar_lea.vmem %s30_s21, 6144  ;;  %p5485_p6 = scmp.lt.s32.totalorder %s30_s21, %s30_s21 }
  0x11   :  { %p5481_p5 = scmp.ne.s32.totalorder %s30_s21, %s5480_s22  ;;  %p5486_p7 = scmp.lt.s32.totalorder %s5480_s22, %s5480_s22 }
  0x13   :  { %p5487_p8 = por %p5486_p7, %p5485_p6 }
  0x15   :  { %p5488_p9 = pnand %p5487_p8, %p5481_p5 }
  0x17   :  { %5491 = shalt.err (!%p5488_p9)
}
  0x18   :  { %s5542_s23 = smov 1536   ;;  %s5543_s24 = smov 96  }
  0x19   :  { %35 = dma.hbm_to_vmem [thread:$0]  %s7876_s1, 6144, %s30_s21, [#allocation4], %s5542_s23, %s5542_s23, %s5543_s24  }
  0x1a   :  { %s5544_s27 = smov [#allocation8]  }
  0x1b   :  { %s55_s28 = sshll.u32 %s5544_s27, 4  ;;  %s56_s28 = int_to_ptr.vmem [resolvable:$true] %s55_s28 }
  0x1c   :  { %s5500_s3 = scalar_lea.vmem %s56_s28, 3072  ;;  %p5505_p11 = scmp.lt.s32.totalorder %s56_s28, %s56_s28 }
  0x1d   :  { %p5501_p10 = scmp.ne.s32.totalorder %s56_s28, %s5500_s3  ;;  %p5506_p12 = scmp.lt.s32.totalorder %s5500_s3, %s5500_s3 }
  0x1f   :  { %p5507_p13 = por %p5506_p12, %p5505_p11 }
  0x21   :  { %p5508_p0 = pnand %p5507_p13, %p5501_p10 }
  0x23   :  { %5511 = shalt.err (!%p5508_p0)
}
  0x24   :  { %s5545_s29 = smov 192   ;;  %s5546_s30 = smov 12  }
  0x25   :  { %61 = dma.hbm_to_vmem [thread:$0]  %s7879_s4, 3072, %s56_s28, [#allocation7], %s5545_s29, %s5545_s29, %s5546_s30  }
  0x26   :  { %5532 = dma.done.wait [#allocation4], 6144  }
  0x27   :  { %5533 = vsyncadd [#allocation4], 4294961152 }
  0x28   :  { %5534 = dma.done.wait [#allocation7], 15360  }
  0x29   :  { %5535 = vsyncadd [#allocation7], 4294951936  ;;  %v7890_v0 = vmov 0   ;;  %v116_v1 = vld [vmem:[#allocation3 + $0xc0] sm:$0xff]  ;;  %v118_v3 = vld [vmem:[#allocation3 + $0xd0] sm:$0xff]  ;;  %vm506_vm0 = vcmask 261120  }
  0x2a   :  { %542 = vmatprep.mubr.bf16.mxu1 %v7890_v0  ;;  %624 = vmatprep.mubr.bf16.mxu0 %v7890_v0  ;;  %v128_v2 = vld [vmem:[#allocation3 + $0x120] sm:$0xff]  ;;  %v130_v5 = vld [vmem:[#allocation3 + $0x130] sm:$0xff]  ;;  %v117_v15 = vld [vmem:[#allocation3 + $0xc8] sm:$0xff]  ;;  %vm5551_vm1 = vmmov 0   ;;  %vm4221_vm2 = vcmask 523264   ;;  %s5552_s3 = smov [#allocation9]  }
  0x2b   :  { %v4308_v4 = vcombine.high %v116_v1, %v128_v2  ;;  %v4307_v6 = vcombine.low %v116_v1, %v128_v2  ;;  %v92_v7 = vld [vmem:[#allocation3] sm:$0xff]  ;;  %v4312_v9 = vcombine.high %v118_v3, %v130_v5  ;;  %v4311_v10 = vcombine.low %v118_v3, %v130_v5  ;;  %v94_v12 = vld [vmem:[#allocation3 + $0x10] sm:$0xff]  ;;  %v129_v16 = vld [vmem:[#allocation3 + $0x128] sm:$0xff] }
  0x2c   :  { %v104_v8 = vld [vmem:[#allocation3 + $0x60] sm:$0xff]  ;;  %v106_v13 = vld [vmem:[#allocation3 + $0x70] sm:$0xff]  ;;  %v4310_v22 = vcombine.high %v117_v15, %v129_v16  ;;  %v93_v24 = vld [vmem:[#allocation3 + $0x8] sm:$0xff]  ;;  %v4309_v29 = vcombine.low %v117_v15, %v129_v16  ;;  %vm4265_vm3 = vcmask 9216  }
  0x2d   :  { %v4284_v11 = vcombine.high %v92_v7, %v104_v8  ;;  %522 = vmatprep.subr.bf16.mxu1 %v4308_v4  ;;  %v4288_v14 = vcombine.high %v94_v12, %v106_v13  ;;  %v120_v17 = vld [vmem:[#allocation3 + $0xe0] sm:$0xff]  ;;  %604 = vmatprep.subr.bf16.mxu0 %v4312_v9  ;;  %v4283_v18 = vcombine.low %v92_v7, %v104_v8  ;;  %v90_v19 = vld [vmem:[%s7875_s0] sm:$0x3]  ;;  %v105_v25 = vld [vmem:[#allocation3 + $0x68] sm:$0xff] }
  0x2e   :  { %523 = vmatpush1.bf16.msra.mxu1 %v4307_v6  ;;  %v132_v20 = vld [vmem:[#allocation3 + $0x140] sm:$0xff]  ;;  %605 = vmatpush1.bf16.msra.mxu0 %v4311_v10  ;;  %v4287_v21 = vcombine.low %v94_v12, %v106_v13  ;;  %v5642_v26 = vpack.c.bf16 %v90_v19, %v90_v19  ;;  %v4286_v31 = vcombine.high %v93_v24, %v105_v25  ;;  %v119_v33 = vld [vmem:[#allocation3 + $0xd8] sm:$0xff]  ;;  %v122_v35 = vld [vmem:[#allocation3 + $0xf0] sm:$0xff] }
  0x2f   :  { %524 = vmatprep.subr.bf16.mxu1 %v4284_v11  ;;  %606 = vmatprep.subr.bf16.mxu0 %v4288_v14  ;;  %v4316_v23 = vcombine.high %v120_v17, %v132_v20  ;;  %v96_v27 = vld [vmem:[#allocation3 + $0x20] sm:$0xff]  ;;  %v4315_v30 = vcombine.low %v120_v17, %v132_v20  ;;  %v131_v34 = vld [vmem:[#allocation3 + $0x138] sm:$0xff]  ;;  %v134_v36 = vld [vmem:[#allocation3 + $0x150] sm:$0xff]  ;;  %v4285_v37 = vcombine.low %v93_v24, %v105_v25 }
  0x30   :  { %v108_v28 = vld [vmem:[#allocation3 + $0x80] sm:$0xff]  ;;  %v4314_v39 = vcombine.high %v119_v33, %v131_v34  ;;  %v95_v40 = vld [vmem:[#allocation3 + $0x18] sm:$0xff]  ;;  %v4320_v41 = vcombine.high %v122_v35, %v134_v36  ;;  %v98_v43 = vld [vmem:[#allocation3 + $0x30] sm:$0xff]  ;;  %v4313_v45 = vcombine.low %v119_v33, %v131_v34  ;;  %v4319_v46 = vcombine.low %v122_v35, %v134_v36 }
  0x31   :  { %v4292_v32 = vcombine.high %v96_v27, %v108_v28  ;;  %v4291_v38 = vcombine.low %v96_v27, %v108_v28  ;;  %v107_v42 = vld [vmem:[#allocation3 + $0x78] sm:$0xff]  ;;  %v110_v44 = vld [vmem:[#allocation3 + $0x90] sm:$0xff]  ;;  %v121_v48 = vld [vmem:[#allocation3 + $0xe8] sm:$0xff] }
  0x32   :  { %525 = vmatpush1.bf16.msra.mxu1 %v4283_v18  ;;  %607 = vmatpush1.bf16.msra.mxu0 %v4287_v21  ;;  %v4290_v47 = vcombine.high %v95_v40, %v107_v42  ;;  %v4296_v49 = vcombine.high %v98_v43, %v110_v44  ;;  %v133_v50 = vld [vmem:[#allocation3 + $0x148] sm:$0xff]  ;;  %v124_v51 = vld [vmem:[#allocation3 + $0x100] sm:$0xff]  ;;  %v4289_v53 = vcombine.low %v95_v40, %v107_v42  ;;  %v123_v1 = vld [vmem:[#allocation3 + $0xf8] sm:$0xff] }
  0x33   :  { %563 = vmatprep.subr.bf16.mxu1 %v4310_v22  ;;  %686 = vmatprep.subr.bf16.mxu0 %v4316_v23  ;;  %v136_v52 = vld [vmem:[#allocation3 + $0x160] sm:$0xff]  ;;  %v4295_v54 = vcombine.low %v98_v43, %v110_v44  ;;  %v4318_v55 = vcombine.high %v121_v48, %v133_v50  ;;  %v97_v56 = vld [vmem:[#allocation3 + $0x28] sm:$0xff]  ;;  %v4317_v61 = vcombine.low %v121_v48, %v133_v50  ;;  %v135_v3 = vld [vmem:[#allocation3 + $0x158] sm:$0xff] }
  0x34   :  { %v4324_v57 = vcombine.high %v124_v51, %v136_v52  ;;  %v109_v58 = vld [vmem:[#allocation3 + $0x88] sm:$0xff]  ;;  %v100_v59 = vld [vmem:[#allocation3 + $0x40] sm:$0xff]  ;;  %v4323_v62 = vcombine.low %v124_v51, %v136_v52  ;;  %v126_v4 = vld [vmem:[#allocation3 + $0x110] sm:$0xff]  ;;  %v4322_v8 = vcombine.high %v123_v1, %v135_v3  ;;  %v4321_v14 = vcombine.low %v123_v1, %v135_v3 }
  0x35   :  { %4331 = vmatmul.mubr.msk.bf16.vlgmr.msra.gmra.mxu1 %vm506_vm0, %v5642_v26  ;;  %4333 = vmatmul.mubr.msk.bf16.vlgmr.msra.gmra.mxu0 %vm506_vm0, %v5642_v26  ;;  %v112_v60 = vld [vmem:[#allocation3 + $0xa0] sm:$0xff]  ;;  %v4294_v63 = vcombine.high %v97_v56, %v109_v58  ;;  %v138_v5 = vld [vmem:[#allocation3 + $0x170] sm:$0xff]  ;;  %v4293_v6 = vcombine.low %v97_v56, %v109_v58  ;;  %v99_v9 = vld [vmem:[#allocation3 + $0x38] sm:$0xff] }
  0x36   :  { %564 = vmatpush1.bf16.msra.mxu1 %v4309_v29  ;;  %687 = vmatpush1.bf16.msra.mxu0 %v4315_v30  ;;  %v4300_v2 = vcombine.high %v100_v59, %v112_v60  ;;  %v4299_v7 = vcombine.low %v100_v59, %v112_v60  ;;  %v4328_v10 = vcombine.high %v126_v4, %v138_v5  ;;  %v111_v11 = vld [vmem:[#allocation3 + $0x98] sm:$0xff]  ;;  %v102_v12 = vld [vmem:[#allocation3 + $0x50] sm:$0xff]  ;;  %v125_v18 = vld [vmem:[#allocation3 + $0x108] sm:$0xff] }
  0x37   :  { %565 = vmatprep.subr.bf16.mxu1 %v4286_v31  ;;  %688 = vmatprep.subr.bf16.mxu0 %v4292_v32  ;;  %v114_v13 = vld [vmem:[#allocation3 + $0xb0] sm:$0xff]  ;;  %v4327_v15 = vcombine.low %v126_v4, %v138_v5  ;;  %v4298_v16 = vcombine.high %v99_v9, %v111_v11  ;;  %v137_v19 = vld [vmem:[#allocation3 + $0x168] sm:$0xff]  ;;  %v4297_v20 = vcombine.low %v99_v9, %v111_v11  ;;  %v5672_v30 = vld [vmem:[#allocation6 + $0x124] ss:$24 sps:$4 sm:$0xff]  }
  0x38   :  { %583 = vmatprep.mubr.bf16.mxu1 %v7890_v0  ;;  %706 = vmatprep.mubr.bf16.mxu0 %v7890_v0  ;;  %v4304_v17 = vcombine.high %v102_v12, %v114_v13  ;;  %v4303_v21 = vcombine.low %v102_v12, %v114_v13  ;;  %v4326_v22 = vcombine.high %v125_v18, %v137_v19  ;;  %v5666_v23 = vld [vmem:[#allocation6 + $0x154] ss:$24 sps:$4 sm:$0xff]   ;;  %v5670_v28 = vld [vmem:[#allocation6 + $0x150] ss:$24 sps:$4 sm:$0xff]   ;;  %v127_v31 = vld [vmem:[#allocation3 + $0x118] sm:$0xff] }
  0x39   :  { %v101_v24 = vld [vmem:[#allocation3 + $0x48] sm:$0xff]  ;;  %v4325_v27 = vcombine.low %v125_v18, %v137_v19  ;;  %v139_v32 = vld [vmem:[#allocation3 + $0x178] sm:$0xff] }
  0x3a   :  { %566 = vmatpush1.bf16.msra.mxu1 %v4285_v37  ;;  %689 = vmatpush1.bf16.msra.mxu0 %v4291_v38  ;;  %v113_v25 = vld [vmem:[#allocation3 + $0xa8] sm:$0xff]  ;;  %v5680_v34 = vld [vmem:[#allocation6 + $0x120] ss:$24 sps:$4 sm:$0xff]   ;;  %v4330_v35 = vcombine.high %v127_v31, %v139_v32  ;;  %v4329_v40 = vcombine.low %v127_v31, %v139_v32  ;;  %v5691_v43 = vld [vmem:[#allocation6 + $0xc4] ss:$24 sps:$4 sm:$0xff]  }
  0x3b   :  { %645 = vmatprep.subr.bf16.mxu1 %v4314_v39  ;;  %768 = vmatprep.subr.bf16.mxu0 %v4320_v41  ;;  %v4302_v29 = vcombine.high %v101_v24, %v113_v25  ;;  %v4301_v33 = vcombine.low %v101_v24, %v113_v25  ;;  %v5682_v36 = vld [vmem:[#allocation6 + $0xf4] ss:$24 sps:$4 sm:$0xff]   ;;  %v103_v37 = vld [vmem:[#allocation3 + $0x58] sm:$0xff]  ;;  %v7892_v39 = vmov 0.0|0.0   ;;  %v5688_v41 = vld [vmem:[#allocation6 + $0xf0] ss:$24 sps:$4 sm:$0xff]  }
  0x3c   :  { %v115_v38 = vld [vmem:[#allocation3 + $0xb8] sm:$0xff]  ;;  %v4870_v50 = vld [vmem:[#allocation6 + $0x12c] ss:$24 sps:$4 sm:$0xff]   ;;  %v4872_v52 = vld [vmem:[#allocation6 + $0x128] ss:$24 sps:$4 sm:$0xff]  }
  0x3d   :  { %4332 = vmatmul.mubr.msk.bf16.vlgmr.msra.gmra.mxu1 %vm506_vm0, %v5642_v26  ;;  %4335 = vmatmul.mubr.msk.bf16.vlgmr.msra.gmra.mxu0 %vm506_vm0, %v5642_v26  ;;  %v4306_v42 = vcombine.high %v103_v37, %v115_v38  ;;  %v4305_v44 = vcombine.low %v103_v37, %v115_v38  ;;  %v4866_v48 = vld [vmem:[#allocation6 + $0x158] ss:$24 sps:$4 sm:$0xff]   ;;  %v5706_v51 = vld [vmem:[#allocation6 + $0x64] ss:$24 sps:$4 sm:$0xff]   ;;  %v5741_v5 = vld [vmem:[#allocation6 + $0x274] ss:$24 sps:$4 sm:$0xff]  }
  0x3e   :  { %646 = vmatpush1.bf16.msra.mxu1 %v4313_v45  ;;  %769 = vmatpush1.bf16.msra.mxu0 %v4319_v46  ;;  %v5697_v45 = vld [vmem:[#allocation6 + $0xc0] ss:$24 sps:$4 sm:$0xff]   ;;  %v4864_v46 = vld [vmem:[#allocation6 + $0x15c] ss:$24 sps:$4 sm:$0xff]   ;;  %v4882_v58 = vld [vmem:[#allocation6 + $0xcc] ss:$24 sps:$4 sm:$0xff]  }
  0x3f   :  { %647 = vmatprep.subr.bf16.mxu1 %v4290_v47  ;;  %770 = vmatprep.subr.bf16.mxu0 %v4296_v49  ;;  %v5700_v47 = vld [vmem:[#allocation6 + $0x94] ss:$24 sps:$4 sm:$0xff]   ;;  %v5703_v49 = vld [vmem:[#allocation6 + $0x90] ss:$24 sps:$4 sm:$0xff]   ;;  %v5719_v59 = vld [vmem:[#allocation6 + $0x4] ss:$24 sps:$4 sm:$0xff]  }
  0x40   :  { %665 = vmatprep.mubr.bf16.mxu1 %v7890_v0  ;;  %788 = vmatprep.mubr.bf16.mxu0 %v7890_v0  ;;  %v4878_v56 = vld [vmem:[#allocation6 + $0xf8] ss:$24 sps:$4 sm:$0xff]   ;;  %v5735_v3 = vld [vmem:[#allocation6 + $0x2a4] ss:$24 sps:$4 sm:$0xff]   ;;  %v5765_v13 = vld [vmem:[#allocation6 + $0x8] ss:$24 sps:$4 sm:$0xff]  }
  0x41   :  { %v5723_v60 = vld [vmem:[#allocation6] ss:$24 sps:$4 sm:$0xff]   ;;  %v5731_v1 = vld [vmem:[#allocation6 + $0x2d0] ss:$24 sps:$4 sm:$0xff]   ;;  %v5757_v11 = vld [vmem:[#allocation6 + $0x244] ss:$24 sps:$4 sm:$0xff]  }
  0x42   :  { %648 = vmatpush1.bf16.msra.mxu1 %v4289_v53  ;;  %771 = vmatpush1.bf16.msra.mxu0 %v4295_v54  ;;  %v5710_v53 = vld [vmem:[#allocation6 + $0x60] ss:$24 sps:$4 sm:$0xff]   ;;  %v4876_v54 = vld [vmem:[#allocation6 + $0xfc] ss:$24 sps:$4 sm:$0xff]   ;;  %v5753_v9 = vld [vmem:[#allocation6 + $0x270] ss:$24 sps:$4 sm:$0xff]  }
  0x43   :  { %727 = vmatprep.subr.bf16.mxu1 %v4318_v55  ;;  %850 = vmatprep.subr.bf16.mxu0 %v4324_v57  ;;  %v5712_v55 = vld [vmem:[#allocation6 + $0x34] ss:$24 sps:$4 sm:$0xff]   ;;  %v5717_v57 = vld [vmem:[#allocation6 + $0x30] ss:$24 sps:$4 sm:$0xff]   ;;  %v5739_v4 = vld [vmem:[#allocation6 + $0x2a0] ss:$24 sps:$4 sm:$0xff]  }
  0x44   :  { %v5763_v12 = vld [vmem:[#allocation6 + $0x240] ss:$24 sps:$4 sm:$0xff]   ;;  %8299 = vst [vmem:[#allocation19_spill] sm:$0xff] %v5765_v13  ;;  %v5779_v18 = vld [vmem:[#allocation6 + $0x2ac] ss:$24 sps:$4 sm:$0xff]  }
  0x45   :  { %4334 = vmatmul.mubr.msk.bf16.vlgmr.msra.gmra.mxu1 %vm506_vm0, %v5642_v26  ;;  %4337 = vmatmul.mubr.msk.bf16.vlgmr.msra.gmra.mxu0 %vm506_vm0, %v5642_v26  ;;  %8302 = vst [vmem:[#allocation22_spill] sm:$0xff] %v5779_v18  ;;  %v5781_v19 = vld [vmem:[#allocation6 + $0x1e4] ss:$24 sps:$4 sm:$0xff]   ;;  %v5793_v24 = vld [vmem:[#allocation6 + $0x1b4] ss:$24 sps:$4 sm:$0xff]  }
  0x46   :  { %728 = vmatpush1.bf16.msra.mxu1 %v4317_v61  ;;  %851 = vmatpush1.bf16.msra.mxu0 %v4323_v62  ;;  %v4888_v61 = vld [vmem:[#allocation6 + $0x9c] ss:$24 sps:$4 sm:$0xff]   ;;  %v5800_v25 = vld [vmem:[#allocation6 + $0x278] ss:$24 sps:$4 sm:$0xff]   ;;  %v5812_v32 = vld [vmem:[#allocation6 + $0x248] ss:$24 sps:$4 sm:$0xff]  }
  0x47   :  { %729 = vmatprep.subr.bf16.mxu1 %v4294_v63  ;;  %852 = vmatprep.subr.bf16.mxu0 %v4300_v2  ;;  %v5725_v62 = vld [vmem:[#allocation6 + $0x2d4] ss:$24 sps:$4 sm:$0xff]   ;;  %v5729_v63 = vld [vmem:[#allocation6 + $0x98] ss:$24 sps:$4 sm:$0xff]   ;;  %8305 = vst [vmem:[#allocation25_spill] sm:$0xff] %v5800_v25  ;;  %8308 = vst [vmem:[#allocation28_spill] sm:$0xff] %v5812_v32 }
  0x48   :  { %747 = vmatprep.mubr.bf16.mxu1 %v7890_v0  ;;  %870 = vmatprep.mubr.bf16.mxu0 %v7890_v0  ;;  %8293 = vst [vmem:[#allocation13_spill] sm:$0xff] %v5729_v63  ;;  %v5733_v2 = vld [vmem:[#allocation6 + $0x6c] ss:$24 sps:$4 sm:$0xff]   ;;  %v5822_v37 = vld [vmem:[#allocation6 + $0x218] ss:$24 sps:$4 sm:$0xff]  }
  0x49   :  { %8294 = vst [vmem:[#allocation14_spill] sm:$0xff] %v5733_v2  ;;  %v5809_v31 = vld [vmem:[#allocation6 + $0x184] ss:$24 sps:$4 sm:$0xff]   ;;  %8311 = vst [vmem:[#allocation31_spill] sm:$0xff] %v5822_v37 }
  0x4a   :  { %730 = vmatpush1.bf16.msra.mxu1 %v4293_v6  ;;  %853 = vmatpush1.bf16.msra.mxu0 %v4299_v7  ;;  %v5744_v6 = vld [vmem:[#allocation6 + $0x68] ss:$24 sps:$4 sm:$0xff]   ;;  %v5748_v7 = vld [vmem:[#allocation6 + $0x3c] ss:$24 sps:$4 sm:$0xff]   ;;  %8307 = vst [vmem:[#allocation27_spill] sm:$0xff] %v5809_v31 }
  0x4b   :  { %809 = vmatprep.subr.bf16.mxu1 %v4322_v8  ;;  %932 = vmatprep.subr.bf16.mxu0 %v4328_v10  ;;  %8295 = vst [vmem:[#allocation15_spill] sm:$0xff] %v5744_v6  ;;  %8296 = vst [vmem:[#allocation16_spill] sm:$0xff] %v5748_v7  ;;  %v5751_v8 = vld [vmem:[#allocation6 + $0x38] ss:$24 sps:$4 sm:$0xff]   ;;  %v5755_v10 = vld [vmem:[#allocation6 + $0xc] ss:$24 sps:$4 sm:$0xff]  }
  0x4c   :  { %8297 = vst [vmem:[#allocation17_spill] sm:$0xff] %v5751_v8  ;;  %8298 = vst [vmem:[#allocation18_spill] sm:$0xff] %v5755_v10  ;;  %v5826_v38 = vld [vmem:[#allocation6 + $0x1ec] ss:$24 sps:$4 sm:$0xff]  }
  0x4d   :  { %4336 = vmatmul.mubr.msk.bf16.vlgmr.msra.gmra.mxu1 %vm506_vm0, %v5642_v26  ;;  %4339 = vmatmul.mubr.msk.bf16.vlgmr.msra.gmra.mxu0 %vm506_vm0, %v5642_v26  ;;  %8312 = vst [vmem:[#allocation32_spill] sm:$0xff] %v5826_v38 }
  0x4e   :  { %810 = vmatpush1.bf16.msra.mxu1 %v4321_v14  ;;  %933 = vmatpush1.bf16.msra.mxu0 %v4327_v15  ;;  %v5767_v14 = vld [vmem:[#allocation6 + $0x214] ss:$24 sps:$4 sm:$0xff]  }
  0x4f   :  { %811 = vmatprep.subr.bf16.mxu1 %v4298_v16  ;;  %934 = vmatprep.subr.bf16.mxu0 %v4304_v17  ;;  %v5772_v15 = vld [vmem:[#allocation6 + $0x2dc] ss:$24 sps:$4 sm:$0xff]   ;;  %v5775_v16 = vld [vmem:[#allocation6 + $0x2d8] ss:$24 sps:$4 sm:$0xff]  }
  0x50   :  { %829 = vmatprep.mubr.bf16.mxu1 %v7890_v0  ;;  %952 = vmatprep.mubr.bf16.mxu0 %v7890_v0  ;;  %8300 = vst [vmem:[#allocation20_spill] sm:$0xff] %v5772_v15  ;;  %8301 = vst [vmem:[#allocation21_spill] sm:$0xff] %v5775_v16  ;;  %v5777_v17 = vld [vmem:[#allocation6 + $0x210] ss:$24 sps:$4 sm:$0xff]  }
  0x52   :  { %812 = vmatpush1.bf16.msra.mxu1 %v4297_v20  ;;  %935 = vmatpush1.bf16.msra.mxu0 %v4303_v21  ;;  %v5787_v20 = vld [vmem:[#allocation6 + $0x2a8] ss:$24 sps:$4 sm:$0xff]  }
  0x53   :  { %891 = vmatprep.subr.bf16.mxu1 %v4326_v22  ;;  %1749 = vmatprep.subr.bf16.mxu0 %v5666_v23  ;;  %8303 = vst [vmem:[#allocation23_spill] sm:$0xff] %v5787_v20  ;;  %v5789_v21 = vld [vmem:[#allocation6 + $0x1e0] ss:$24 sps:$4 sm:$0xff]   ;;  %v5791_v22 = vld [vmem:[#allocation6 + $0x27c] ss:$24 sps:$4 sm:$0xff]  }
  0x54   :  { %8304 = vst [vmem:[#allocation24_spill] sm:$0xff] %v5791_v22 }
  0x55   :  { %4338 = vmatmul.mubr.msk.bf16.vlgmr.msra.gmra.mxu1 %vm506_vm0, %v5642_v26  ;;  %4341 = vmatmul.mubr.msk.bf16.vlgmr.msra.gmra.mxu0 %vm506_vm0, %v5642_v26 }
  0x56   :  { %892 = vmatpush1.bf16.msra.mxu1 %v4325_v27  ;;  %1750 = vmatpush1.bf16.msra.mxu0 %v5670_v28  ;;  %v5803_v27 = vld [vmem:[#allocation6 + $0x1b0] ss:$24 sps:$4 sm:$0xff]  }
  0x57   :  { %893 = vmatprep.subr.bf16.mxu1 %v4302_v29  ;;  %1751 = vmatprep.subr.bf16.mxu0 %v5672_v30  ;;  %v5806_v29 = vld [vmem:[#allocation6 + $0x24c] ss:$24 sps:$4 sm:$0xff]  }
  0x58   :  { %911 = vmatprep.mubr.bf16.mxu1 %v7890_v0  ;;  %1781 = vmatprep.mubr.bf16.mxu0 %v7892_v39  ;;  %8306 = vst [vmem:[#allocation26_spill] sm:$0xff] %v5806_v29 }
  0x5a   :  { %894 = vmatpush1.bf16.msra.mxu1 %v4301_v33  ;;  %1752 = vmatpush1.bf16.msra.mxu0 %v5680_v34  ;;  %v5815_v33 = vld [vmem:[#allocation6 + $0x180] ss:$24 sps:$4 sm:$0xff]  }
  0x5b   :  { %973 = vmatprep.subr.bf16.mxu1 %v4330_v35  ;;  %1753 = vmatprep.subr.bf16.mxu0 %v5682_v36  ;;  %8309 = vst [vmem:[#allocation29_spill] sm:$0xff] %v5815_v33  ;;  %v5818_v35 = vld [vmem:[#allocation6 + $0x21c] ss:$24 sps:$4 sm:$0xff]  }
  0x5c   :  { %8310 = vst [vmem:[#allocation30_spill] sm:$0xff] %v5818_v35 }
  0x5d   :  { %4340 = vmatmul.mubr.msk.bf16.vlgmr.msra.gmra.mxu1 %vm506_vm0, %v5642_v26 }
  0x5e   :  { %974 = vmatpush1.bf16.msra.mxu1 %v4329_v40  ;;  %993 = vmatprep.mubr.bf16.mxu1 %v7890_v0  ;;  %v5830_v40 = vld [vmem:[#allocation6 + $0x1e8] ss:$24 sps:$4 sm:$0xff]  }
  0x5f   :  { %1754 = vmatpush1.bf16.msra.mxu0 %v5688_v41  ;;  %975 = vmatprep.subr.bf16.mxu1 %v4306_v42  ;;  %8313 = vst [vmem:[#allocation33_spill] sm:$0xff] %v5830_v40  ;;  %v5833_v42 = vld [vmem:[#allocation6 + $0x1bc] ss:$24 sps:$4 sm:$0xff]  }
  0x60   :  { %1755 = vmatprep.subr.bf16.mxu0 %v5691_v43  ;;  %8314 = vst [vmem:[#allocation34_spill] sm:$0xff] %v5833_v42 }
  0x62   :  { %976 = vmatpush1.bf16.msra.mxu1 %v4305_v44  ;;  %v5837_v44 = vld [vmem:[#allocation6 + $0x1b8] ss:$24 sps:$4 sm:$0xff]  }
  0x63   :  { %1756 = vmatpush1.bf16.msra.mxu0 %v5697_v45  ;;  %1790 = vmatprep.subr.bf16.mxu1 %v4864_v46  ;;  %8315 = vst [vmem:[#allocation35_spill] sm:$0xff] %v5837_v44  ;;  %v5840_v46 = vld [vmem:[#allocation6 + $0x18c] ss:$24 sps:$4 sm:$0xff]  }
  0x64   :  { %1757 = vmatprep.subr.bf16.mxu0 %v5700_v47  ;;  %8316 = vst [vmem:[#allocation36_spill] sm:$0xff] %v5840_v46 }
  0x65   :  { %4342 = vmatmul.mubr.msk.bf16.vlgmr.msra.gmra.mxu1 %vm506_vm0, %v5642_v26  ;;  %v4884_v26 = vld [vmem:[#allocation6 + $0xc8] ss:$24 sps:$4 sm:$0xff]  }
  0x66   :  { %1791 = vmatpush1.bf16.msra.mxu1 %v4866_v48  ;;  %1822 = vmatprep.mubr.bf16.mxu1 %v7892_v39  ;;  %v5843_v48 = vld [vmem:[#allocation6 + $0x188] ss:$24 sps:$4 sm:$0xff]  }
  0x67   :  { %1758 = vmatpush1.bf16.msra.mxu0 %v5703_v49  ;;  %1792 = vmatprep.subr.bf16.mxu1 %v4870_v50  ;;  %8317 = vst [vmem:[#allocation37_spill] sm:$0xff] %v5843_v48  ;;  %v5849_v50 = vld [vmem:[#allocation6 + $0x164] ss:$24 sps:$4 sm:$0xff]  }
  0x68   :  { %1759 = vmatprep.subr.bf16.mxu0 %v5706_v51  ;;  %8318 = vst [vmem:[#allocation38_spill] sm:$0xff] %v5849_v50 }
  0x6a   :  { %1793 = vmatpush1.bf16.msra.mxu1 %v4872_v52  ;;  %v5852_v52 = vld [vmem:[#allocation6 + $0x160] ss:$24 sps:$4 sm:$0xff]  }
  0x6b   :  { %1760 = vmatpush1.bf16.msra.mxu0 %v5710_v53  ;;  %1794 = vmatprep.subr.bf16.mxu1 %v4876_v54  ;;  %8319 = vst [vmem:[#allocation39_spill] sm:$0xff] %v5852_v52  ;;  %v5855_v54 = vld [vmem:[#allocation6 + $0x134] ss:$24 sps:$4 sm:$0xff]  }
  0x6c   :  { %1761 = vmatprep.subr.bf16.mxu0 %v5712_v55  ;;  %8320 = vst [vmem:[#allocation40_spill] sm:$0xff] %v5855_v54 }
  0x6e   :  { %1795 = vmatpush1.bf16.msra.mxu1 %v4878_v56  ;;  %v5857_v56 = vld [vmem:[#allocation6 + $0x130] ss:$24 sps:$4 sm:$0xff]  }
  0x6f   :  { %1762 = vmatpush1.bf16.msra.mxu0 %v5717_v57  ;;  %1796 = vmatprep.subr.bf16.mxu1 %v4882_v58  ;;  %8321 = vst [vmem:[#allocation41_spill] sm:$0xff] %v5857_v56  ;;  %v5861_v58 = vld [vmem:[#allocation6 + $0x104] ss:$24 sps:$4 sm:$0xff]  }
  0x70   :  { %1763 = vmatprep.subr.bf16.mxu0 %v5719_v59  ;;  %8322 = vst [vmem:[#allocation42_spill] sm:$0xff] %v5861_v58 }
  0x72   :  { %1797 = vmatpush1.bf16.msra.mxu1 %v4884_v26  ;;  %v5863_v26 = vld [vmem:[#allocation6 + $0x100] ss:$24 sps:$4 sm:$0xff]  }
  0x73   :  { %1764 = vmatpush1.bf16.msra.mxu0 %v5723_v60  ;;  %1798 = vmatprep.subr.bf16.mxu1 %v4888_v61  ;;  %8323 = vst [vmem:[#allocation43_spill] sm:$0xff] %v5863_v26  ;;  %v5867_v61 = vld [vmem:[#allocation6 + $0xd4] ss:$24 sps:$4 sm:$0xff]  }
  0x74   :  { %1765 = vmatprep.subr.bf16.mxu0 %v5725_v62  ;;  %8324 = vst [vmem:[#allocation44_spill] sm:$0xff] %v5867_v61 }
  0x76   :  { %1799 = vmatpush1.bf16.msra.mxu1 %v5729_v63  ;;  %v6004_v63 = vld [vmem:[#allocation8 + $0x30] ss:$12 sps:$4 sm:$0xff]  }
  0x77   :  { %1766 = vmatpush2.bf16.msra.mxu0 %v5731_v1  ;;  %1800 = vmatprep.subr.bf16.mxu1 %v5733_v2  ;;  %8354 = vst [vmem:[#allocation74_spill] sm:$0xff] %v6004_v63 }
  0x78   :  { %1767 = vmatprep.subr.bf16.mxu0 %v5735_v3 }
  0x7a   :  { %1801 = vmatpush1.bf16.msra.mxu1 %v5744_v6 }
  0x7b   :  { %1768 = vmatpush2.bf16.msra.mxu0 %v5739_v4  ;;  %1802 = vmatprep.subr.bf16.mxu1 %v5748_v7 }
  0x7c   :  { %1769 = vmatprep.subr.bf16.mxu0 %v5741_v5 }
  0x7e   :  { %1803 = vmatpush1.bf16.msra.mxu1 %v5751_v8 }
  0x7f   :  { %1770 = vmatpush2.bf16.msra.mxu0 %v5753_v9  ;;  %1804 = vmatprep.subr.bf16.mxu1 %v5755_v10 }
  0x80   :  { %1771 = vmatprep.subr.bf16.mxu0 %v5757_v11 }
  0x82   :  { %1805 = vmatpush1.bf16.msra.mxu1 %v5765_v13  ;;  %v5959_v13 = vld [vmem:[#allocation6 + $0x284] ss:$24 sps:$4 sm:$0xff]  }
  0x83   :  { %1772 = vmatpush2.bf16.msra.mxu0 %v5763_v12  ;;  %1806 = vmatprep.subr.bf16.mxu1 %v5772_v15  ;;  %8345 = vst [vmem:[#allocation65_spill] sm:$0xff] %v5959_v13 }
  0x84   :  { %1773 = vmatprep.subr.bf16.mxu0 %v5767_v14 }
  0x86   :  { %1807 = vmatpush2.bf16.msra.mxu1 %v5775_v16 }
  0x87   :  { %1774 = vmatpush2.bf16.msra.mxu0 %v5777_v17  ;;  %1808 = vmatprep.subr.bf16.mxu1 %v5779_v18 }
  0x88   :  { %1775 = vmatprep.subr.bf16.mxu0 %v5781_v19 }
  0x8a   :  { %1809 = vmatpush2.bf16.msra.mxu1 %v5787_v20 }
  0x8b   :  { %1776 = vmatpush2.bf16.msra.mxu0 %v5789_v21  ;;  %1810 = vmatprep.subr.bf16.mxu1 %v5791_v22 }
  0x8c   :  { %1777 = vmatprep.subr.bf16.mxu0 %v5793_v24 }
  0x8e   :  { %1811 = vmatpush2.bf16.msra.mxu1 %v5800_v25  ;;  %v5947_v25 = vld [vmem:[#allocation6 + $0x2b0] ss:$24 sps:$4 sm:$0xff]  }
  0x8f   :  { %1778 = vmatpush2.bf16.msra.mxu0 %v5803_v27  ;;  %1812 = vmatprep.subr.bf16.mxu1 %v5806_v29  ;;  %8343 = vst [vmem:[#allocation63_spill] sm:$0xff] %v5947_v25 }
  0x90   :  { %1779 = vmatprep.subr.bf16.mxu0 %v5809_v31  ;;  %v7963_v31 = vmov 0.0  }
  0x92   :  { %1813 = vmatpush2.bf16.msra.mxu1 %v5812_v32 }
  0x93   :  { %1780 = vmatpush2.bf16.msra.mxu0 %v5815_v33  ;;  %1814 = vmatprep.subr.bf16.mxu1 %v5818_v35 }
  0x94   :  { %1831 = vmatprep.subr.bf16.mxu0 %v5849_v50 }
  0x96   :  { %1782 = vmatmul.mubr.bf16.vlgmr.msra.gmra.mxu0 %v7892_v39  ;;  %1815 = vmatpush2.bf16.msra.mxu1 %v5822_v37  ;;  %v5939_v37 = vld [vmem:[#allocation6 + $0x2b4] ss:$24 sps:$4 sm:$0xff]  }
  0x97   :  { %1816 = vmatprep.subr.bf16.mxu1 %v5826_v38  ;;  %1863 = vmatprep.mubr.bf16.mxu0 %v7892_v39  ;;  %8341 = vst [vmem:[#allocation61_spill] sm:$0xff] %v5939_v37 }
  0x98   :  { %1832 = vmatpush1.bf16.msra.mxu0 %v5852_v52  ;;  %v5895_v52 = vld [vmem:[#allocation8 + $0xa8] ss:$12 sps:$4 sm:$0xff]  }
  0x99   :  { %1833 = vmatprep.subr.bf16.mxu0 %v5855_v54  ;;  %v5875_v54 = vld [vmem:[#allocation6 + $0xa0] ss:$24 sps:$4 sm:$0xff]   ;;  %8334 = vst [vmem:[#allocation54_spill] sm:$0xff] %v5895_v52 }
  0x9a   :  { %1817 = vmatpush2.bf16.msra.mxu1 %v5830_v40  ;;  %8327 = vst [vmem:[#allocation47_spill] sm:$0xff] %v5875_v54  ;;  %v5937_v40 = vld [vmem:[#allocation8 + $0x7c] ss:$12 sps:$4 sm:$0xff]  }
  0x9b   :  { %1818 = vmatprep.subr.bf16.mxu1 %v5833_v42  ;;  %8340 = vst [vmem:[#allocation60_spill] sm:$0xff] %v5937_v40 }
  0x9c   :  { %1834 = vmatpush1.bf16.msra.mxu0 %v5857_v56  ;;  %v5879_v56 = vld [vmem:[#allocation6 + $0x74] ss:$24 sps:$4 sm:$0xff]  }
  0x9d   :  { %1835 = vmatprep.subr.bf16.mxu0 %v5861_v58  ;;  %8328 = vst [vmem:[#allocation48_spill] sm:$0xff] %v5879_v56  ;;  %v5881_v58 = vld [vmem:[#allocation6 + $0x70] ss:$24 sps:$4 sm:$0xff]  }
  0x9e   :  { %1819 = vmatpush2.bf16.msra.mxu1 %v5837_v44  ;;  %8329 = vst [vmem:[#allocation49_spill] sm:$0xff] %v5881_v58 }
  0x9f   :  { %1820 = vmatprep.subr.bf16.mxu1 %v5840_v46 }
  0xa0   :  { %1836 = vmatpush1.bf16.msra.mxu0 %v5863_v26  ;;  %v5885_v26 = vld [vmem:[#allocation6 + $0x44] ss:$24 sps:$4 sm:$0xff]  }
  0xa1   :  { %1837 = vmatprep.subr.bf16.mxu0 %v5867_v61  ;;  %8330 = vst [vmem:[#allocation50_spill] sm:$0xff] %v5885_v26  ;;  %v5887_v61 = vld [vmem:[#allocation6 + $0x40] ss:$24 sps:$4 sm:$0xff]  }
  0xa2   :  { %1821 = vmatpush2.bf16.msra.mxu1 %v5843_v48  ;;  %8331 = vst [vmem:[#allocation51_spill] sm:$0xff] %v5887_v61  ;;  %v5909_v48 = vld [vmem:[#allocation8 + $0x90] ss:$12 sps:$4 sm:$0xff]  }
  0xa3   :  { %8338 = vst [vmem:[#allocation58_spill] sm:$0xff] %v5909_v48 }
  0xa5   :  { %1823 = vmatmul.mubr.bf16.vlgmr.msra.gmra.mxu1 %v7892_v39  ;;  %v5873_v39 = vld [vmem:[#allocation6 + $0xa4] ss:$24 sps:$4 sm:$0xff]  }
  0xa6   :  { %2092 = vmatprep.mubr.bf16.mxu1 %v7890_v0  ;;  %v5869_v0 = vld [vmem:[#allocation6 + $0xd0] ss:$24 sps:$4 sm:$0xff]   ;;  %8326 = vst [vmem:[#allocation46_spill] sm:$0xff] %v5873_v39 }
  0xa7   :  { %8325 = vst [vmem:[#allocation45_spill] sm:$0xff] %v5869_v0  ;;  %1838 = vmatpush1.bf16.msra.mxu0 %v5869_v0  ;;  %v146_v0 = vlaneseq }
  0xa8   :  { %1839 = vmatprep.subr.bf16.mxu0 %v5873_v39  ;;  %v5891_v39 = vld [vmem:[#allocation8 + $0xac] ss:$12 sps:$4 sm:$0xff]  }
  0xa9   :  { %8332 = vst [vmem:[#allocation52_spill] sm:$0xff] %v5891_v39  ;;  %2060 = vmatprep.subr.bf16.mxu1 %v5891_v39 }
  0xaa   :  { %2061 = vmatpush1.bf16.msra.mxu1 %v5895_v52 }
  0xab   :  { %1840 = vmatpush1.bf16.msra.mxu0 %v5875_v54  ;;  %v5893_v54 = vld [vmem:[#allocation6 + $0x14] ss:$24 sps:$4 sm:$0xff]  }
  0xac   :  { %1841 = vmatprep.subr.bf16.mxu0 %v5879_v56  ;;  %8333 = vst [vmem:[#allocation53_spill] sm:$0xff] %v5893_v54  ;;  %v5898_v56 = vld [vmem:[#allocation6 + $0x10] ss:$24 sps:$4 sm:$0xff]  }
  0xad   :  { %8335 = vst [vmem:[#allocation55_spill] sm:$0xff] %v5898_v56 }
  0xaf   :  { %1842 = vmatpush1.bf16.msra.mxu0 %v5881_v58  ;;  %v5902_v58 = vshrl.u32 %v146_v0, 7  ;;  %v5923_v0 = vld [vmem:[%s7877_s2] sm:$0xff] }
  0xb0   :  { %1843 = vmatprep.subr.bf16.mxu0 %v5885_v26  ;;  %v5905_v26 = vld [vmem:[#allocation8 + $0x94] ss:$12 sps:$4 sm:$0xff]  }
  0xb1   :  { %8336 = vst [vmem:[#allocation56_spill] sm:$0xff] %v5905_v26  ;;  %v5912_v46 = vsub.s32 0, %v5902_v58  ;;  %v5915_v39 = vsub.s32 1, %v5902_v58  ;;  %2062 = vmatprep.subr.bf16.mxu1 %v5905_v26  ;;  %v5934_v42 = vsub.s32 2, %v5902_v58  ;;  %v5944_v29 = vsub.s32 3, %v5902_v58 }
  0xb2   :  { %2063 = vmatpush1.bf16.msra.mxu1 %v5909_v48  ;;  %v5549_v48 = vmov 1983009808   ;;  %v5957_v15 = vsub.s32 4, %v5902_v58  ;;  %v5982_v8 = vsub.s32 6, %v5902_v58  ;;  %v6001_v6 = vsub.s32 7, %v5902_v58 }
  0xb3   :  { %1844 = vmatpush1.bf16.msra.mxu0 %v5887_v61  ;;  %v5907_v61 = vld [vmem:[#allocation6 + $0x2e4] ss:$24 sps:$4 sm:$0xff]   ;;  %v149_v52 = vrot.slane %v5923_v0, %v5912_v46  ;;  %v153_v26 = vrot.slane %v5923_v0, %v5915_v39  ;;  %v1029_v35 = vunpack.c.l.s4 %v5549_v48  ;;  %2064 = vmatprep.subr.bf16.mxu1 %v5937_v40  ;;  %v157_v16 = vrot.slane %v5923_v0, %v5934_v42 }
  0xb4   :  { %1845 = vmatprep.subr.bf16.mxu0 %v5893_v54  ;;  %8337 = vst [vmem:[#allocation57_spill] sm:$0xff] %v5907_v61  ;;  %v5918_v54 = vld [vmem:[#allocation6 + $0x2e0] ss:$24 sps:$4 sm:$0xff]   ;;  %v5954_v48 = vld [vmem:[#allocation8 + $0x64] ss:$12 sps:$4 sm:$0xff]  }
  0xb5   :  { %8339 = vst [vmem:[#allocation59_spill] sm:$0xff] %v5918_v54  ;;  %8344 = vst [vmem:[#allocation64_spill] sm:$0xff] %v5954_v48 }
  0xb7   :  { %1846 = vmatpush1.bf16.msra.mxu0 %v5898_v56 }
  0xb8   :  { %1847 = vmatprep.subr.bf16.mxu0 %v5907_v61  ;;  %v5941_v61 = vld [vmem:[#allocation8 + $0x78] ss:$12 sps:$4 sm:$0xff]  }
  0xb9   :  { %8342 = vst [vmem:[#allocation62_spill] sm:$0xff] %v5941_v61  ;;  %2065 = vmatpush1.bf16.msra.mxu1 %v5941_v61 }
  0xba   :  { %2066 = vmatprep.subr.bf16.mxu1 %v5954_v48  ;;  %v5985_v48 = vld [vmem:[#allocation6 + $0x250] ss:$24 sps:$4 sm:$0xff]  }
  0xbb   :  { %1848 = vmatpush2.bf16.msra.mxu0 %v5918_v54  ;;  %8351 = vst [vmem:[#allocation71_spill] sm:$0xff] %v5985_v48 }
  0xbc   :  { %1849 = vmatprep.subr.bf16.mxu0 %v5939_v37  ;;  %v1030_v37 = vunpack.c.0.s8 %v1029_v35  ;;  %v5977_v35 = vld [vmem:[#allocation8 + $0x48] ss:$12 sps:$4 sm:$0xff]  }
  0xbd   :  { %8350 = vst [vmem:[#allocation70_spill] sm:$0xff] %v5977_v35 }
  0xbf   :  { %1850 = vmatpush2.bf16.msra.mxu0 %v5947_v25  ;;  %v5975_v25 = vld [vmem:[#allocation6 + $0x254] ss:$24 sps:$4 sm:$0xff]  }
  0xc0   :  { %1851 = vmatprep.subr.bf16.mxu0 %v5959_v13  ;;  %8349 = vst [vmem:[#allocation69_spill] sm:$0xff] %v5975_v25  ;;  %v5987_v13 = vld [vmem:[#allocation8 + $0x34] ss:$12 sps:$4 sm:$0xff]  }
  0xc1   :  { %8352 = vst [vmem:[#allocation72_spill] sm:$0xff] %v5987_v13 }
  0xf5   :  { %v544_v56 = vpop.f32.mrf.mxu1  ;;  %v5929_v44 = vpop.f32.mrf.mxu0 }
  0xf6   :  { %v545_v54 = vadd.f32 %v544_v56, %v149_v52  ;;  %v5964_v52 = vsub.s32 5, %v5902_v58  ;;  %v5969_v56 = vld [vmem:[#allocation6 + $0x280] ss:$24 sps:$4 sm:$0xff]  }
  0xf7   :  { %v546_v38 = vpop.f32.mrf.mxu1  ;;  %v628_v32 = vpop.f32.mrf.mxu0  ;;  %8347 = vst [vmem:[#allocation67_spill] sm:$0xff] %v5969_v56  ;;  %1852 = vmatpush2.bf16.msra.mxu0 %v5969_v56 }
  0xf8   :  { %v547_v20 = vadd.f32 %v546_v38, %v153_v26  ;;  %v161_v38 = vrot.slane %v5923_v0, %v5944_v29  ;;  %1853 = vmatprep.subr.bf16.mxu0 %v5975_v25 }
  0xf9   :  { %v548_v22 = vpop.f32.mrf.mxu1  ;;  %v630_v18 = vpop.f32.mrf.mxu0 }
  0xfa   :  { %v5961_v22 = vld [vmem:[#allocation8 + $0x60] ss:$12 sps:$4 sm:$0xff]   ;;  %v1026_v61 = vcombine.low %v545_v54, %v547_v20  ;;  %v5996_v20 = vsub.s32 %v1030_v37, %v5902_v58  ;;  %v169_v54 = vrot.slane %v5923_v0, %v5964_v52  ;;  %v173_v37 = vrot.slane %v5923_v0, %v5982_v8  ;;  %v6013_v58 = vld [vmem:[#allocation8 + $0x1c] ss:$12 sps:$4 sm:$0xff]  }
  0xfb   :  { %v549_v40 = vpop.f32.mrf.mxu1  ;;  %8346 = vst [vmem:[#allocation66_spill] sm:$0xff] %v5961_v22  ;;  %v631_v18 = vpop.f32.mrf.mxu0  ;;  %2067 = vmatpush1.bf16.msra.mxu1 %v5961_v22  ;;  %v165_v22 = vrot.slane %v5923_v0, %v5957_v15  ;;  %1854 = vmatpush2.bf16.msra.mxu0 %v5985_v48  ;;  %8356 = vst [vmem:[#allocation76_spill] sm:$0xff] %v6013_v58  ;;  %v177_v48 = vrot.slane %v5923_v0, %v6001_v6  ;;  %v6034_v0 = vld [vmem:[#allocation8 + $0x4] ss:$12 sps:$4 sm:$0xff]  }
  0xfc   :  { %v5973_v40 = vld [vmem:[#allocation8 + $0x4c] ss:$12 sps:$4 sm:$0xff]   ;;  %v1034_v25 = vrot.slane %v1026_v61, %v5996_v20  ;;  %8360 = vst [vmem:[#allocation80_spill] sm:$0xff] %v6034_v0 }
  0xfd   :  { %v585_v26 = vpop.f32.mrf.mxu1  ;;  %8348 = vst [vmem:[#allocation68_spill] sm:$0xff] %v5973_v40  ;;  %v5979_v10 = vpop.f32.mrf.mxu0  ;;  %2068 = vmatprep.subr.bf16.mxu1 %v5973_v40  ;;  %v627_v61 = vadd.f32 %v5929_v44, %v165_v22 }
  0xfe   :  { %v586_v18 = vadd.f32 %v585_v26, %v157_v16  ;;  %v5993_v16 = vld [vmem:[#allocation6 + $0x224] ss:$24 sps:$4 sm:$0xff]  }
  0xff   :  { %v587_v7 = vpop.f32.mrf.mxu1  ;;  %8353 = vst [vmem:[#allocation73_spill] sm:$0xff] %v5993_v16  ;;  %v710_v56 = vpop.f32.mrf.mxu0  ;;  %2069 = vmatpush1.bf16.msra.mxu1 %v5977_v35  ;;  %1855 = vmatprep.subr.bf16.mxu0 %v5993_v16 }
 0x100   :  { %v588_v26 = vadd.f32 %v587_v7, %v161_v38  ;;  %2070 = vmatprep.subr.bf16.mxu1 %v5987_v13  ;;  %v6011_v7 = vld [vmem:[#allocation6 + $0x220] ss:$24 sps:$4 sm:$0xff]   ;;  %v6016_v38 = vld [vmem:[#allocation6 + $0x1f4] ss:$24 sps:$4 sm:$0xff]  }
 0x101   :  { %v589_v2 = vpop.f32.mrf.mxu1  ;;  %v712_v50 = vpop.f32.mrf.mxu0  ;;  %8355 = vst [vmem:[#allocation75_spill] sm:$0xff] %v6011_v7  ;;  %8357 = vst [vmem:[#allocation77_spill] sm:$0xff] %v6016_v38  ;;  %v6025_v13 = vld [vmem:[%s7877_s2 + $0x8] sm:$0xff]  ;;  %1856 = vmatpush2.bf16.msra.mxu0 %v6011_v7  ;;  %v6044_v7 = vld [vmem:[#allocation8] ss:$12 sps:$4 sm:$0xff]  }
 0x102   :  { %v1027_v40 = vcombine.low %v586_v18, %v588_v26  ;;  %v629_v18 = vadd.f32 %v628_v32, %v169_v54  ;;  %v6032_v32 = vld [vmem:[#allocation6 + $0x1f0] ss:$24 sps:$4 sm:$0xff]   ;;  %1857 = vmatprep.subr.bf16.mxu0 %v6016_v38  ;;  %v189_v38 = vrot.slane %v6025_v13, %v5934_v42 }
 0x103   :  { %v590_v2 = vpop.f32.mrf.mxu1  ;;  %v713_v26 = vpop.f32.mrf.mxu0  ;;  %2071 = vmatpush1.bf16.msra.mxu1 %v6004_v63  ;;  %8359 = vst [vmem:[#allocation79_spill] sm:$0xff] %v6032_v32 }
 0x104   :  { %v1041_v50 = vrot.slane %v1027_v40, %v5996_v20  ;;  %v6028_v2 = vld [vmem:[#allocation8 + $0x18] ss:$12 sps:$4 sm:$0xff]   ;;  %2072 = vmatprep.subr.bf16.mxu1 %v6013_v58  ;;  %v1043_v54 = vcombine.low %v627_v61, %v629_v18  ;;  %v181_v26 = vrot.slane %v6025_v13, %v5912_v46  ;;  %v6055_v18 = vld [vmem:[#allocation6 + $0x194] ss:$24 sps:$4 sm:$0xff]  }
 0x105   :  { %v667_v35 = vpop.f32.mrf.mxu1  ;;  %8358 = vst [vmem:[#allocation78_spill] sm:$0xff] %v6028_v2  ;;  %v790_v44 = vpop.f32.mrf.mxu0  ;;  %v6037_v40 = vld [vmem:[#allocation6 + $0x1c4] ss:$24 sps:$4 sm:$0xff]   ;;  %1858 = vmatpush2.bf16.msra.mxu0 %v6032_v32 }
 0x106   :  { %v1042_v16 = vcombine.low %v1034_v25, %v1041_v50  ;;  %v668_v33 = vadd.f32 %v667_v35, %v173_v37  ;;  %8361 = vst [vmem:[#allocation81_spill] sm:$0xff] %v6037_v40  ;;  %v185_v25 = vrot.slane %v6025_v13, %v5915_v39  ;;  %1859 = vmatprep.subr.bf16.mxu0 %v6037_v40 }
 0x107   :  { %v669_v22 = vpop.f32.mrf.mxu1  ;;  %v792_v37 = vpop.f32.mrf.mxu0  ;;  %2073 = vmatpush1.bf16.msra.mxu1 %v6028_v2 }
 0x108   :  { %1134 = vst [vmem:[#allocation2] sm:$0xff] %v1042_v16  ;;  %v670_v35 = vadd.f32 %v669_v22, %v177_v48  ;;  %2074 = vmatprep.subr.bf16.mxu1 %v6034_v0  ;;  %v6050_v16 = vld [vmem:[#allocation6 + $0x1c0] ss:$24 sps:$4 sm:$0xff]   ;;  %v193_v48 = vrot.slane %v6025_v13, %v5944_v29  ;;  %v711_v22 = vadd.f32 %v710_v56, %v185_v25 }
 0x109   :  { %v671_v50 = vpop.f32.mrf.mxu1  ;;  %v794_v63 = vpop.f32.mrf.mxu0  ;;  %1860 = vmatpush2.bf16.msra.mxu0 %v6050_v16  ;;  %v201_v56 = vrot.slane %v6025_v13, %v5964_v52 }
 0x10a   :  { %v1044_v58 = vcombine.low %v668_v33, %v670_v35  ;;  %v1051_v33 = vrot.slane %v1043_v54, %v5996_v20  ;;  %v709_v63 = vadd.f32 %v5979_v10, %v181_v26  ;;  %1861 = vmatprep.subr.bf16.mxu0 %v6055_v18  ;;  %v197_v10 = vrot.slane %v6025_v13, %v5957_v15 }
 0x10b   :  { %v672_v61 = vpop.f32.mrf.mxu1  ;;  %v795_v50 = vpop.f32.mrf.mxu0  ;;  %2075 = vmatpush1.bf16.msra.mxu1 %v6044_v7 }
 0x10c   :  { %v1058_v35 = vrot.slane %v1044_v58, %v5996_v20  ;;  %4616 = vmatprep.subr.bf16.mxu1 %v7963_v31  ;;  %v1060_v54 = vcombine.low %v709_v63, %v711_v22  ;;  %v209_v63 = vrot.slane %v6025_v13, %v6001_v6  ;;  %v791_v22 = vadd.f32 %v790_v44, %v197_v10 }
 0x10d   :  { %v749_v32 = vpop.f32.mrf.mxu1  ;;  %v872_v2 = vpop.f32.mrf.mxu0  ;;  %v793_v31 = vadd.f32 %v792_v37, %v201_v56 }
 0x10e   :  { %v1059_v0 = vcombine.low %v1051_v33, %v1058_v35  ;;  %v750_v61 = vadd.f32 %v749_v32, %v189_v38  ;;  %v6068_v32 = vld [vmem:[#allocation6 + $0x190] ss:$24 sps:$4 sm:$0xff]   ;;  %v205_v35 = vrot.slane %v6025_v13, %v5982_v8  ;;  %v8363_v13 = vmov 0.0|0.0  }
 0x10f   :  { %v751_v40 = vpop.f32.mrf.mxu1  ;;  %v874_v26 = vpop.f32.mrf.mxu0  ;;  %8362 = vst [vmem:[#allocation82_spill] sm:$0xff] %v6068_v32  ;;  %1862 = vmatpush2.bf16.msra.mxu0 %v6068_v32  ;;  %v1077_v44 = vcombine.low %v791_v22, %v793_v31 }
 0x110   :  { %1135 = vst [vmem:[#allocation2 + $0x8] sm:$0xff] %v1059_v0  ;;  %v752_v58 = vadd.f32 %v751_v40, %v193_v48  ;;  %v1068_v0 = vrot.slane %v1060_v54, %v5996_v20  ;;  %2165 = vmatprep.subr.bf16.mxu0 %v5666_v23 }
 0x111   :  { %v753_v38 = vpop.f32.mrf.mxu1  ;;  %v876_v33 = vpop.f32.mrf.mxu0 }
 0x112   :  { %v1061_v25 = vcombine.low %v750_v61, %v752_v58  ;;  %v142_v61 = vld [vmem:[%s7877_s2 + $0x10] sm:$0xff]  ;;  %1864 = vmatmul.mubr.bf16.vlgmr.msra.gmra.mxu0 %v8363_v13 }
 0x113   :  { %v754_v50 = vpop.f32.mrf.mxu1  ;;  %v877_v48 = vpop.f32.mrf.mxu0  ;;  %2166 = vmatpush1.bf16.msra.mxu0 %v5670_v28  ;;  %v213_v37 = vrot.slane %v142_v61, %v5912_v46  ;;  %v217_v54 = vrot.slane %v142_v61, %v5915_v39  ;;  %v1085_v28 = vrot.slane %v1077_v44, %v5996_v20 }
 0x114   :  { %v1075_v40 = vrot.slane %v1061_v25, %v5996_v20  ;;  %2167 = vmatprep.subr.bf16.mxu0 %v5672_v30  ;;  %v225_v48 = vrot.slane %v142_v61, %v5944_v29  ;;  %v229_v29 = vrot.slane %v142_v61, %v5957_v15 }
 0x115   :  { %v831_v58 = vpop.f32.mrf.mxu1  ;;  %v954_v50 = vpop.f32.mrf.mxu0  ;;  %v873_v31 = vadd.f32 %v872_v2, %v213_v37  ;;  %v875_v22 = vadd.f32 %v874_v26, %v217_v54  ;;  %v237_v37 = vrot.slane %v142_v61, %v5982_v8  ;;  %v241_v54 = vrot.slane %v142_v61, %v6001_v6 }
 0x116   :  { %v1076_v38 = vcombine.low %v1068_v0, %v1075_v40  ;;  %v832_v33 = vadd.f32 %v831_v58, %v205_v35  ;;  %v221_v35 = vrot.slane %v142_v61, %v5934_v42 }
 0x117   :  { %v833_v32 = vpop.f32.mrf.mxu1  ;;  %v956_v10 = vpop.f32.mrf.mxu0  ;;  %2168 = vmatpush1.bf16.msra.mxu0 %v5680_v34  ;;  %v1094_v13 = vcombine.low %v873_v31, %v875_v22  ;;  %v233_v34 = vrot.slane %v142_v61, %v5964_v52 }
 0x118   :  { %1136 = vst [vmem:[#allocation2 + $0x10] sm:$0xff] %v1076_v38  ;;  %v834_v23 = vadd.f32 %v833_v32, %v209_v63  ;;  %2169 = vmatprep.subr.bf16.mxu0 %v5682_v36 }
 0x119   :  { %v835_v56 = vpop.f32.mrf.mxu1  ;;  %v958_v0 = vpop.f32.mrf.mxu0 }
 0x11a   :  { %v1078_v25 = vcombine.low %v832_v33, %v834_v23  ;;  %v955_v23 = vadd.f32 %v954_v50, %v229_v29  ;;  %v957_v56 = vadd.f32 %v956_v10, %v233_v34  ;;  %v6146_v34 = vld [vmem:[#allocation8 + $0x98] ss:$12 sps:$4 sm:$0xff]  }
 0x11b   :  { %v836_v40 = vpop.f32.mrf.mxu1  ;;  %v959_v32 = vpop.f32.mrf.mxu0  ;;  %2170 = vmatpush1.bf16.msra.mxu0 %v5688_v41  ;;  %v1102_v41 = vrot.slane %v1094_v13, %v5996_v20  ;;  %v6138_v13 = vld [vmem:[#allocation8 + $0xb0] ss:$12 sps:$4 sm:$0xff]  }
 0x11c   :  { %v1092_v58 = vrot.slane %v1078_v25, %v5996_v20  ;;  %2171 = vmatprep.subr.bf16.mxu0 %v5691_v43  ;;  %v1111_v8 = vcombine.low %v955_v23, %v957_v56  ;;  %v6176_v23 = vld [vmem:[#allocation6 + $0x15c] ss:$24 sps:$4 sm:$0xff]   ;;  %v6180_v56 = vld [vmem:[#allocation6 + $0x158] ss:$24 sps:$4 sm:$0xff]  }
 0x11d   :  { %v913_v30 = vpop.f32.mrf.mxu1 }
 0x11e   :  { %v1093_v63 = vcombine.low %v1085_v28, %v1092_v58  ;;  %v914_v38 = vadd.f32 %v913_v30, %v221_v35  ;;  %v1119_v50 = vrot.slane %v1111_v8, %v5996_v20  ;;  %v6198_v8 = vld [vmem:[#allocation6 + $0xc8] ss:$24 sps:$4 sm:$0xff]  }
 0x11f   :  { %v915_v33 = vpop.f32.mrf.mxu1  ;;  %2172 = vmatpush1.bf16.msra.mxu0 %v5697_v45 }
 0x120   :  { %1137 = vst [vmem:[#allocation2 + $0x18] sm:$0xff] %v1093_v63  ;;  %v916_v44 = vadd.f32 %v915_v33, %v225_v48  ;;  %2173 = vmatprep.subr.bf16.mxu0 %v5700_v47 }
 0x121   :  { %v917_v2 = vpop.f32.mrf.mxu1 }
 0x122   :  { %v1095_v26 = vcombine.low %v914_v38, %v916_v44  ;;  %v8367_v44 = vmov 0.0   ;;  %v6152_v2 = vld [vmem:[#allocation8 + $0x80] ss:$12 sps:$4 sm:$0xff]  }
 0x123   :  { %v918_v36 = vpop.f32.mrf.mxu1  ;;  %2174 = vmatpush1.bf16.msra.mxu0 %v5703_v49  ;;  %v8364_v49 = vld [vmem:[#allocation27_spill] sm:$0xff] }
 0x124   :  { %v1109_v15 = vrot.slane %v1095_v26, %v5996_v20  ;;  %2175 = vmatprep.subr.bf16.mxu0 %v5706_v51  ;;  %v8365_v51 = vld [vmem:[#allocation29_spill] sm:$0xff] }
 0x125   :  { %v995_v52 = vpop.f32.mrf.mxu1  ;;  %v6156_v26 = vld [vmem:[#allocation8 + $0x68] ss:$12 sps:$4 sm:$0xff]   ;;  %v6164_v36 = vld [vmem:[#allocation8 + $0x38] ss:$12 sps:$4 sm:$0xff]  }
 0x126   :  { %v1110_v25 = vcombine.low %v1102_v41, %v1109_v15  ;;  %v996_v43 = vadd.f32 %v995_v52, %v237_v37  ;;  %v6160_v37 = vld [vmem:[#allocation8 + $0x50] ss:$12 sps:$4 sm:$0xff]   ;;  %v6172_v41 = vld [vmem:[#allocation8 + $0x8] ss:$12 sps:$4 sm:$0xff]   ;;  %v6183_v15 = vld [vmem:[#allocation6 + $0x12c] ss:$24 sps:$4 sm:$0xff]  }
 0x127   :  { %v997_v0 = vpop.f32.mrf.mxu1  ;;  %2176 = vmatpush1.bf16.msra.mxu0 %v5710_v53  ;;  %v8366_v53 = vld [vmem:[#allocation38_spill] sm:$0xff] }
 0x128   :  { %1138 = vst [vmem:[#allocation2 + $0x20] sm:$0xff] %v1110_v25  ;;  %v998_v35 = vadd.f32 %v997_v0, %v241_v54  ;;  %2177 = vmatprep.subr.bf16.mxu0 %v5712_v55  ;;  %v1171_v55 = vld [vmem:[#allocation2] sm:$0x3f]  ;;  %v6168_v54 = vld [vmem:[#allocation8 + $0x20] ss:$12 sps:$4 sm:$0xff]  }
 0x129   :  { %v999_v45 = vpop.f32.mrf.mxu1  ;;  %v1891_v28 = vrot.slane %v1171_v55, 4  ;;  %v6186_v52 = vld [vmem:[#allocation6 + $0x128] ss:$24 sps:$4 sm:$0xff]   ;;  %v6189_v25 = vld [vmem:[#allocation6 + $0xfc] ss:$24 sps:$4 sm:$0xff]  }
 0x12a   :  { %v1112_v6 = vcombine.low %v996_v43, %v998_v35  ;;  %v6192_v43 = vld [vmem:[#allocation6 + $0xf8] ss:$24 sps:$4 sm:$0xff]   ;;  %v6195_v0 = vld [vmem:[#allocation6 + $0xcc] ss:$24 sps:$4 sm:$0xff]   ;;  %v6201_v35 = vld [vmem:[#allocation6 + $0x9c] ss:$24 sps:$4 sm:$0xff]  }
 0x12b   :  { %v1000_v61 = vpop.f32.mrf.mxu1  ;;  %2178 = vmatpush1.bf16.msra.mxu0 %v5717_v57  ;;  %v8368_v45 = vld [vmem:[#allocation13_spill] sm:$0xff] }
 0x12c   :  { %v1126_v47 = vrot.slane %v1112_v6, %v5996_v20  ;;  %2179 = vmatprep.subr.bf16.mxu0 %v5719_v59  ;;  %v8369_v6 = vld [vmem:[#allocation14_spill] sm:$0xff]  ;;  %v8370_v61 = vld [vmem:[#allocation15_spill] sm:$0xff] }
 0x12e   :  { %v1127_v10 = vcombine.low %v1119_v50, %v1126_v47  ;;  %v8371_v50 = vld [vmem:[#allocation16_spill] sm:$0xff]  ;;  %v8372_v47 = vld [vmem:[#allocation17_spill] sm:$0xff] }
 0x12f   :  { %2180 = vmatpush1.bf16.msra.mxu0 %v5723_v60 }
 0x130   :  { %1139 = vst [vmem:[#allocation2 + $0x28] sm:$0xff] %v1127_v10  ;;  %2181 = vmatprep.subr.bf16.mxu0 %v5725_v62  ;;  %v8373_v10 = vld [vmem:[#allocation18_spill] sm:$0xff] }
 0x133   :  { %2182 = vmatpush2.bf16.msra.mxu0 %v5731_v1 }
 0x134   :  { %2183 = vmatprep.subr.bf16.mxu0 %v5735_v3  ;;  %v1880_v3 = vrot.slane %v1171_v55, 2 }
 0x137   :  { %2184 = vmatpush2.bf16.msra.mxu0 %v5739_v4 }
 0x138   :  { %2185 = vmatprep.subr.bf16.mxu0 %v5741_v5 }
 0x13b   :  { %2186 = vmatpush2.bf16.msra.mxu0 %v5753_v9 }
 0x13c   :  { %2187 = vmatprep.subr.bf16.mxu0 %v5757_v11 }
 0x13f   :  { %2188 = vmatpush2.bf16.msra.mxu0 %v5763_v12 }
 0x140   :  { %2189 = vmatprep.subr.bf16.mxu0 %v5767_v14 }
 0x143   :  { %2190 = vmatpush2.bf16.msra.mxu0 %v5777_v17 }
 0x144   :  { %2191 = vmatprep.subr.bf16.mxu0 %v5781_v19 }
 0x147   :  { %2192 = vmatpush2.bf16.msra.mxu0 %v5789_v21 }
 0x148   :  { %2193 = vmatprep.subr.bf16.mxu0 %v5793_v24 }
 0x14b   :  { %2194 = vmatpush2.bf16.msra.mxu0 %v5803_v27  ;;  %v6133_v27 = vld [vmem:[%s7881_s6] ss:$0 sm:$0xff] }
 0x14c   :  { %2195 = vmatprep.subr.bf16.mxu0 %v8364_v49  ;;  %v8374_v49 = vld [vmem:[#allocation19_spill] sm:$0xff] }
 0x14f   :  { %2196 = vmatpush2.bf16.msra.mxu0 %v8365_v51  ;;  %v8375_v51 = vld [vmem:[#allocation20_spill] sm:$0xff] }
 0x150   :  { %2247 = vmatprep.subr.bf16.mxu0 %v8366_v53 }
 0x156   :  { %v1783_v57 = vpop.f32.mrf.mxu0 }
 0x157   :  { %v1872_v59 = vadd.f32 %v1783_v57, %v1171_v55  ;;  %v8376_v55 = vld [vmem:[#allocation21_spill] sm:$0xff]  ;;  %v8377_v57 = vld [vmem:[#allocation22_spill] sm:$0xff] }
 0x158   :  { %v1785_v60 = vpop.f32.mrf.mxu0 }
 0x159   :  { %v4441_v62 = vmul.f32 -1.442695, %v1872_v59  ;;  %v1882_v5 = vadd.f32 %v1880_v3, %v1785_v60  ;;  %v8378_v59 = vld [vmem:[#allocation23_spill] sm:$0xff]  ;;  %v8379_v60 = vld [vmem:[#allocation24_spill] sm:$0xff] }
 0x15a   :  { %v1787_v1 = vpop.f32.mrf.mxu0 }
 0x15b   :  { %5039 = vpow2.f32 %v4441_v62  ;;  %v4442_v9 = vmul.f32 -1.442695, %v1882_v5  ;;  %v8380_v62 = vld [vmem:[#allocation25_spill] sm:$0xff]  ;;  %v8381_v1 = vld [vmem:[#allocation26_spill] sm:$0xff] }
 0x15c   :  { %v1788_v4 = vpop.f32.mrf.mxu0  ;;  %v8383_v5 = vld [vmem:[#allocation30_spill] sm:$0xff] }
 0x15d   :  { %5041 = vpow2.f32 %v4442_v9  ;;  %v8382_v4 = vld [vmem:[#allocation28_spill] sm:$0xff] }
 0x165   :  { %v1824_v11 = vpop.f32.mrf.mxu1 }
 0x166   :  { %v1889_v40 = vadd.f32 %v6133_v27, %v1824_v11 }
 0x167   :  { %v6128_v12 = vpop.f32.mrf.mxu1 }
 0x168   :  { %v5040_v14 = vpop.eup %5039 }
 0x169   :  { %v1876_v17 = vadd.f32 1.0, %v5040_v14  ;;  %v1828_v19 = vpop.f32.mrf.mxu1  ;;  %v8384_v14 = vld [vmem:[#allocation31_spill] sm:$0xff] }
 0x16a   :  { %v5042_v24 = vpop.eup %5041 }
 0x16b   :  { %5043 = vrcp.f32 %v1876_v17  ;;  %v1829_v21 = vpop.f32.mrf.mxu1  ;;  %v1886_v20 = vadd.f32 1.0, %v5042_v24  ;;  %v8385_v17 = vld [vmem:[#allocation32_spill] sm:$0xff]  ;;  %v8387_v24 = vld [vmem:[#allocation34_spill] sm:$0xff] }
 0x16c   :  { %v8386_v21 = vld [vmem:[#allocation33_spill] sm:$0xff] }
 0x16d   :  { %5045 = vrcp.f32 %v1886_v20  ;;  %v8388_v20 = vld [vmem:[#allocation35_spill] sm:$0xff] }
 0x178   :  { %v5044_v48 = vpop.eup %5043 }
 0x179   :  { %v1890_v31 = vmul.f32 %v5044_v48, %v1889_v40  ;;  %v8389_v40 = vld [vmem:[#allocation36_spill] sm:$0xff]  ;;  %v8390_v48 = vld [vmem:[#allocation37_spill] sm:$0xff] }
 0x17a   :  { %v5046_v58 = vpop.eup %5045 }
 0x17b   :  { %v1893_v22 = vadd.f32 %v1891_v28, %v1890_v31  ;;  %v1895_v32 = vsub.f32 1.0, %v5046_v58  ;;  %v1897_v38 = vmul.f32 0.0, %v5046_v58  ;;  %v8391_v28 = vld [vmem:[#allocation52_spill] sm:$0xff]  ;;  %v1140_v31 = vld [vmem:[%s7880_s5] sm:$0x7] }
 0x17d   :  { %5047 = vtanh.f32 %v1893_v22  ;;  %v6232_v22 = vrot.slane %v1140_v31, %v5912_v46 }
 0x18a   :  { %v5048_v30 = vpop.eup %5047 }
 0x18b   :  { %v1896_v63 = vmul.f32 %v5048_v30, %v1895_v32  ;;  %v6235_v32 = vrot.slane %v1140_v31, %v5915_v39  ;;  %v6243_v39 = vld [vmem:[%s7882_s7] ss:$0 sm:$0xff] }
 0x18d   :  { %v6136_v33 = vadd.f32 %v1897_v38, %v1896_v63 }
 0x18f   :  { %v6142_v29 = vpack.c.bf16 %v6136_v33, %v6136_v33 }
 0x191   :  { %2093 = vmatmul.mubr.bf16.vlgmr.msra.gmra.mxu1 %v6142_v29 }
 0x192   :  { %4617 = vmatpush3.bf16.msra.mxu1 %v6138_v13  ;;  %4632 = vmatprep.mubr.msk.bf16.mxu1 %vm5551_vm1, %v8367_v44 }
 0x193   :  { %4618 = vmatprep.subr.bf16.mxu1 %v8367_v44 }
 0x196   :  { %4619 = vmatpush3.bf16.msra.mxu1 %v6146_v34 }
 0x197   :  { %4620 = vmatprep.subr.bf16.mxu1 %v8367_v44 }
 0x19a   :  { %4621 = vmatpush3.bf16.msra.mxu1 %v6152_v2 }
 0x19b   :  { %4622 = vmatprep.subr.bf16.mxu1 %v8367_v44 }
 0x19e   :  { %4623 = vmatpush3.bf16.msra.mxu1 %v6156_v26 }
 0x19f   :  { %4624 = vmatprep.subr.bf16.mxu1 %v8367_v44 }
 0x1a2   :  { %4625 = vmatpush3.bf16.msra.mxu1 %v6160_v37 }
 0x1a3   :  { %4626 = vmatprep.subr.bf16.mxu1 %v8367_v44 }
 0x1a6   :  { %4627 = vmatpush3.bf16.msra.mxu1 %v6164_v36 }
 0x1a7   :  { %4628 = vmatprep.subr.bf16.mxu1 %v8367_v44 }
 0x1aa   :  { %4629 = vmatpush3.bf16.msra.mxu1 %v6168_v54 }
 0x1ab   :  { %4630 = vmatprep.subr.bf16.mxu1 %v8367_v44 }
 0x1ae   :  { %4631 = vmatpush3.bf16.msra.mxu1 %v6172_v41 }
 0x1af   :  { %2206 = vmatprep.subr.bf16.mxu1 %v6176_v23 }
 0x1b1   :  { %4633 = vmatmul.mubr.bf16.vlgmr.msra.gmra.mxu1 %v6142_v29 }
 0x1b2   :  { %2207 = vmatpush1.bf16.msra.mxu1 %v6180_v56 }
 0x1b3   :  { %2208 = vmatprep.subr.bf16.mxu1 %v6183_v15 }
 0x1b6   :  { %2209 = vmatpush1.bf16.msra.mxu1 %v6186_v52 }
 0x1b7   :  { %2210 = vmatprep.subr.bf16.mxu1 %v6189_v25 }
 0x1ba   :  { %2211 = vmatpush1.bf16.msra.mxu1 %v6192_v43 }
 0x1bb   :  { %2212 = vmatprep.subr.bf16.mxu1 %v6195_v0 }
 0x1be   :  { %2213 = vmatpush1.bf16.msra.mxu1 %v6198_v8 }
 0x1bf   :  { %2214 = vmatprep.subr.bf16.mxu1 %v6201_v35 }
 0x1c2   :  { %2215 = vmatpush1.bf16.msra.mxu1 %v8368_v45 }
 0x1c3   :  { %2216 = vmatprep.subr.bf16.mxu1 %v8369_v6 }
 0x1c6   :  { %2217 = vmatpush1.bf16.msra.mxu1 %v8370_v61 }
 0x1c7   :  { %2218 = vmatprep.subr.bf16.mxu1 %v8371_v50 }
 0x1ca   :  { %2219 = vmatpush1.bf16.msra.mxu1 %v8372_v47 }
 0x1cb   :  { %2220 = vmatprep.subr.bf16.mxu1 %v8373_v10 }
 0x1ce   :  { %2221 = vmatpush1.bf16.msra.mxu1 %v8374_v49 }
 0x1cf   :  { %2222 = vmatprep.subr.bf16.mxu1 %v8375_v51 }
 0x1d2   :  { %2223 = vmatpush2.bf16.msra.mxu1 %v8376_v55  ;;  %v1865_v3 = vpop.f32.mrf.mxu0 }
 0x1d3   :  { %2224 = vmatprep.subr.bf16.mxu1 %v8377_v57 }
 0x1d4   :  { %v1867_v9 = vpop.f32.mrf.mxu0 }
 0x1d6   :  { %2225 = vmatpush2.bf16.msra.mxu1 %v8378_v59  ;;  %v1869_v11 = vpop.f32.mrf.mxu0 }
 0x1d7   :  { %2226 = vmatprep.subr.bf16.mxu1 %v8379_v60  ;;  %v2155_v60 = vadd.f32 %v6243_v39, %v1867_v9  ;;  %v8392_v9 = vld [vmem:[#allocation39_spill] sm:$0xff] }
 0x1d8   :  { %v1870_v19 = vpop.f32.mrf.mxu0 }
 0x1da   :  { %2227 = vmatpush2.bf16.msra.mxu1 %v8380_v62 }
 0x1db   :  { %2228 = vmatprep.subr.bf16.mxu1 %v8381_v1 }
 0x1de   :  { %2229 = vmatpush2.bf16.msra.mxu1 %v8382_v4 }
 0x1df   :  { %2230 = vmatprep.subr.bf16.mxu1 %v8383_v5 }
 0x1e2   :  { %2231 = vmatpush2.bf16.msra.mxu1 %v8384_v14 }
 0x1e3   :  { %2232 = vmatprep.subr.bf16.mxu1 %v8385_v17 }
 0x1e6   :  { %2233 = vmatpush2.bf16.msra.mxu1 %v8386_v21 }
 0x1e7   :  { %2234 = vmatprep.subr.bf16.mxu1 %v8387_v24 }
 0x1ea   :  { %2235 = vmatpush2.bf16.msra.mxu1 %v8388_v20 }
 0x1eb   :  { %2236 = vmatprep.subr.bf16.mxu1 %v8389_v40  ;;  %v8393_v40 = vld [vmem:[#allocation40_spill] sm:$0xff] }
 0x1ee   :  { %2237 = vmatpush2.bf16.msra.mxu1 %v8390_v48  ;;  %v8394_v48 = vld [vmem:[#allocation54_spill] sm:$0xff] }
 0x1ef   :  { %2316 = vmatprep.subr.bf16.mxu1 %v8391_v28  ;;  %v8395_v28 = vld [vmem:[#allocation56_spill] sm:$0xff] }
 0x251   :  { %v2094_v58 = vpop.f32.mrf.mxu1 }
 0x252   :  { %v2095_v30 = vadd.f32 %v2094_v58, %v6232_v22  ;;  %v8397_v58 = vld [vmem:[#allocation41_spill] sm:$0xff] }
 0x253   :  { %v2096_v63 = vpop.f32.mrf.mxu1 }
 0x254   :  { %v2141_v38 = vadd.f32 %v2095_v30, %v6128_v12  ;;  %v2097_v61 = vadd.f32 %v2096_v63, %v6235_v32  ;;  %v6246_v12 = vrot.slane %v1140_v31, %v5934_v42  ;;  %v8396_v31 = vmov 0   ;;  %v8398_v30 = vld [vmem:[#allocation42_spill] sm:$0xff] }
 0x255   :  { %v2098_v45 = vpop.f32.mrf.mxu1  ;;  %v8399_v63 = vld [vmem:[#allocation58_spill] sm:$0xff] }
 0x256   :  { %v4467_v6 = vmul.f32 -1.442695, %v2141_v38  ;;  %v2148_v47 = vadd.f32 %v2097_v61, %v1865_v3  ;;  %v8400_v38 = vld [vmem:[#allocation60_spill] sm:$0xff]  ;;  %v8401_v45 = vld [vmem:[#allocation43_spill] sm:$0xff]  ;;  %v8403_v61 = vld [vmem:[#allocation62_spill] sm:$0xff] }
 0x257   :  { %v2099_v50 = vpop.f32.mrf.mxu1 }
 0x258   :  { %5049 = vpow2.f32 %v4467_v6  ;;  %v4468_v10 = vmul.f32 -1.442695, %v2148_v47  ;;  %v8402_v6 = vld [vmem:[#allocation44_spill] sm:$0xff]  ;;  %v8405_v47 = vld [vmem:[#allocation45_spill] sm:$0xff] }
 0x259   :  { %v8404_v50 = vld [vmem:[#allocation64_spill] sm:$0xff] }
 0x25a   :  { %5051 = vpow2.f32 %v4468_v10  ;;  %v8406_v10 = vld [vmem:[#allocation46_spill] sm:$0xff] }
 0x265   :  { %v5050_v46 = vpop.eup %5049 }
 0x266   :  { %v2145_v49 = vadd.f32 1.0, %v5050_v46  ;;  %v8407_v46 = vld [vmem:[#allocation66_spill] sm:$0xff] }
 0x267   :  { %v5052_v51 = vpop.eup %5051 }
 0x268   :  { %5053 = vrcp.f32 %v2145_v49  ;;  %v2152_v57 = vadd.f32 1.0, %v5052_v51  ;;  %v8408_v49 = vld [vmem:[#allocation68_spill] sm:$0xff]  ;;  %v8409_v51 = vld [vmem:[#allocation47_spill] sm:$0xff] }
 0x26a   :  { %5055 = vrcp.f32 %v2152_v57  ;;  %v8411_v57 = vld [vmem:[#allocation70_spill] sm:$0xff] }
 0x271   :  { %v2135_v55 = vpop.f32.mrf.mxu1 }
 0x272   :  { %v2136_v4 = vadd.f32 %v2135_v55, %v6246_v12  ;;  %v8410_v55 = vld [vmem:[#allocation48_spill] sm:$0xff] }
 0x273   :  { %v4634_v59 = vpop.f32.mrf.mxu1 }
 0x274   :  { %v8412_v59 = vld [vmem:[#allocation72_spill] sm:$0xff] }
 0x275   :  { %v5054_v62 = vpop.eup %5053  ;;  %v2138_v1 = vpop.f32.mrf.mxu1 }
 0x276   :  { %v2156_v3 = vmul.f32 %v5054_v62, %v2155_v60  ;;  %v8413_v60 = vld [vmem:[#allocation49_spill] sm:$0xff]  ;;  %v8414_v62 = vld [vmem:[#allocation50_spill] sm:$0xff] }
 0x277   :  { %v4635_v5 = vpop.f32.mrf.mxu1  ;;  %v5056_v14 = vpop.eup %5055  ;;  %v8415_v1 = vld [vmem:[#allocation74_spill] sm:$0xff] }
 0x278   :  { %v2157_v11 = vadd.f32 %v2156_v3, %v2136_v4  ;;  %v2159_v17 = vsub.f32 1.0, %v5056_v14  ;;  %v2161_v24 = vmul.f32 0.0, %v5056_v14  ;;  %v8416_v3 = vld [vmem:[#allocation76_spill] sm:$0xff]  ;;  %v8417_v4 = vld [vmem:[#allocation51_spill] sm:$0xff]  ;;  %v8418_v5 = vld [vmem:[#allocation53_spill] sm:$0xff] }
 0x279   :  { %v8420_v14 = vld [vmem:[#allocation80_spill] sm:$0xff] }
 0x27a   :  { %5057 = vtanh.f32 %v2157_v11  ;;  %v8419_v11 = vld [vmem:[#allocation78_spill] sm:$0xff] }
 0x287   :  { %v5058_v19 = vpop.eup %5057 }
 0x288   :  { %v2160_v21 = vmul.f32 %v5058_v19, %v2159_v17  ;;  %v8421_v17 = vld [vmem:[#allocation55_spill] sm:$0xff]  ;;  %v8422_v19 = vld [vmem:[#allocation57_spill] sm:$0xff] }
 0x28a   :  { %v6250_v42 = vadd.f32 %v2161_v24, %v2160_v21  ;;  %v8423_v21 = vld [vmem:[#allocation59_spill] sm:$0xff]  ;;  %v8424_v24 = vld [vmem:[#allocation61_spill] sm:$0xff] }
 0x28c   :  { %v2164_v20 = vpack.c.bf16 %v6250_v42, %v6250_v42 }
 0x28e   :  { %2197 = vmatprep.mubr.bf16.mxu0 %v2164_v20  ;;  %2238 = vmatprep.mubr.bf16.mxu1 %v2164_v20 }
 0x28f   :  { %2198 = vmatmul.mubr.bf16.vlgmr.msra.gmra.mxu0 %v6142_v29  ;;  %2239 = vmatmul.mubr.bf16.vlgmr.msra.gmra.mxu1 %v6142_v29 }
 0x290   :  { %2248 = vmatpush1.bf16.msra.mxu0 %v8392_v9  ;;  %2279 = vmatprep.mubr.bf16.mxu0 %v2164_v20  ;;  %v8425_v20 = vld [vmem:[#allocation63_spill] sm:$0xff]  ;;  %v8426_v9 = vld [vmem:[#allocation65_spill] sm:$0xff] }
 0x291   :  { %2249 = vmatprep.subr.bf16.mxu0 %v8393_v40  ;;  %2317 = vmatpush1.bf16.msra.mxu1 %v8394_v48  ;;  %v8427_v40 = vld [vmem:[#allocation67_spill] sm:$0xff]  ;;  %v8428_v48 = vld [vmem:[#allocation69_spill] sm:$0xff] }
 0x292   :  { %2318 = vmatprep.subr.bf16.mxu1 %v8395_v28  ;;  %2348 = vmatprep.mubr.bf16.mxu1 %v8396_v31  ;;  %v8429_v28 = vld [vmem:[#allocation71_spill] sm:$0xff] }
 0x294   :  { %2250 = vmatpush1.bf16.msra.mxu0 %v8397_v58  ;;  %v8430_v58 = vld [vmem:[#allocation73_spill] sm:$0xff] }
 0x295   :  { %2251 = vmatprep.subr.bf16.mxu0 %v8398_v30  ;;  %2319 = vmatpush1.bf16.msra.mxu1 %v8399_v63  ;;  %v8431_v30 = vld [vmem:[#allocation75_spill] sm:$0xff] }
 0x296   :  { %2320 = vmatprep.subr.bf16.mxu1 %v8400_v38  ;;  %v8433_v63 = vld [vmem:[#allocation79_spill] sm:$0xff]  ;;  %v8434_v38 = vld [vmem:[#allocation81_spill] sm:$0xff] }
 0x298   :  { %2252 = vmatpush1.bf16.msra.mxu0 %v8401_v45  ;;  %v8435_v45 = vld [vmem:[#allocation82_spill] sm:$0xff] }
 0x299   :  { %2253 = vmatprep.subr.bf16.mxu0 %v8402_v6  ;;  %2321 = vmatpush1.bf16.msra.mxu1 %v8403_v61  ;;  %v6304_v6 = vld [vmem:[#allocation6 + $0x154] ss:$24 sps:$4 sm:$0xff]   ;;  %v6308_v61 = vld [vmem:[#allocation6 + $0x150] ss:$24 sps:$4 sm:$0xff]  }
 0x29a   :  { %2322 = vmatprep.subr.bf16.mxu1 %v8404_v50  ;;  %8436 = vst [vmem:[#allocation27_spill] sm:$0xff] %v6304_v6  ;;  %8437 = vst [vmem:[#allocation29_spill] sm:$0xff] %v6308_v61  ;;  %v6311_v50 = vld [vmem:[#allocation6 + $0x124] ss:$24 sps:$4 sm:$0xff]  }
 0x29b   :  { %8438 = vst [vmem:[#allocation38_spill] sm:$0xff] %v6311_v50 }
 0x29c   :  { %2254 = vmatpush1.bf16.msra.mxu0 %v8405_v47  ;;  %v6314_v47 = vld [vmem:[#allocation6 + $0x120] ss:$24 sps:$4 sm:$0xff]  }
 0x29d   :  { %2255 = vmatprep.subr.bf16.mxu0 %v8406_v10  ;;  %2323 = vmatpush1.bf16.msra.mxu1 %v8407_v46  ;;  %8439 = vst [vmem:[#allocation13_spill] sm:$0xff] %v6314_v47  ;;  %v6326_v10 = vld [vmem:[#allocation6 + $0xc0] ss:$24 sps:$4 sm:$0xff]   ;;  %v6329_v46 = vld [vmem:[#allocation6 + $0x94] ss:$24 sps:$4 sm:$0xff]  }
 0x29e   :  { %2324 = vmatprep.subr.bf16.mxu1 %v8408_v49  ;;  %8443 = vst [vmem:[#allocation17_spill] sm:$0xff] %v6326_v10  ;;  %8444 = vst [vmem:[#allocation18_spill] sm:$0xff] %v6329_v46  ;;  %v6332_v49 = vld [vmem:[#allocation6 + $0x90] ss:$24 sps:$4 sm:$0xff]  }
 0x29f   :  { %8445 = vst [vmem:[#allocation19_spill] sm:$0xff] %v6332_v49 }
 0x2a0   :  { %2256 = vmatpush1.bf16.msra.mxu0 %v8409_v51  ;;  %v6335_v51 = vld [vmem:[#allocation6 + $0x64] ss:$24 sps:$4 sm:$0xff]  }
 0x2a1   :  { %2257 = vmatprep.subr.bf16.mxu0 %v8410_v55  ;;  %2325 = vmatpush1.bf16.msra.mxu1 %v8411_v57  ;;  %8446 = vst [vmem:[#allocation20_spill] sm:$0xff] %v6335_v51  ;;  %v6338_v55 = vld [vmem:[#allocation6 + $0x60] ss:$24 sps:$4 sm:$0xff]   ;;  %v6341_v57 = vld [vmem:[#allocation6 + $0x34] ss:$24 sps:$4 sm:$0xff]  }
 0x2a2   :  { %2326 = vmatprep.subr.bf16.mxu1 %v8412_v59  ;;  %8447 = vst [vmem:[#allocation21_spill] sm:$0xff] %v6338_v55  ;;  %8448 = vst [vmem:[#allocation22_spill] sm:$0xff] %v6341_v57  ;;  %v6344_v59 = vld [vmem:[#allocation6 + $0x30] ss:$24 sps:$4 sm:$0xff]  }
 0x2a3   :  { %8449 = vst [vmem:[#allocation23_spill] sm:$0xff] %v6344_v59 }
 0x2a4   :  { %2258 = vmatpush1.bf16.msra.mxu0 %v8413_v60  ;;  %v6347_v60 = vld [vmem:[#allocation6 + $0x4] ss:$24 sps:$4 sm:$0xff]  }
 0x2a5   :  { %2259 = vmatprep.subr.bf16.mxu0 %v8414_v62  ;;  %2327 = vmatpush1.bf16.msra.mxu1 %v8415_v1  ;;  %8450 = vst [vmem:[#allocation24_spill] sm:$0xff] %v6347_v60  ;;  %v6350_v62 = vld [vmem:[#allocation6] ss:$24 sps:$4 sm:$0xff]   ;;  %v6353_v1 = vld [vmem:[#allocation6 + $0x2d4] ss:$24 sps:$4 sm:$0xff]  }
 0x2a6   :  { %2328 = vmatprep.subr.bf16.mxu1 %v8416_v3  ;;  %8451 = vst [vmem:[#allocation25_spill] sm:$0xff] %v6350_v62  ;;  %8452 = vst [vmem:[#allocation26_spill] sm:$0xff] %v6353_v1  ;;  %v6356_v3 = vld [vmem:[#allocation6 + $0x2d0] ss:$24 sps:$4 sm:$0xff]  }
 0x2a7   :  { %8453 = vst [vmem:[#allocation28_spill] sm:$0xff] %v6356_v3 }
 0x2a8   :  { %2260 = vmatpush1.bf16.msra.mxu0 %v8417_v4  ;;  %v6359_v4 = vld [vmem:[#allocation6 + $0x2a4] ss:$24 sps:$4 sm:$0xff]  }
 0x2a9   :  { %2261 = vmatprep.subr.bf16.mxu0 %v8418_v5  ;;  %2329 = vmatpush1.bf16.msra.mxu1 %v8419_v11  ;;  %8454 = vst [vmem:[#allocation30_spill] sm:$0xff] %v6359_v4  ;;  %v6362_v5 = vld [vmem:[#allocation6 + $0x2a0] ss:$24 sps:$4 sm:$0xff]   ;;  %v6365_v11 = vld [vmem:[#allocation6 + $0x274] ss:$24 sps:$4 sm:$0xff]  }
 0x2aa   :  { %2330 = vmatprep.subr.bf16.mxu1 %v8420_v14  ;;  %8455 = vst [vmem:[#allocation31_spill] sm:$0xff] %v6362_v5  ;;  %8456 = vst [vmem:[#allocation32_spill] sm:$0xff] %v6365_v11  ;;  %v6368_v14 = vld [vmem:[#allocation6 + $0x270] ss:$24 sps:$4 sm:$0xff]  }
 0x2ab   :  { %8457 = vst [vmem:[#allocation33_spill] sm:$0xff] %v6368_v14 }
 0x2ac   :  { %2262 = vmatpush1.bf16.msra.mxu0 %v8421_v17  ;;  %v6371_v17 = vld [vmem:[#allocation6 + $0x244] ss:$24 sps:$4 sm:$0xff]  }
 0x2ad   :  { %2263 = vmatprep.subr.bf16.mxu0 %v8422_v19  ;;  %2331 = vmatpush1.bf16.msra.mxu1 %v6044_v7  ;;  %v8432_v7 = vld [vmem:[#allocation77_spill] sm:$0xff]  ;;  %8458 = vst [vmem:[#allocation34_spill] sm:$0xff] %v6371_v17 }
 0x2ae   :  { %4636 = vmatprep.subr.bf16.mxu1 %v8367_v44  ;;  %v6374_v19 = vld [vmem:[#allocation6 + $0x240] ss:$24 sps:$4 sm:$0xff]  }
 0x2af   :  { %8459 = vst [vmem:[#allocation35_spill] sm:$0xff] %v6374_v19 }
 0x2b0   :  { %2264 = vmatpush2.bf16.msra.mxu0 %v8423_v21  ;;  %v6377_v21 = vld [vmem:[#allocation6 + $0x214] ss:$24 sps:$4 sm:$0xff]  }
 0x2b1   :  { %2265 = vmatprep.subr.bf16.mxu0 %v8424_v24  ;;  %8460 = vst [vmem:[#allocation36_spill] sm:$0xff] %v6377_v21  ;;  %v6380_v24 = vld [vmem:[#allocation6 + $0x210] ss:$24 sps:$4 sm:$0xff]  }
 0x2b2   :  { %8461 = vst [vmem:[#allocation37_spill] sm:$0xff] %v6380_v24 }
 0x2b4   :  { %2266 = vmatpush2.bf16.msra.mxu0 %v8425_v20  ;;  %v6383_v20 = vld [vmem:[#allocation6 + $0x1e4] ss:$24 sps:$4 sm:$0xff]  }
 0x2b5   :  { %2267 = vmatprep.subr.bf16.mxu0 %v8426_v9  ;;  %8462 = vst [vmem:[#allocation52_spill] sm:$0xff] %v6383_v20  ;;  %v6386_v9 = vld [vmem:[#allocation6 + $0x1e0] ss:$24 sps:$4 sm:$0xff]  }
 0x2b6   :  { %8463 = vst [vmem:[#allocation39_spill] sm:$0xff] %v6386_v9 }
 0x2b8   :  { %2268 = vmatpush2.bf16.msra.mxu0 %v8427_v40  ;;  %v6389_v40 = vld [vmem:[#allocation6 + $0x1b4] ss:$24 sps:$4 sm:$0xff]  }
 0x2b9   :  { %2269 = vmatprep.subr.bf16.mxu0 %v8428_v48  ;;  %8464 = vst [vmem:[#allocation40_spill] sm:$0xff] %v6389_v40  ;;  %v6392_v48 = vld [vmem:[#allocation6 + $0x1b0] ss:$24 sps:$4 sm:$0xff]  }
 0x2ba   :  { %8465 = vst [vmem:[#allocation54_spill] sm:$0xff] %v6392_v48 }
 0x2bc   :  { %2270 = vmatpush2.bf16.msra.mxu0 %v8429_v28  ;;  %v6395_v28 = vld [vmem:[#allocation6 + $0x184] ss:$24 sps:$4 sm:$0xff]  }
 0x2bd   :  { %2271 = vmatprep.subr.bf16.mxu0 %v8430_v58  ;;  %8466 = vst [vmem:[#allocation56_spill] sm:$0xff] %v6395_v28  ;;  %v6398_v58 = vld [vmem:[#allocation6 + $0x180] ss:$24 sps:$4 sm:$0xff]  }
 0x2be   :  { %8467 = vst [vmem:[#allocation41_spill] sm:$0xff] %v6398_v58 }
 0x2c0   :  { %2272 = vmatpush2.bf16.msra.mxu0 %v8431_v30  ;;  %v2163_v30 = vld [vmem:[#allocation2 + $0x6] sm:$0x3f] }
 0x2c1   :  { %2273 = vmatprep.subr.bf16.mxu0 %v8432_v7 }
 0x2c4   :  { %2274 = vmatpush2.bf16.msra.mxu0 %v8433_v63 }
 0x2c5   :  { %2275 = vmatprep.subr.bf16.mxu0 %v8434_v38 }
 0x2c8   :  { %2276 = vmatpush2.bf16.msra.mxu0 %v6050_v16  ;;  %v6317_v16 = vld [vmem:[#allocation6 + $0xf4] ss:$24 sps:$4 sm:$0xff]  }
 0x2c9   :  { %2277 = vmatprep.subr.bf16.mxu0 %v6055_v18  ;;  %8440 = vst [vmem:[#allocation14_spill] sm:$0xff] %v6317_v16  ;;  %v6320_v18 = vld [vmem:[#allocation6 + $0xf0] ss:$24 sps:$4 sm:$0xff]  }
 0x2ca   :  { %8441 = vst [vmem:[#allocation15_spill] sm:$0xff] %v6320_v18 }
 0x2cc   :  { %2278 = vmatpush2.bf16.msra.mxu0 %v8435_v45 }
 0x2cd   :  { %2421 = vmatprep.subr.bf16.mxu0 %v6304_v6 }
 0x2cf   :  { %2280 = vmatmul.mubr.bf16.vlgmr.msra.gmra.mxu0 %v6142_v29  ;;  %v6323_v29 = vld [vmem:[#allocation6 + $0xc4] ss:$24 sps:$4 sm:$0xff]  }
 0x2d0   :  { %2422 = vmatpush1.bf16.msra.mxu0 %v6308_v61  ;;  %8442 = vst [vmem:[#allocation16_spill] sm:$0xff] %v6323_v29 }
 0x2d1   :  { %2423 = vmatprep.subr.bf16.mxu0 %v6311_v50 }
 0x2d4   :  { %2424 = vmatpush1.bf16.msra.mxu0 %v6314_v47 }
 0x2d5   :  { %2425 = vmatprep.subr.bf16.mxu0 %v6317_v16 }
 0x2d8   :  { %2426 = vmatpush1.bf16.msra.mxu0 %v6320_v18 }
 0x2d9   :  { %2427 = vmatprep.subr.bf16.mxu0 %v6323_v29 }
 0x2dc   :  { %2428 = vmatpush1.bf16.msra.mxu0 %v6326_v10 }
 0x2dd   :  { %2429 = vmatprep.subr.bf16.mxu0 %v6329_v46 }
 0x2e0   :  { %2430 = vmatpush1.bf16.msra.mxu0 %v6332_v49 }
 0x2e1   :  { %2431 = vmatprep.subr.bf16.mxu0 %v6335_v51 }
 0x2e4   :  { %2432 = vmatpush1.bf16.msra.mxu0 %v6338_v55 }
 0x2e5   :  { %2433 = vmatprep.subr.bf16.mxu0 %v6341_v57 }
 0x2e8   :  { %2434 = vmatpush1.bf16.msra.mxu0 %v6344_v59 }
 0x2e9   :  { %2435 = vmatprep.subr.bf16.mxu0 %v6347_v60 }
 0x2ec   :  { %2436 = vmatpush1.bf16.msra.mxu0 %v6350_v62 }
 0x2ed   :  { %2437 = vmatprep.subr.bf16.mxu0 %v6353_v1 }
 0x2f0   :  { %2438 = vmatpush2.bf16.msra.mxu0 %v6356_v3  ;;  %v2307_v3 = vrot.slane %v2163_v30, 4 }
 0x2f1   :  { %2439 = vmatprep.subr.bf16.mxu0 %v6359_v4 }
 0x2f4   :  { %2440 = vmatpush2.bf16.msra.mxu0 %v6362_v5 }
 0x2f5   :  { %2441 = vmatprep.subr.bf16.mxu0 %v6365_v11 }
 0x2f8   :  { %2442 = vmatpush2.bf16.msra.mxu0 %v6368_v14 }
 0x2f9   :  { %2443 = vmatprep.subr.bf16.mxu0 %v6371_v17 }
 0x2fc   :  { %2444 = vmatpush2.bf16.msra.mxu0 %v6374_v19 }
 0x2fd   :  { %2445 = vmatprep.subr.bf16.mxu0 %v6377_v21  ;;  %v2296_v21 = vrot.slane %v2163_v30, 2 }
 0x300   :  { %2446 = vmatpush2.bf16.msra.mxu0 %v6380_v24 }
 0x301   :  { %2447 = vmatprep.subr.bf16.mxu0 %v6383_v20 }
 0x304   :  { %2448 = vmatpush2.bf16.msra.mxu0 %v6386_v9 }
 0x305   :  { %2449 = vmatprep.subr.bf16.mxu0 %v6389_v40 }
 0x308   :  { %2450 = vmatpush2.bf16.msra.mxu0 %v6392_v48 }
 0x309   :  { %2451 = vmatprep.subr.bf16.mxu0 %v6395_v28 }
 0x30c   :  { %2452 = vmatpush2.bf16.msra.mxu0 %v6398_v58 }
 0x30d   :  { %2503 = vmatprep.subr.bf16.mxu0 %v8366_v53 }
 0x34f   :  { %v2199_v7 = vpop.f32.mrf.mxu0  ;;  %v2240_v63 = vpop.f32.mrf.mxu1 }
 0x350   :  { %v2288_v38 = vadd.f32 %v2199_v7, %v2163_v30  ;;  %v2305_v7 = vadd.f32 %v6133_v27, %v2240_v63  ;;  %v6456_v30 = vld [vmem:[#allocation6 + $0x38] ss:$24 sps:$4 sm:$0xff]   ;;  %v6459_v63 = vld [vmem:[#allocation6 + $0xc] ss:$24 sps:$4 sm:$0xff]  }
 0x351   :  { %v2201_v9 = vpop.f32.mrf.mxu0  ;;  %v6402_v40 = vpop.f32.mrf.mxu1  ;;  %8470 = vst [vmem:[#allocation60_spill] sm:$0xff] %v6456_v30  ;;  %8471 = vst [vmem:[#allocation43_spill] sm:$0xff] %v6459_v63 }
 0x352   :  { %v4469_v20 = vmul.f32 -1.442695, %v2288_v38  ;;  %v2298_v17 = vadd.f32 %v2296_v21, %v2201_v9  ;;  %v6447_v21 = vld [vmem:[#allocation6 + $0x6c] ss:$24 sps:$4 sm:$0xff]   ;;  %v6450_v9 = vld [vmem:[#allocation6 + $0x68] ss:$24 sps:$4 sm:$0xff]  }
 0x353   :  { %v2203_v24 = vpop.f32.mrf.mxu0  ;;  %v2244_v48 = vpop.f32.mrf.mxu1  ;;  %8468 = vst [vmem:[#allocation42_spill] sm:$0xff] %v6450_v9  ;;  %v6462_v38 = vld [vmem:[#allocation6 + $0x8] ss:$24 sps:$4 sm:$0xff]  }
 0x354   :  { %5059 = vpow2.f32 %v4469_v20  ;;  %v4470_v14 = vmul.f32 -1.442695, %v2298_v17  ;;  %8472 = vst [vmem:[#allocation44_spill] sm:$0xff] %v6462_v38 }
 0x355   :  { %v2204_v19 = vpop.f32.mrf.mxu0  ;;  %v2245_v28 = vpop.f32.mrf.mxu1 }
 0x356   :  { %5061 = vpow2.f32 %v4470_v14 }
 0x361   :  { %v5060_v58 = vpop.eup %5059 }
 0x362   :  { %v2292_v11 = vadd.f32 1.0, %v5060_v58  ;;  %v6453_v58 = vld [vmem:[#allocation6 + $0x3c] ss:$24 sps:$4 sm:$0xff]  }
 0x363   :  { %v5062_v53 = vpop.eup %5061  ;;  %8469 = vst [vmem:[#allocation58_spill] sm:$0xff] %v6453_v58 }
 0x364   :  { %5063 = vrcp.f32 %v2292_v11  ;;  %v2302_v5 = vadd.f32 1.0, %v5062_v53  ;;  %v6465_v53 = vld [vmem:[#allocation6 + $0x2dc] ss:$24 sps:$4 sm:$0xff]  }
 0x365   :  { %8473 = vst [vmem:[#allocation62_spill] sm:$0xff] %v6465_v53 }
 0x366   :  { %5065 = vrcp.f32 %v2302_v5  ;;  %v6444_v5 = vld [vmem:[#allocation6 + $0x98] ss:$24 sps:$4 sm:$0xff]  }
 0x371   :  { %v5064_v4 = vpop.eup %5063 }
 0x372   :  { %v2306_v1 = vmul.f32 %v5064_v4, %v2305_v7  ;;  %v6468_v7 = vld [vmem:[#allocation6 + $0x2d8] ss:$24 sps:$4 sm:$0xff]  }
 0x373   :  { %v5066_v20 = vpop.eup %5065  ;;  %8474 = vst [vmem:[#allocation64_spill] sm:$0xff] %v6468_v7 }
 0x374   :  { %v2309_v24 = vadd.f32 %v2307_v3, %v2306_v1  ;;  %v2311_v48 = vsub.f32 1.0, %v5066_v20  ;;  %v2313_v17 = vmul.f32 %v5066_v20, %v6136_v33  ;;  %v6474_v20 = vld [vmem:[#allocation6 + $0x2a8] ss:$24 sps:$4 sm:$0xff]  }
 0x375   :  { %8476 = vst [vmem:[#allocation46_spill] sm:$0xff] %v6474_v20 }
 0x376   :  { %5067 = vtanh.f32 %v2309_v24  ;;  %v6471_v24 = vld [vmem:[#allocation6 + $0x2ac] ss:$24 sps:$4 sm:$0xff]  }
 0x377   :  { %8475 = vst [vmem:[#allocation45_spill] sm:$0xff] %v6471_v24 }
 0x383   :  { %v5068_v19 = vpop.eup %5067 }
 0x384   :  { %v2312_v28 = vmul.f32 %v5068_v19, %v2311_v48  ;;  %v6477_v48 = vld [vmem:[#allocation6 + $0x27c] ss:$24 sps:$4 sm:$0xff]   ;;  %v6480_v19 = vld [vmem:[#allocation6 + $0x278] ss:$24 sps:$4 sm:$0xff]  }
 0x385   :  { %8477 = vst [vmem:[#allocation66_spill] sm:$0xff] %v6477_v48  ;;  %8478 = vst [vmem:[#allocation68_spill] sm:$0xff] %v6480_v19 }
 0x386   :  { %v6406_v14 = vadd.f32 %v2313_v17, %v2312_v28  ;;  %v6483_v28 = vld [vmem:[#allocation6 + $0x24c] ss:$24 sps:$4 sm:$0xff]   ;;  %v6486_v17 = vld [vmem:[#allocation6 + $0x248] ss:$24 sps:$4 sm:$0xff]  }
 0x387   :  { %8479 = vst [vmem:[#allocation47_spill] sm:$0xff] %v6483_v28  ;;  %8480 = vst [vmem:[#allocation48_spill] sm:$0xff] %v6486_v17 }
 0x388   :  { %v6410_v11 = vpack.c.bf16 %v6406_v14, %v6406_v14 }
 0x38a   :  { %2349 = vmatmul.mubr.bf16.vlgmr.msra.gmra.mxu1 %v6410_v11 }
 0x38b   :  { %4637 = vmatpush3.bf16.msra.mxu1 %v6138_v13  ;;  %4652 = vmatprep.mubr.msk.bf16.mxu1 %vm5551_vm1, %v8367_v44 }
 0x38c   :  { %4638 = vmatprep.subr.bf16.mxu1 %v8367_v44 }
 0x38f   :  { %v6417_v1 = vpop.f32.mrf.mxu0  ;;  %4639 = vmatpush3.bf16.msra.mxu1 %v6146_v34 }
 0x390   :  { %4640 = vmatprep.subr.bf16.mxu1 %v8367_v44 }
 0x391   :  { %v6421_v33 = vpop.f32.mrf.mxu0 }
 0x393   :  { %v2285_v3 = vpop.f32.mrf.mxu0  ;;  %4641 = vmatpush3.bf16.msra.mxu1 %v6152_v2 }
 0x394   :  { %4642 = vmatprep.subr.bf16.mxu1 %v8367_v44  ;;  %v6489_v3 = vld [vmem:[#allocation6 + $0x21c] ss:$24 sps:$4 sm:$0xff]  }
 0x395   :  { %v2286_v4 = vpop.f32.mrf.mxu0  ;;  %8481 = vst [vmem:[#allocation70_spill] sm:$0xff] %v6489_v3 }
 0x396   :  { %v6492_v4 = vld [vmem:[#allocation6 + $0x218] ss:$24 sps:$4 sm:$0xff]  }
 0x397   :  { %4643 = vmatpush3.bf16.msra.mxu1 %v6156_v26  ;;  %8482 = vst [vmem:[#allocation72_spill] sm:$0xff] %v6492_v4 }
 0x398   :  { %4644 = vmatprep.subr.bf16.mxu1 %v8367_v44 }
 0x39b   :  { %4645 = vmatpush3.bf16.msra.mxu1 %v6160_v37 }
 0x39c   :  { %4646 = vmatprep.subr.bf16.mxu1 %v8367_v44 }
 0x39f   :  { %4647 = vmatpush3.bf16.msra.mxu1 %v6164_v36 }
 0x3a0   :  { %4648 = vmatprep.subr.bf16.mxu1 %v8367_v44 }
 0x3a3   :  { %4649 = vmatpush3.bf16.msra.mxu1 %v6168_v54 }
 0x3a4   :  { %4650 = vmatprep.subr.bf16.mxu1 %v8367_v44 }
 0x3a7   :  { %4651 = vmatpush3.bf16.msra.mxu1 %v6172_v41 }
 0x3a8   :  { %2462 = vmatprep.subr.bf16.mxu1 %v6176_v23 }
 0x3aa   :  { %4653 = vmatmul.mubr.bf16.vlgmr.msra.gmra.mxu1 %v6410_v11 }
 0x3ab   :  { %2463 = vmatpush1.bf16.msra.mxu1 %v6180_v56 }
 0x3ac   :  { %2464 = vmatprep.subr.bf16.mxu1 %v6183_v15 }
 0x3af   :  { %2465 = vmatpush1.bf16.msra.mxu1 %v6186_v52 }
 0x3b0   :  { %2466 = vmatprep.subr.bf16.mxu1 %v6189_v25 }
 0x3b3   :  { %2467 = vmatpush1.bf16.msra.mxu1 %v6192_v43 }
 0x3b4   :  { %2468 = vmatprep.subr.bf16.mxu1 %v6195_v0 }
 0x3b7   :  { %2469 = vmatpush1.bf16.msra.mxu1 %v6198_v8 }
 0x3b8   :  { %2470 = vmatprep.subr.bf16.mxu1 %v6201_v35 }
 0x3bb   :  { %2471 = vmatpush1.bf16.msra.mxu1 %v6444_v5 }
 0x3bc   :  { %2472 = vmatprep.subr.bf16.mxu1 %v6447_v21 }
 0x3bf   :  { %2473 = vmatpush1.bf16.msra.mxu1 %v6450_v9 }
 0x3c0   :  { %2474 = vmatprep.subr.bf16.mxu1 %v6453_v58 }
 0x3c3   :  { %2475 = vmatpush1.bf16.msra.mxu1 %v6456_v30 }
 0x3c4   :  { %2476 = vmatprep.subr.bf16.mxu1 %v6459_v63 }
 0x3c7   :  { %2477 = vmatpush1.bf16.msra.mxu1 %v6462_v38 }
 0x3c8   :  { %2478 = vmatprep.subr.bf16.mxu1 %v6465_v53 }
 0x3cb   :  { %2479 = vmatpush2.bf16.msra.mxu1 %v6468_v7 }
 0x3cc   :  { %2480 = vmatprep.subr.bf16.mxu1 %v6471_v24 }
 0x3cf   :  { %2481 = vmatpush2.bf16.msra.mxu1 %v6474_v20 }
 0x3d0   :  { %2482 = vmatprep.subr.bf16.mxu1 %v6477_v48  ;;  %v6495_v48 = vld [vmem:[#allocation6 + $0x1ec] ss:$24 sps:$4 sm:$0xff]  }
 0x3d1   :  { %8483 = vst [vmem:[#allocation49_spill] sm:$0xff] %v6495_v48 }
 0x3d3   :  { %2483 = vmatpush2.bf16.msra.mxu1 %v6480_v19  ;;  %v6498_v19 = vld [vmem:[#allocation6 + $0x1e8] ss:$24 sps:$4 sm:$0xff]  }
 0x3d4   :  { %2484 = vmatprep.subr.bf16.mxu1 %v6483_v28  ;;  %8484 = vst [vmem:[#allocation50_spill] sm:$0xff] %v6498_v19  ;;  %v6501_v28 = vld [vmem:[#allocation6 + $0x1bc] ss:$24 sps:$4 sm:$0xff]  }
 0x3d5   :  { %8485 = vst [vmem:[#allocation74_spill] sm:$0xff] %v6501_v28 }
 0x3d7   :  { %2485 = vmatpush2.bf16.msra.mxu1 %v6486_v17  ;;  %v6504_v17 = vld [vmem:[#allocation6 + $0x1b8] ss:$24 sps:$4 sm:$0xff]  }
 0x3d8   :  { %2486 = vmatprep.subr.bf16.mxu1 %v6489_v3  ;;  %8486 = vst [vmem:[#allocation76_spill] sm:$0xff] %v6504_v17  ;;  %v6507_v3 = vld [vmem:[#allocation6 + $0x18c] ss:$24 sps:$4 sm:$0xff]  }
 0x3d9   :  { %8487 = vst [vmem:[#allocation51_spill] sm:$0xff] %v6507_v3 }
 0x3db   :  { %2487 = vmatpush2.bf16.msra.mxu1 %v6492_v4  ;;  %v6510_v4 = vld [vmem:[#allocation6 + $0x188] ss:$24 sps:$4 sm:$0xff]  }
 0x3dc   :  { %2488 = vmatprep.subr.bf16.mxu1 %v6495_v48  ;;  %8488 = vst [vmem:[#allocation53_spill] sm:$0xff] %v6510_v4  ;;  %v6513_v48 = vld [vmem:[#allocation8 + $0xac] ss:$12 sps:$4 sm:$0xff]  }
 0x3dd   :  { %8489 = vst [vmem:[#allocation78_spill] sm:$0xff] %v6513_v48 }
 0x3df   :  { %2489 = vmatpush2.bf16.msra.mxu1 %v6498_v19 }
 0x3e0   :  { %2490 = vmatprep.subr.bf16.mxu1 %v6501_v28 }
 0x3e3   :  { %2491 = vmatpush2.bf16.msra.mxu1 %v6504_v17 }
 0x3e4   :  { %2492 = vmatprep.subr.bf16.mxu1 %v6507_v3 }
 0x3e7   :  { %2493 = vmatpush2.bf16.msra.mxu1 %v6510_v4 }
 0x3e8   :  { %2572 = vmatprep.subr.bf16.mxu1 %v6513_v48 }
 0x44a   :  { %v2350_v19 = vpop.f32.mrf.mxu1 }
 0x44b   :  { %v2351_v20 = vadd.f32 %v2350_v19, %v6232_v22 }
 0x44c   :  { %v2352_v28 = vpop.f32.mrf.mxu1 }
 0x44d   :  { %v2397_v24 = vadd.f32 %v2351_v20, %v6402_v40  ;;  %v2353_v53 = vadd.f32 %v2352_v28, %v6235_v32  ;;  %v2411_v40 = vadd.f32 %v6243_v39, %v6421_v33 }
 0x44e   :  { %v2354_v7 = vpop.f32.mrf.mxu1 }
 0x44f   :  { %v4471_v17 = vmul.f32 -1.442695, %v2397_v24  ;;  %v2404_v3 = vadd.f32 %v2353_v53, %v6417_v1 }
 0x450   :  { %v2355_v38 = vpop.f32.mrf.mxu1 }
 0x451   :  { %5069 = vpow2.f32 %v4471_v17  ;;  %v4472_v63 = vmul.f32 -1.442695, %v2404_v3 }
 0x453   :  { %5071 = vpow2.f32 %v4472_v63 }
 0x45e   :  { %v5070_v4 = vpop.eup %5069 }
 0x45f   :  { %v2401_v30 = vadd.f32 1.0, %v5070_v4  ;;  %v6539_v4 = vld [vmem:[#allocation8 + $0x94] ss:$12 sps:$4 sm:$0xff]  }
 0x460   :  { %v5072_v48 = vpop.eup %5071 }
 0x461   :  { %5073 = vrcp.f32 %v2401_v30  ;;  %v2408_v9 = vadd.f32 1.0, %v5072_v48 }
 0x463   :  { %5075 = vrcp.f32 %v2408_v9  ;;  %v6530_v9 = vld [vmem:[#allocation6 + $0x160] ss:$24 sps:$4 sm:$0xff]  }
 0x46a   :  { %v2391_v58 = vpop.f32.mrf.mxu1 }
 0x46b   :  { %v2392_v38 = vadd.f32 %v2391_v58, %v6246_v12  ;;  %v6533_v58 = vld [vmem:[#allocation6 + $0x134] ss:$24 sps:$4 sm:$0xff]  }
 0x46c   :  { %v4654_v19 = vpop.f32.mrf.mxu1 }
 0x46d   :  { %v6543_v19 = vld [vmem:[#allocation6 + $0x130] ss:$24 sps:$4 sm:$0xff]  }
 0x46e   :  { %v5074_v7 = vpop.eup %5073  ;;  %v2394_v24 = vpop.f32.mrf.mxu1 }
 0x46f   :  { %v2412_v20 = vmul.f32 %v5074_v7, %v2411_v40  ;;  %v6546_v40 = vld [vmem:[#allocation6 + $0x104] ss:$24 sps:$4 sm:$0xff]  }
 0x470   :  { %v4655_v28 = vpop.f32.mrf.mxu1  ;;  %v5076_v63 = vpop.eup %5075  ;;  %v6549_v7 = vld [vmem:[#allocation8 + $0x90] ss:$12 sps:$4 sm:$0xff]  }
 0x471   :  { %v2413_v1 = vadd.f32 %v2412_v20, %v2392_v38  ;;  %v2415_v53 = vsub.f32 1.0, %v5076_v63  ;;  %v2417_v3 = vmul.f32 %v5076_v63, %v6250_v42  ;;  %v6536_v42 = vld [vmem:[#allocation8 + $0xa8] ss:$12 sps:$4 sm:$0xff]   ;;  %v6555_v38 = vld [vmem:[#allocation6 + $0x100] ss:$24 sps:$4 sm:$0xff]  }
 0x472   :  { %v6552_v24 = vld [vmem:[#allocation8 + $0x7c] ss:$12 sps:$4 sm:$0xff]   ;;  %v6558_v20 = vld [vmem:[#allocation6 + $0xd4] ss:$24 sps:$4 sm:$0xff]   ;;  %v6561_v28 = vld [vmem:[#allocation8 + $0x78] ss:$12 sps:$4 sm:$0xff]  }
 0x473   :  { %5077 = vtanh.f32 %v2413_v1  ;;  %v6564_v1 = vld [vmem:[#allocation8 + $0x64] ss:$12 sps:$4 sm:$0xff]  }
 0x474   :  { %v6567_v63 = vld [vmem:[#allocation6 + $0xd0] ss:$24 sps:$4 sm:$0xff]  }
 0x475   :  { %8490 = vst [vmem:[#allocation80_spill] sm:$0xff] %v6567_v63 }
 0x480   :  { %v5078_v17 = vpop.eup %5077 }
 0x481   :  { %v2416_v30 = vmul.f32 %v5078_v17, %v2415_v53  ;;  %v6570_v53 = vld [vmem:[#allocation6 + $0xa4] ss:$24 sps:$4 sm:$0xff]   ;;  %v6573_v17 = vld [vmem:[#allocation8 + $0x60] ss:$12 sps:$4 sm:$0xff]  }
 0x482   :  { %8491 = vst [vmem:[#allocation55_spill] sm:$0xff] %v6570_v53  ;;  %8492 = vst [vmem:[#allocation57_spill] sm:$0xff] %v6573_v17 }
 0x483   :  { %v6524_v48 = vadd.f32 %v2417_v3, %v2416_v30  ;;  %v6576_v30 = vld [vmem:[#allocation8 + $0x4c] ss:$12 sps:$4 sm:$0xff]  }
 0x484   :  { %8493 = vst [vmem:[#allocation59_spill] sm:$0xff] %v6576_v30  ;;  %v6579_v3 = vld [vmem:[#allocation6 + $0xa0] ss:$24 sps:$4 sm:$0xff]  }
 0x485   :  { %v2420_v33 = vpack.c.bf16 %v6524_v48, %v6524_v48  ;;  %8494 = vst [vmem:[#allocation61_spill] sm:$0xff] %v6579_v3 }
 0x487   :  { %2453 = vmatprep.mubr.bf16.mxu0 %v2420_v33  ;;  %2494 = vmatprep.mubr.bf16.mxu1 %v2420_v33 }
 0x488   :  { %2454 = vmatmul.mubr.bf16.vlgmr.msra.gmra.mxu0 %v6410_v11  ;;  %2495 = vmatmul.mubr.bf16.vlgmr.msra.gmra.mxu1 %v6410_v11 }
 0x489   :  { %2504 = vmatpush1.bf16.msra.mxu0 %v6530_v9  ;;  %2535 = vmatprep.mubr.bf16.mxu0 %v2420_v33  ;;  %v6582_v33 = vld [vmem:[#allocation6 + $0x74] ss:$24 sps:$4 sm:$0xff]  }
 0x48a   :  { %2505 = vmatprep.subr.bf16.mxu0 %v6533_v58  ;;  %2573 = vmatpush1.bf16.msra.mxu1 %v6536_v42  ;;  %8495 = vst [vmem:[#allocation63_spill] sm:$0xff] %v6582_v33 }
 0x48b   :  { %2574 = vmatprep.subr.bf16.mxu1 %v6539_v4  ;;  %2604 = vmatprep.mubr.bf16.mxu1 %v8396_v31 }
 0x48d   :  { %2506 = vmatpush1.bf16.msra.mxu0 %v6543_v19 }
 0x48e   :  { %2507 = vmatprep.subr.bf16.mxu0 %v6546_v40  ;;  %2575 = vmatpush1.bf16.msra.mxu1 %v6549_v7 }
 0x48f   :  { %2576 = vmatprep.subr.bf16.mxu1 %v6552_v24 }
 0x491   :  { %2508 = vmatpush1.bf16.msra.mxu0 %v6555_v38 }
 0x492   :  { %2509 = vmatprep.subr.bf16.mxu0 %v6558_v20  ;;  %2577 = vmatpush1.bf16.msra.mxu1 %v6561_v28 }
 0x493   :  { %2578 = vmatprep.subr.bf16.mxu1 %v6564_v1 }
 0x495   :  { %2510 = vmatpush1.bf16.msra.mxu0 %v6567_v63  ;;  %v6585_v63 = vld [vmem:[#allocation8 + $0x48] ss:$12 sps:$4 sm:$0xff]  }
 0x496   :  { %2511 = vmatprep.subr.bf16.mxu0 %v6570_v53  ;;  %2579 = vmatpush1.bf16.msra.mxu1 %v6573_v17  ;;  %8496 = vst [vmem:[#allocation65_spill] sm:$0xff] %v6585_v63  ;;  %v6588_v53 = vld [vmem:[#allocation8 + $0x34] ss:$12 sps:$4 sm:$0xff]   ;;  %v6591_v17 = vld [vmem:[#allocation6 + $0x70] ss:$24 sps:$4 sm:$0xff]  }
 0x497   :  { %2580 = vmatprep.subr.bf16.mxu1 %v6576_v30  ;;  %8497 = vst [vmem:[#allocation67_spill] sm:$0xff] %v6588_v53  ;;  %8498 = vst [vmem:[#allocation69_spill] sm:$0xff] %v6591_v17  ;;  %v6594_v30 = vld [vmem:[#allocation6 + $0x44] ss:$24 sps:$4 sm:$0xff]  }
 0x498   :  { %8499 = vst [vmem:[#allocation71_spill] sm:$0xff] %v6594_v30 }
 0x499   :  { %2512 = vmatpush1.bf16.msra.mxu0 %v6579_v3  ;;  %v6597_v3 = vld [vmem:[#allocation8 + $0x30] ss:$12 sps:$4 sm:$0xff]  }
 0x49a   :  { %2513 = vmatprep.subr.bf16.mxu0 %v6582_v33  ;;  %2581 = vmatpush1.bf16.msra.mxu1 %v6585_v63  ;;  %8500 = vst [vmem:[#allocation73_spill] sm:$0xff] %v6597_v3  ;;  %v6600_v33 = vld [vmem:[#allocation8 + $0x1c] ss:$12 sps:$4 sm:$0xff]   ;;  %v6603_v63 = vld [vmem:[#allocation6 + $0x40] ss:$24 sps:$4 sm:$0xff]  }
 0x49b   :  { %2582 = vmatprep.subr.bf16.mxu1 %v6588_v53  ;;  %8501 = vst [vmem:[#allocation75_spill] sm:$0xff] %v6600_v33  ;;  %8502 = vst [vmem:[#allocation77_spill] sm:$0xff] %v6603_v63  ;;  %v6606_v53 = vld [vmem:[#allocation6 + $0x14] ss:$24 sps:$4 sm:$0xff]  }
 0x49c   :  { %8503 = vst [vmem:[#allocation79_spill] sm:$0xff] %v6606_v53 }
 0x49d   :  { %2514 = vmatpush1.bf16.msra.mxu0 %v6591_v17  ;;  %v6609_v17 = vld [vmem:[#allocation8 + $0x18] ss:$12 sps:$4 sm:$0xff]  }
 0x49e   :  { %2515 = vmatprep.subr.bf16.mxu0 %v6594_v30  ;;  %2583 = vmatpush1.bf16.msra.mxu1 %v6597_v3  ;;  %8504 = vst [vmem:[#allocation81_spill] sm:$0xff] %v6609_v17  ;;  %v6612_v30 = vld [vmem:[#allocation8 + $0x4] ss:$12 sps:$4 sm:$0xff]  }
 0x49f   :  { %2584 = vmatprep.subr.bf16.mxu1 %v6600_v33  ;;  %8505 = vst [vmem:[#allocation82_spill] sm:$0xff] %v6612_v30  ;;  %v6615_v3 = vld [vmem:[#allocation6 + $0x10] ss:$24 sps:$4 sm:$0xff]   ;;  %v6618_v33 = vld [vmem:[#allocation6 + $0x2e4] ss:$24 sps:$4 sm:$0xff]  }
 0x4a0   :  { %8506 = vst [vmem:[#allocation83_spill] sm:$0xff] %v6615_v3  ;;  %8507 = vst [vmem:[#allocation84_spill] sm:$0xff] %v6618_v33 }
 0x4a1   :  { %2516 = vmatpush1.bf16.msra.mxu0 %v6603_v63  ;;  %v6621_v63 = vld [vmem:[#allocation8] ss:$12 sps:$4 sm:$0xff]  }
 0x4a2   :  { %2517 = vmatprep.subr.bf16.mxu0 %v6606_v53  ;;  %2585 = vmatpush1.bf16.msra.mxu1 %v6609_v17  ;;  %8508 = vst [vmem:[#allocation85_spill] sm:$0xff] %v6621_v63  ;;  %v6625_v53 = vld [vmem:[#allocation6 + $0x2e0] ss:$24 sps:$4 sm:$0xff]   ;;  %v6628_v17 = vld [vmem:[#allocation6 + $0x2b4] ss:$24 sps:$4 sm:$0xff]  }
 0x4a3   :  { %2586 = vmatprep.subr.bf16.mxu1 %v6612_v30  ;;  %8509 = vst [vmem:[#allocation86_spill] sm:$0xff] %v6625_v53  ;;  %8510 = vst [vmem:[#allocation87_spill] sm:$0xff] %v6628_v17  ;;  %v6631_v30 = vld [vmem:[#allocation6 + $0x2b0] ss:$24 sps:$4 sm:$0xff]  }
 0x4a4   :  { %8511 = vst [vmem:[#allocation88_spill] sm:$0xff] %v6631_v30 }
 0x4a5   :  { %2518 = vmatpush1.bf16.msra.mxu0 %v6615_v3  ;;  %v6634_v3 = vld [vmem:[#allocation6 + $0x284] ss:$24 sps:$4 sm:$0xff]  }
 0x4a6   :  { %2519 = vmatprep.subr.bf16.mxu0 %v6618_v33  ;;  %2587 = vmatpush1.bf16.msra.mxu1 %v6621_v63  ;;  %8512 = vst [vmem:[#allocation89_spill] sm:$0xff] %v6634_v3  ;;  %v6637_v33 = vld [vmem:[#allocation6 + $0x280] ss:$24 sps:$4 sm:$0xff]   ;;  %v6640_v63 = vld [vmem:[#allocation6 + $0x254] ss:$24 sps:$4 sm:$0xff]  }
 0x4a7   :  { %4656 = vmatprep.subr.bf16.mxu1 %v8367_v44  ;;  %8513 = vst [vmem:[#allocation90_spill] sm:$0xff] %v6637_v33  ;;  %8514 = vst [vmem:[#allocation91_spill] sm:$0xff] %v6640_v63 }
 0x4a9   :  { %2520 = vmatpush2.bf16.msra.mxu0 %v6625_v53  ;;  %v6643_v53 = vld [vmem:[#allocation6 + $0x250] ss:$24 sps:$4 sm:$0xff]  }
 0x4aa   :  { %2521 = vmatprep.subr.bf16.mxu0 %v6628_v17  ;;  %8515 = vst [vmem:[#allocation92_spill] sm:$0xff] %v6643_v53  ;;  %v6646_v17 = vld [vmem:[#allocation6 + $0x224] ss:$24 sps:$4 sm:$0xff]  }
 0x4ab   :  { %8516 = vst [vmem:[#allocation93_spill] sm:$0xff] %v6646_v17 }
 0x4ad   :  { %2522 = vmatpush2.bf16.msra.mxu0 %v6631_v30  ;;  %v6649_v30 = vld [vmem:[#allocation6 + $0x220] ss:$24 sps:$4 sm:$0xff]  }
 0x4ae   :  { %2523 = vmatprep.subr.bf16.mxu0 %v6634_v3  ;;  %8517 = vst [vmem:[#allocation94_spill] sm:$0xff] %v6649_v30  ;;  %v6652_v3 = vld [vmem:[#allocation6 + $0x1f4] ss:$24 sps:$4 sm:$0xff]  }
 0x4af   :  { %8518 = vst [vmem:[#allocation95_spill] sm:$0xff] %v6652_v3 }
 0x4b1   :  { %2524 = vmatpush2.bf16.msra.mxu0 %v6637_v33  ;;  %v6655_v33 = vld [vmem:[#allocation6 + $0x1f0] ss:$24 sps:$4 sm:$0xff]  }
 0x4b2   :  { %2525 = vmatprep.subr.bf16.mxu0 %v6640_v63  ;;  %8519 = vst [vmem:[#allocation96_spill] sm:$0xff] %v6655_v33  ;;  %v6658_v63 = vld [vmem:[#allocation6 + $0x1c4] ss:$24 sps:$4 sm:$0xff]  }
 0x4b3   :  { %8520 = vst [vmem:[#allocation97_spill] sm:$0xff] %v6658_v63 }
 0x4b5   :  { %2526 = vmatpush2.bf16.msra.mxu0 %v6643_v53  ;;  %v6661_v53 = vld [vmem:[#allocation6 + $0x1c0] ss:$24 sps:$4 sm:$0xff]  }
 0x4b6   :  { %2527 = vmatprep.subr.bf16.mxu0 %v6646_v17  ;;  %8521 = vst [vmem:[#allocation98_spill] sm:$0xff] %v6661_v53  ;;  %v6664_v17 = vld [vmem:[#allocation6 + $0x194] ss:$24 sps:$4 sm:$0xff]  }
 0x4b7   :  { %8522 = vst [vmem:[#allocation99_spill] sm:$0xff] %v6664_v17 }
 0x4b9   :  { %2528 = vmatpush2.bf16.msra.mxu0 %v6649_v30 }
 0x4ba   :  { %2529 = vmatprep.subr.bf16.mxu0 %v6652_v3 }
 0x4bd   :  { %2530 = vmatpush2.bf16.msra.mxu0 %v6655_v33 }
 0x4be   :  { %2531 = vmatprep.subr.bf16.mxu0 %v6658_v63 }
 0x4c1   :  { %2532 = vmatpush2.bf16.msra.mxu0 %v6661_v53 }
 0x4c2   :  { %2533 = vmatprep.subr.bf16.mxu0 %v6664_v17 }
 0x4c5   :  { %2534 = vmatpush2.bf16.msra.mxu0 %v8435_v45  ;;  %v8523_v45 = vld [vmem:[#allocation26_spill] sm:$0xff] }
 0x4c6   :  { %2677 = vmatprep.subr.bf16.mxu0 %v6304_v6 }
 0x4c8   :  { %2536 = vmatmul.mubr.bf16.vlgmr.msra.gmra.mxu0 %v6410_v11  ;;  %v8524_v11 = vld [vmem:[#allocation28_spill] sm:$0xff] }
 0x4c9   :  { %2678 = vmatpush1.bf16.msra.mxu0 %v6308_v61 }
 0x4ca   :  { %2679 = vmatprep.subr.bf16.mxu0 %v6311_v50 }
 0x4cd   :  { %2680 = vmatpush1.bf16.msra.mxu0 %v6314_v47 }
 0x4ce   :  { %2681 = vmatprep.subr.bf16.mxu0 %v6317_v16 }
 0x4d1   :  { %2682 = vmatpush1.bf16.msra.mxu0 %v6320_v18 }
 0x4d2   :  { %2683 = vmatprep.subr.bf16.mxu0 %v6323_v29 }
 0x4d5   :  { %2684 = vmatpush1.bf16.msra.mxu0 %v6326_v10  ;;  %v8525_v10 = vld [vmem:[#allocation30_spill] sm:$0xff] }
 0x4d6   :  { %2685 = vmatprep.subr.bf16.mxu0 %v6329_v46  ;;  %v8526_v46 = vld [vmem:[#allocation31_spill] sm:$0xff] }
 0x4d9   :  { %2686 = vmatpush1.bf16.msra.mxu0 %v6332_v49  ;;  %v8527_v49 = vld [vmem:[#allocation32_spill] sm:$0xff] }
 0x4da   :  { %2687 = vmatprep.subr.bf16.mxu0 %v6335_v51  ;;  %v8528_v51 = vld [vmem:[#allocation33_spill] sm:$0xff] }
 0x4dd   :  { %2688 = vmatpush1.bf16.msra.mxu0 %v6338_v55  ;;  %v8529_v55 = vld [vmem:[#allocation34_spill] sm:$0xff] }
 0x4de   :  { %2689 = vmatprep.subr.bf16.mxu0 %v6341_v57  ;;  %v8530_v57 = vld [vmem:[#allocation35_spill] sm:$0xff] }
 0x4e1   :  { %2690 = vmatpush1.bf16.msra.mxu0 %v6344_v59  ;;  %v8531_v59 = vld [vmem:[#allocation36_spill] sm:$0xff] }
 0x4e2   :  { %2691 = vmatprep.subr.bf16.mxu0 %v6347_v60  ;;  %v8532_v60 = vld [vmem:[#allocation37_spill] sm:$0xff] }
 0x4e5   :  { %2692 = vmatpush1.bf16.msra.mxu0 %v6350_v62  ;;  %v8533_v62 = vld [vmem:[#allocation52_spill] sm:$0xff] }
 0x4e6   :  { %2693 = vmatprep.subr.bf16.mxu0 %v8523_v45  ;;  %v8534_v45 = vld [vmem:[#allocation39_spill] sm:$0xff] }
 0x4e9   :  { %2694 = vmatpush2.bf16.msra.mxu0 %v8524_v11  ;;  %v8535_v11 = vld [vmem:[#allocation40_spill] sm:$0xff] }
 0x4ea   :  { %2695 = vmatprep.subr.bf16.mxu0 %v8525_v10  ;;  %v8536_v10 = vld [vmem:[#allocation54_spill] sm:$0xff] }
 0x4ed   :  { %2696 = vmatpush2.bf16.msra.mxu0 %v8526_v46  ;;  %v8537_v46 = vld [vmem:[#allocation56_spill] sm:$0xff] }
 0x4ee   :  { %2697 = vmatprep.subr.bf16.mxu0 %v8527_v49  ;;  %v8538_v49 = vld [vmem:[#allocation41_spill] sm:$0xff] }
 0x4f1   :  { %2698 = vmatpush2.bf16.msra.mxu0 %v8528_v51  ;;  %v6701_v51 = vld [vmem:[#allocation6 + $0x164] ss:$24 sps:$4 sm:$0xff]  }
 0x4f2   :  { %2699 = vmatprep.subr.bf16.mxu0 %v8529_v55  ;;  %8539 = vst [vmem:[#allocation100_spill] sm:$0xff] %v6701_v51 }
 0x4f5   :  { %2700 = vmatpush2.bf16.msra.mxu0 %v8530_v57  ;;  %v2419_v57 = vld [vmem:[#allocation2 + $0xc] sm:$0x3f] }
 0x4f6   :  { %2701 = vmatprep.subr.bf16.mxu0 %v8531_v59  ;;  %v2563_v53 = vrot.slane %v2419_v57, 4 }
 0x4f9   :  { %2702 = vmatpush2.bf16.msra.mxu0 %v8532_v60 }
 0x4fa   :  { %2703 = vmatprep.subr.bf16.mxu0 %v8533_v62 }
 0x4fd   :  { %2704 = vmatpush2.bf16.msra.mxu0 %v8534_v45 }
 0x4fe   :  { %2705 = vmatprep.subr.bf16.mxu0 %v8535_v11 }
 0x501   :  { %2706 = vmatpush2.bf16.msra.mxu0 %v8536_v10  ;;  %v2552_v10 = vrot.slane %v2419_v57, 2 }
 0x502   :  { %2707 = vmatprep.subr.bf16.mxu0 %v8537_v46 }
 0x505   :  { %2708 = vmatpush2.bf16.msra.mxu0 %v8538_v49 }
 0x506   :  { %2759 = vmatprep.subr.bf16.mxu0 %v6701_v51 }
 0x548   :  { %v2455_v59 = vpop.f32.mrf.mxu0  ;;  %v2496_v55 = vpop.f32.mrf.mxu1 }
 0x549   :  { %v2544_v60 = vadd.f32 %v2455_v59, %v2419_v57  ;;  %v2561_v59 = vadd.f32 %v6133_v27, %v2496_v55  ;;  %v8559_v55 = vld [vmem:[#allocation51_spill] sm:$0xff]  ;;  %v8560_v57 = vld [vmem:[#allocation53_spill] sm:$0xff] }
 0x54a   :  { %v2457_v29 = vpop.f32.mrf.mxu0  ;;  %v6704_v62 = vpop.f32.mrf.mxu1 }
 0x54b   :  { %v4473_v45 = vmul.f32 -1.442695, %v2544_v60  ;;  %v2554_v47 = vadd.f32 %v2552_v10, %v2457_v29 }
 0x54c   :  { %v2459_v18 = vpop.f32.mrf.mxu0  ;;  %v2500_v11 = vpop.f32.mrf.mxu1 }
 0x54d   :  { %5079 = vpow2.f32 %v4473_v45  ;;  %v4474_v49 = vmul.f32 -1.442695, %v2554_v47 }
 0x54e   :  { %v2460_v16 = vpop.f32.mrf.mxu0  ;;  %v2501_v46 = vpop.f32.mrf.mxu1 }
 0x54f   :  { %5081 = vpow2.f32 %v4474_v49  ;;  %v8557_v49 = vld [vmem:[#allocation74_spill] sm:$0xff] }
 0x55a   :  { %v5080_v50 = vpop.eup %5079 }
 0x55b   :  { %v2548_v61 = vadd.f32 1.0, %v5080_v50 }
 0x55c   :  { %v5082_v51 = vpop.eup %5081 }
 0x55d   :  { %5083 = vrcp.f32 %v2548_v61  ;;  %v2558_v6 = vadd.f32 1.0, %v5082_v51  ;;  %v8558_v51 = vld [vmem:[#allocation76_spill] sm:$0xff] }
 0x55f   :  { %5085 = vrcp.f32 %v2558_v6 }
 0x56a   :  { %v5084_v17 = vpop.eup %5083 }
 0x56b   :  { %v2562_v63 = vmul.f32 %v5084_v17, %v2561_v59 }
 0x56c   :  { %v5086_v60 = vpop.eup %5085 }
 0x56d   :  { %v2565_v18 = vadd.f32 %v2563_v53, %v2562_v63  ;;  %v2567_v45 = vsub.f32 1.0, %v5086_v60  ;;  %v2569_v47 = vmul.f32 %v5086_v60, %v6406_v14  ;;  %v8561_v14 = vld [vmem:[#allocation78_spill] sm:$0xff] }
 0x56f   :  { %5087 = vtanh.f32 %v2565_v18 }
 0x57c   :  { %v5088_v16 = vpop.eup %5087 }
 0x57d   :  { %v2568_v46 = vmul.f32 %v5088_v16, %v2567_v45 }
 0x57f   :  { %v6708_v29 = vadd.f32 %v2569_v47, %v2568_v46 }
 0x581   :  { %v6712_v61 = vpack.c.bf16 %v6708_v29, %v6708_v29 }
 0x583   :  { %2605 = vmatmul.mubr.bf16.vlgmr.msra.gmra.mxu1 %v6712_v61 }
 0x584   :  { %4657 = vmatpush3.bf16.msra.mxu1 %v6138_v13  ;;  %4672 = vmatprep.mubr.msk.bf16.mxu1 %vm5551_vm1, %v8367_v44  ;;  %v8540_v13 = vld [vmem:[#allocation42_spill] sm:$0xff] }
 0x585   :  { %4658 = vmatprep.subr.bf16.mxu1 %v8367_v44 }
 0x588   :  { %v2537_v27 = vpop.f32.mrf.mxu0  ;;  %4659 = vmatpush3.bf16.msra.mxu1 %v6146_v34  ;;  %v8541_v34 = vld [vmem:[#allocation58_spill] sm:$0xff] }
 0x589   :  { %4660 = vmatprep.subr.bf16.mxu1 %v8367_v44 }
 0x58a   :  { %v6721_v6 = vpop.f32.mrf.mxu0 }
 0x58c   :  { %v2541_v50 = vpop.f32.mrf.mxu0  ;;  %4661 = vmatpush3.bf16.msra.mxu1 %v6152_v2  ;;  %v8542_v2 = vld [vmem:[#allocation60_spill] sm:$0xff] }
 0x58d   :  { %4662 = vmatprep.subr.bf16.mxu1 %v8367_v44 }
 0x58e   :  { %v2542_v10 = vpop.f32.mrf.mxu0 }
 0x590   :  { %4663 = vmatpush3.bf16.msra.mxu1 %v6156_v26  ;;  %v8543_v26 = vld [vmem:[#allocation43_spill] sm:$0xff] }
 0x591   :  { %4664 = vmatprep.subr.bf16.mxu1 %v8367_v44 }
 0x594   :  { %4665 = vmatpush3.bf16.msra.mxu1 %v6160_v37  ;;  %v8544_v37 = vld [vmem:[#allocation44_spill] sm:$0xff] }
 0x595   :  { %4666 = vmatprep.subr.bf16.mxu1 %v8367_v44 }
 0x598   :  { %4667 = vmatpush3.bf16.msra.mxu1 %v6164_v36  ;;  %v8545_v36 = vld [vmem:[#allocation62_spill] sm:$0xff] }
 0x599   :  { %4668 = vmatprep.subr.bf16.mxu1 %v8367_v44 }
 0x59c   :  { %4669 = vmatpush3.bf16.msra.mxu1 %v6168_v54  ;;  %v8546_v54 = vld [vmem:[#allocation64_spill] sm:$0xff] }
 0x59d   :  { %4670 = vmatprep.subr.bf16.mxu1 %v8367_v44 }
 0x5a0   :  { %4671 = vmatpush3.bf16.msra.mxu1 %v6172_v41  ;;  %v8547_v41 = vld [vmem:[#allocation45_spill] sm:$0xff] }
 0x5a1   :  { %2718 = vmatprep.subr.bf16.mxu1 %v6176_v23  ;;  %v8548_v23 = vld [vmem:[#allocation46_spill] sm:$0xff] }
 0x5a3   :  { %4673 = vmatmul.mubr.bf16.vlgmr.msra.gmra.mxu1 %v6712_v61 }
 0x5a4   :  { %2719 = vmatpush1.bf16.msra.mxu1 %v6180_v56  ;;  %v8549_v56 = vld [vmem:[#allocation66_spill] sm:$0xff] }
 0x5a5   :  { %2720 = vmatprep.subr.bf16.mxu1 %v6183_v15  ;;  %v8550_v15 = vld [vmem:[#allocation68_spill] sm:$0xff] }
 0x5a8   :  { %2721 = vmatpush1.bf16.msra.mxu1 %v6186_v52  ;;  %v8551_v52 = vld [vmem:[#allocation47_spill] sm:$0xff] }
 0x5a9   :  { %2722 = vmatprep.subr.bf16.mxu1 %v6189_v25  ;;  %v8552_v25 = vld [vmem:[#allocation48_spill] sm:$0xff] }
 0x5ac   :  { %2723 = vmatpush1.bf16.msra.mxu1 %v6192_v43  ;;  %v8553_v43 = vld [vmem:[#allocation70_spill] sm:$0xff] }
 0x5ad   :  { %2724 = vmatprep.subr.bf16.mxu1 %v6195_v0  ;;  %v8554_v0 = vld [vmem:[#allocation72_spill] sm:$0xff] }
 0x5b0   :  { %2725 = vmatpush1.bf16.msra.mxu1 %v6198_v8  ;;  %v8555_v8 = vld [vmem:[#allocation49_spill] sm:$0xff] }
 0x5b1   :  { %2726 = vmatprep.subr.bf16.mxu1 %v6201_v35  ;;  %v8556_v35 = vld [vmem:[#allocation50_spill] sm:$0xff] }
 0x5b4   :  { %2727 = vmatpush1.bf16.msra.mxu1 %v6444_v5 }
 0x5b5   :  { %2728 = vmatprep.subr.bf16.mxu1 %v6447_v21 }
 0x5b8   :  { %2729 = vmatpush1.bf16.msra.mxu1 %v8540_v13 }
 0x5b9   :  { %2730 = vmatprep.subr.bf16.mxu1 %v8541_v34 }
 0x5bc   :  { %2731 = vmatpush1.bf16.msra.mxu1 %v8542_v2 }
 0x5bd   :  { %2732 = vmatprep.subr.bf16.mxu1 %v8543_v26 }
 0x5c0   :  { %2733 = vmatpush1.bf16.msra.mxu1 %v8544_v37 }
 0x5c1   :  { %2734 = vmatprep.subr.bf16.mxu1 %v8545_v36 }
 0x5c4   :  { %2735 = vmatpush2.bf16.msra.mxu1 %v8546_v54 }
 0x5c5   :  { %2736 = vmatprep.subr.bf16.mxu1 %v8547_v41 }
 0x5c8   :  { %2737 = vmatpush2.bf16.msra.mxu1 %v8548_v23 }
 0x5c9   :  { %2738 = vmatprep.subr.bf16.mxu1 %v8549_v56 }
 0x5cc   :  { %2739 = vmatpush2.bf16.msra.mxu1 %v8550_v15 }
 0x5cd   :  { %2740 = vmatprep.subr.bf16.mxu1 %v8551_v52 }
 0x5d0   :  { %2741 = vmatpush2.bf16.msra.mxu1 %v8552_v25 }
 0x5d1   :  { %2742 = vmatprep.subr.bf16.mxu1 %v8553_v43 }
 0x5d4   :  { %2743 = vmatpush2.bf16.msra.mxu1 %v8554_v0 }
 0x5d5   :  { %2744 = vmatprep.subr.bf16.mxu1 %v8555_v8 }
 0x5d8   :  { %2745 = vmatpush2.bf16.msra.mxu1 %v8556_v35 }
 0x5d9   :  { %2746 = vmatprep.subr.bf16.mxu1 %v8557_v49 }
 0x5dc   :  { %2747 = vmatpush2.bf16.msra.mxu1 %v8558_v51 }
 0x5dd   :  { %2748 = vmatprep.subr.bf16.mxu1 %v8559_v55 }
 0x5e0   :  { %2749 = vmatpush2.bf16.msra.mxu1 %v8560_v57 }
 0x5e1   :  { %2828 = vmatprep.subr.bf16.mxu1 %v8561_v14 }
 0x643   :  { %v2606_v63 = vpop.f32.mrf.mxu1 }
 0x644   :  { %v2607_v53 = vadd.f32 %v2606_v63, %v6232_v22  ;;  %v2667_v63 = vadd.f32 %v6243_v39, %v6721_v6  ;;  %v8563_v6 = vld [vmem:[#allocation55_spill] sm:$0xff] }
 0x645   :  { %v2608_v17 = vpop.f32.mrf.mxu1 }
 0x646   :  { %v2653_v11 = vadd.f32 %v2607_v53, %v6704_v62  ;;  %v2609_v60 = vadd.f32 %v2608_v17, %v6235_v32 }
 0x647   :  { %v2610_v59 = vpop.f32.mrf.mxu1 }
 0x648   :  { %v4475_v18 = vmul.f32 -1.442695, %v2653_v11  ;;  %v2660_v16 = vadd.f32 %v2609_v60, %v2537_v27 }
 0x649   :  { %v2611_v45 = vpop.f32.mrf.mxu1 }
 0x64a   :  { %5089 = vpow2.f32 %v4475_v18  ;;  %v4476_v46 = vmul.f32 -1.442695, %v2660_v16 }
 0x64c   :  { %5091 = vpow2.f32 %v4476_v46 }
 0x657   :  { %v5090_v47 = vpop.eup %5089 }
 0x658   :  { %v2657_v50 = vadd.f32 1.0, %v5090_v47 }
 0x659   :  { %v5092_v10 = vpop.eup %5091 }
 0x65a   :  { %5093 = vrcp.f32 %v2657_v50  ;;  %v2664_v57 = vadd.f32 1.0, %v5092_v10  ;;  %v8567_v50 = vld [vmem:[#allocation63_spill] sm:$0xff]  ;;  %v8568_v10 = vld [vmem:[#allocation65_spill] sm:$0xff] }
 0x65c   :  { %5095 = vrcp.f32 %v2664_v57  ;;  %v8565_v57 = vld [vmem:[#allocation59_spill] sm:$0xff] }
 0x663   :  { %v2647_v14 = vpop.f32.mrf.mxu1 }
 0x664   :  { %v2648_v17 = vadd.f32 %v2647_v14, %v6246_v12  ;;  %v8566_v14 = vld [vmem:[#allocation61_spill] sm:$0xff] }
 0x665   :  { %v4674_v55 = vpop.f32.mrf.mxu1 }
 0x666   :  { %v8564_v55 = vld [vmem:[#allocation57_spill] sm:$0xff] }
 0x667   :  { %v5094_v62 = vpop.eup %5093  ;;  %v2650_v53 = vpop.f32.mrf.mxu1 }
 0x668   :  { %v2668_v11 = vmul.f32 %v5094_v62, %v2667_v63  ;;  %v8569_v63 = vld [vmem:[#allocation67_spill] sm:$0xff]  ;;  %v8570_v62 = vld [vmem:[#allocation69_spill] sm:$0xff] }
 0x669   :  { %v4675_v59 = vpop.f32.mrf.mxu1  ;;  %v5096_v18 = vpop.eup %5095  ;;  %v8571_v53 = vld [vmem:[#allocation71_spill] sm:$0xff] }
 0x66a   :  { %v2669_v27 = vadd.f32 %v2668_v11, %v2648_v17  ;;  %v2671_v60 = vsub.f32 1.0, %v5096_v18  ;;  %v2673_v46 = vmul.f32 %v5096_v18, %v6524_v48  ;;  %v8562_v48 = vld [vmem:[#allocation80_spill] sm:$0xff]  ;;  %v8572_v17 = vld [vmem:[#allocation73_spill] sm:$0xff]  ;;  %v8573_v11 = vld [vmem:[#allocation75_spill] sm:$0xff] }
 0x66b   :  { %v8574_v59 = vld [vmem:[#allocation77_spill] sm:$0xff] }
 0x66c   :  { %5097 = vtanh.f32 %v2669_v27  ;;  %v8575_v27 = vld [vmem:[#allocation79_spill] sm:$0xff]  ;;  %v8576_v18 = vld [vmem:[#allocation81_spill] sm:$0xff] }
 0x679   :  { %v5098_v45 = vpop.eup %5097 }
 0x67a   :  { %v2672_v16 = vmul.f32 %v5098_v45, %v2671_v60  ;;  %v8577_v60 = vld [vmem:[#allocation82_spill] sm:$0xff]  ;;  %v8578_v45 = vld [vmem:[#allocation83_spill] sm:$0xff] }
 0x67c   :  { %v6775_v47 = vadd.f32 %v2673_v46, %v2672_v16  ;;  %v8579_v16 = vld [vmem:[#allocation84_spill] sm:$0xff]  ;;  %v8580_v46 = vld [vmem:[#allocation85_spill] sm:$0xff] }
 0x67e   :  { %v2676_v39 = vpack.c.bf16 %v6775_v47, %v6775_v47 }
 0x680   :  { %2709 = vmatprep.mubr.bf16.mxu0 %v2676_v39  ;;  %2750 = vmatprep.mubr.bf16.mxu1 %v2676_v39 }
 0x681   :  { %2710 = vmatmul.mubr.bf16.vlgmr.msra.gmra.mxu0 %v6712_v61  ;;  %2751 = vmatmul.mubr.bf16.vlgmr.msra.gmra.mxu1 %v6712_v61 }
 0x682   :  { %2760 = vmatpush1.bf16.msra.mxu0 %v6530_v9  ;;  %2791 = vmatprep.mubr.bf16.mxu0 %v2676_v39  ;;  %v8581_v39 = vld [vmem:[#allocation86_spill] sm:$0xff] }
 0x683   :  { %2761 = vmatprep.subr.bf16.mxu0 %v6533_v58  ;;  %2829 = vmatpush1.bf16.msra.mxu1 %v6536_v42 }
 0x684   :  { %2830 = vmatprep.subr.bf16.mxu1 %v6539_v4  ;;  %2860 = vmatprep.mubr.bf16.mxu1 %v8396_v31 }
 0x686   :  { %2762 = vmatpush1.bf16.msra.mxu0 %v6543_v19 }
 0x687   :  { %2763 = vmatprep.subr.bf16.mxu0 %v6546_v40  ;;  %2831 = vmatpush1.bf16.msra.mxu1 %v6549_v7 }
 0x688   :  { %2832 = vmatprep.subr.bf16.mxu1 %v6552_v24 }
 0x68a   :  { %2764 = vmatpush1.bf16.msra.mxu0 %v6555_v38 }
 0x68b   :  { %2765 = vmatprep.subr.bf16.mxu0 %v6558_v20  ;;  %2833 = vmatpush1.bf16.msra.mxu1 %v6561_v28 }
 0x68c   :  { %2834 = vmatprep.subr.bf16.mxu1 %v6564_v1 }
 0x68e   :  { %2766 = vmatpush1.bf16.msra.mxu0 %v8562_v48 }
 0x68f   :  { %2767 = vmatprep.subr.bf16.mxu0 %v8563_v6  ;;  %2835 = vmatpush1.bf16.msra.mxu1 %v8564_v55 }
 0x690   :  { %2836 = vmatprep.subr.bf16.mxu1 %v8565_v57 }
 0x692   :  { %2768 = vmatpush1.bf16.msra.mxu0 %v8566_v14 }
 0x693   :  { %2769 = vmatprep.subr.bf16.mxu0 %v8567_v50  ;;  %2837 = vmatpush1.bf16.msra.mxu1 %v8568_v10 }
 0x694   :  { %2838 = vmatprep.subr.bf16.mxu1 %v8569_v63 }
 0x696   :  { %2770 = vmatpush1.bf16.msra.mxu0 %v8570_v62 }
 0x697   :  { %2771 = vmatprep.subr.bf16.mxu0 %v8571_v53  ;;  %2839 = vmatpush1.bf16.msra.mxu1 %v8572_v17  ;;  %v8582_v17 = vld [vmem:[#allocation87_spill] sm:$0xff] }
 0x698   :  { %2840 = vmatprep.subr.bf16.mxu1 %v8573_v11  ;;  %v8583_v11 = vld [vmem:[#allocation88_spill] sm:$0xff] }
 0x69a   :  { %2772 = vmatpush1.bf16.msra.mxu0 %v8574_v59  ;;  %v8584_v59 = vld [vmem:[#allocation89_spill] sm:$0xff] }
 0x69b   :  { %2773 = vmatprep.subr.bf16.mxu0 %v8575_v27  ;;  %2841 = vmatpush1.bf16.msra.mxu1 %v8576_v18  ;;  %v8585_v27 = vld [vmem:[#allocation90_spill] sm:$0xff]  ;;  %v8586_v18 = vld [vmem:[#allocation91_spill] sm:$0xff] }
 0x69c   :  { %2842 = vmatprep.subr.bf16.mxu1 %v8577_v60  ;;  %v8587_v60 = vld [vmem:[#allocation92_spill] sm:$0xff] }
 0x69e   :  { %2774 = vmatpush1.bf16.msra.mxu0 %v8578_v45  ;;  %v8588_v45 = vld [vmem:[#allocation93_spill] sm:$0xff] }
 0x69f   :  { %2775 = vmatprep.subr.bf16.mxu0 %v8579_v16  ;;  %2843 = vmatpush1.bf16.msra.mxu1 %v8580_v46 }
 0x6a0   :  { %4676 = vmatprep.subr.bf16.mxu1 %v8367_v44 }
 0x6a2   :  { %2776 = vmatpush2.bf16.msra.mxu0 %v8581_v39  ;;  %v8589_v39 = vld [vmem:[#allocation97_spill] sm:$0xff] }
 0x6a3   :  { %2777 = vmatprep.subr.bf16.mxu0 %v8582_v17  ;;  %v8590_v17 = vld [vmem:[#allocation98_spill] sm:$0xff] }
 0x6a6   :  { %2778 = vmatpush2.bf16.msra.mxu0 %v8583_v11  ;;  %v8591_v11 = vld [vmem:[#allocation99_spill] sm:$0xff] }
 0x6a7   :  { %2779 = vmatprep.subr.bf16.mxu0 %v8584_v59  ;;  %v6828_v59 = vld [vmem:[#allocation6 + $0x190] ss:$24 sps:$4 sm:$0xff]  }
 0x6a8   :  { %8592 = vst [vmem:[#allocation42_spill] sm:$0xff] %v6828_v59 }
 0x6aa   :  { %2780 = vmatpush2.bf16.msra.mxu0 %v8585_v27 }
 0x6ab   :  { %2781 = vmatprep.subr.bf16.mxu0 %v8586_v18  ;;  %v8593_v18 = vld [vmem:[#allocation27_spill] sm:$0xff] }
 0x6ae   :  { %2782 = vmatpush2.bf16.msra.mxu0 %v8587_v60  ;;  %v8601_v60 = vld [vmem:[#allocation18_spill] sm:$0xff] }
 0x6af   :  { %2783 = vmatprep.subr.bf16.mxu0 %v8588_v45  ;;  %v8594_v45 = vld [vmem:[#allocation29_spill] sm:$0xff] }
 0x6b2   :  { %2784 = vmatpush2.bf16.msra.mxu0 %v6649_v30  ;;  %v8595_v30 = vld [vmem:[#allocation38_spill] sm:$0xff] }
 0x6b3   :  { %2785 = vmatprep.subr.bf16.mxu0 %v6652_v3  ;;  %v8596_v3 = vld [vmem:[#allocation13_spill] sm:$0xff] }
 0x6b6   :  { %2786 = vmatpush2.bf16.msra.mxu0 %v6655_v33  ;;  %v8597_v33 = vld [vmem:[#allocation14_spill] sm:$0xff] }
 0x6b7   :  { %2787 = vmatprep.subr.bf16.mxu0 %v8589_v39  ;;  %v8598_v39 = vld [vmem:[#allocation15_spill] sm:$0xff] }
 0x6ba   :  { %2788 = vmatpush2.bf16.msra.mxu0 %v8590_v17  ;;  %v8599_v17 = vld [vmem:[#allocation16_spill] sm:$0xff] }
 0x6bb   :  { %2789 = vmatprep.subr.bf16.mxu0 %v8591_v11  ;;  %v8600_v11 = vld [vmem:[#allocation17_spill] sm:$0xff] }
 0x6be   :  { %2790 = vmatpush2.bf16.msra.mxu0 %v6828_v59  ;;  %v8602_v59 = vld [vmem:[#allocation19_spill] sm:$0xff] }
 0x6bf   :  { %2933 = vmatprep.subr.bf16.mxu0 %v8593_v18  ;;  %v8603_v18 = vld [vmem:[#allocation20_spill] sm:$0xff] }
 0x6c1   :  { %2792 = vmatmul.mubr.bf16.vlgmr.msra.gmra.mxu0 %v6712_v61  ;;  %v8604_v61 = vld [vmem:[#allocation21_spill] sm:$0xff] }
 0x6c2   :  { %2934 = vmatpush1.bf16.msra.mxu0 %v8594_v45  ;;  %v8605_v45 = vld [vmem:[#allocation22_spill] sm:$0xff] }
 0x6c3   :  { %2935 = vmatprep.subr.bf16.mxu0 %v8595_v30  ;;  %v8606_v30 = vld [vmem:[#allocation23_spill] sm:$0xff] }
 0x6c6   :  { %2936 = vmatpush1.bf16.msra.mxu0 %v8596_v3  ;;  %v8607_v3 = vld [vmem:[#allocation24_spill] sm:$0xff] }
 0x6c7   :  { %2937 = vmatprep.subr.bf16.mxu0 %v8597_v33  ;;  %v8608_v33 = vld [vmem:[#allocation25_spill] sm:$0xff] }
 0x6ca   :  { %2938 = vmatpush1.bf16.msra.mxu0 %v8598_v39  ;;  %v8609_v39 = vld [vmem:[#allocation26_spill] sm:$0xff] }
 0x6cb   :  { %2939 = vmatprep.subr.bf16.mxu0 %v8599_v17  ;;  %v8610_v17 = vld [vmem:[#allocation28_spill] sm:$0xff] }
 0x6ce   :  { %2940 = vmatpush1.bf16.msra.mxu0 %v8600_v11  ;;  %v8611_v11 = vld [vmem:[#allocation30_spill] sm:$0xff] }
 0x6cf   :  { %2941 = vmatprep.subr.bf16.mxu0 %v8601_v60  ;;  %v8612_v60 = vld [vmem:[#allocation31_spill] sm:$0xff] }
 0x6d2   :  { %2942 = vmatpush1.bf16.msra.mxu0 %v8602_v59  ;;  %v8613_v59 = vld [vmem:[#allocation32_spill] sm:$0xff] }
 0x6d3   :  { %2943 = vmatprep.subr.bf16.mxu0 %v8603_v18  ;;  %v8614_v18 = vld [vmem:[#allocation33_spill] sm:$0xff] }
 0x6d6   :  { %2944 = vmatpush1.bf16.msra.mxu0 %v8604_v61  ;;  %v8615_v61 = vld [vmem:[#allocation34_spill] sm:$0xff] }
 0x6d7   :  { %2945 = vmatprep.subr.bf16.mxu0 %v8605_v45  ;;  %v8616_v45 = vld [vmem:[#allocation35_spill] sm:$0xff] }
 0x6da   :  { %2946 = vmatpush1.bf16.msra.mxu0 %v8606_v30  ;;  %v8617_v30 = vld [vmem:[#allocation36_spill] sm:$0xff] }
 0x6db   :  { %2947 = vmatprep.subr.bf16.mxu0 %v8607_v3  ;;  %v8618_v3 = vld [vmem:[#allocation37_spill] sm:$0xff] }
 0x6de   :  { %2948 = vmatpush1.bf16.msra.mxu0 %v8608_v33  ;;  %v8619_v33 = vld [vmem:[#allocation52_spill] sm:$0xff] }
 0x6df   :  { %2949 = vmatprep.subr.bf16.mxu0 %v8609_v39  ;;  %v8620_v39 = vld [vmem:[#allocation39_spill] sm:$0xff] }
 0x6e2   :  { %2950 = vmatpush2.bf16.msra.mxu0 %v8610_v17  ;;  %v8621_v17 = vld [vmem:[#allocation40_spill] sm:$0xff] }
 0x6e3   :  { %2951 = vmatprep.subr.bf16.mxu0 %v8611_v11  ;;  %v8622_v11 = vld [vmem:[#allocation54_spill] sm:$0xff] }
 0x6e6   :  { %2952 = vmatpush2.bf16.msra.mxu0 %v8612_v60  ;;  %v8623_v60 = vld [vmem:[#allocation56_spill] sm:$0xff] }
 0x6e7   :  { %2953 = vmatprep.subr.bf16.mxu0 %v8613_v59  ;;  %v8624_v59 = vld [vmem:[#allocation41_spill] sm:$0xff] }
 0x6ea   :  { %2954 = vmatpush2.bf16.msra.mxu0 %v8614_v18  ;;  %v8625_v18 = vld [vmem:[#allocation100_spill] sm:$0xff] }
 0x6eb   :  { %2955 = vmatprep.subr.bf16.mxu0 %v8615_v61  ;;  %v2675_v61 = vld [vmem:[#allocation2 + $0x12] sm:$0x3f] }
 0x6ee   :  { %2956 = vmatpush2.bf16.msra.mxu0 %v8616_v45 }
 0x6ef   :  { %2957 = vmatprep.subr.bf16.mxu0 %v8617_v30 }
 0x6f2   :  { %2958 = vmatpush2.bf16.msra.mxu0 %v8618_v3 }
 0x6f3   :  { %2959 = vmatprep.subr.bf16.mxu0 %v8619_v33 }
 0x6f6   :  { %2960 = vmatpush2.bf16.msra.mxu0 %v8620_v39 }
 0x6f7   :  { %2961 = vmatprep.subr.bf16.mxu0 %v8621_v17  ;;  %v2808_v17 = vrot.slane %v2675_v61, 2 }
 0x6fa   :  { %2962 = vmatpush2.bf16.msra.mxu0 %v8622_v11 }
 0x6fb   :  { %2963 = vmatprep.subr.bf16.mxu0 %v8623_v60 }
 0x6fe   :  { %2964 = vmatpush2.bf16.msra.mxu0 %v8624_v59 }
 0x6ff   :  { %3015 = vmatprep.subr.bf16.mxu0 %v8625_v18 }
 0x741   :  { %v2711_v45 = vpop.f32.mrf.mxu0  ;;  %v2752_v27 = vpop.f32.mrf.mxu1 }
 0x742   :  { %v2800_v30 = vadd.f32 %v2711_v45, %v2675_v61  ;;  %v6870_v45 = vld [vmem:[%s7881_s6] ss:$0 sm:$0xff] }
 0x743   :  { %v2713_v46 = vpop.f32.mrf.mxu0  ;;  %v6865_v3 = vpop.f32.mrf.mxu1 }
 0x744   :  { %v4477_v33 = vmul.f32 -1.442695, %v2800_v30  ;;  %v2810_v62 = vadd.f32 %v2808_v17, %v2713_v46 }
 0x745   :  { %v2715_v16 = vpop.f32.mrf.mxu0  ;;  %v2756_v39 = vpop.f32.mrf.mxu1 }
 0x746   :  { %5099 = vpow2.f32 %v4477_v33  ;;  %v4478_v60 = vmul.f32 -1.442695, %v2810_v62  ;;  %v2817_v16 = vadd.f32 %v6870_v45, %v2752_v27  ;;  %v2819_v33 = vrot.slane %v2675_v61, 4  ;;  %v6881_v27 = vld [vmem:[#allocation8 + $0xb0] ss:$12 sps:$4 sm:$0xff]  }
 0x747   :  { %v2716_v53 = vpop.f32.mrf.mxu0  ;;  %v2757_v11 = vpop.f32.mrf.mxu1 }
 0x748   :  { %5101 = vpow2.f32 %v4478_v60 }
 0x753   :  { %v5100_v59 = vpop.eup %5099 }
 0x754   :  { %v2804_v63 = vadd.f32 1.0, %v5100_v59 }
 0x755   :  { %v5102_v18 = vpop.eup %5101 }
 0x756   :  { %5103 = vrcp.f32 %v2804_v63  ;;  %v2814_v10 = vadd.f32 1.0, %v5102_v18 }
 0x758   :  { %5105 = vrcp.f32 %v2814_v10 }
 0x763   :  { %v5104_v30 = vpop.eup %5103 }
 0x764   :  { %v2818_v39 = vmul.f32 %v5104_v30, %v2817_v16  ;;  %v6895_v16 = vld [vmem:[#allocation8 + $0x80] ss:$12 sps:$4 sm:$0xff]  }
 0x765   :  { %v5106_v62 = vpop.eup %5105 }
 0x766   :  { %v2821_v53 = vadd.f32 %v2819_v33, %v2818_v39  ;;  %v2823_v46 = vsub.f32 1.0, %v5106_v62  ;;  %v2825_v63 = vmul.f32 %v5106_v62, %v6708_v29  ;;  %v6889_v29 = vld [vmem:[#allocation8 + $0x98] ss:$12 sps:$4 sm:$0xff]   ;;  %v6899_v33 = vld [vmem:[#allocation8 + $0x68] ss:$12 sps:$4 sm:$0xff]  }
 0x767   :  { %v6903_v39 = vld [vmem:[#allocation8 + $0x50] ss:$12 sps:$4 sm:$0xff]   ;;  %v6911_v62 = vld [vmem:[#allocation8 + $0x20] ss:$12 sps:$4 sm:$0xff]  }
 0x768   :  { %5107 = vtanh.f32 %v2821_v53  ;;  %v6907_v53 = vld [vmem:[#allocation8 + $0x38] ss:$12 sps:$4 sm:$0xff]  }
 0x775   :  { %v5108_v17 = vpop.eup %5107 }
 0x776   :  { %v2824_v11 = vmul.f32 %v5108_v17, %v2823_v46  ;;  %v6915_v46 = vld [vmem:[#allocation8 + $0x8] ss:$12 sps:$4 sm:$0xff]  }
 0x777   :  { %8626 = vst [vmem:[#allocation58_spill] sm:$0xff] %v6915_v46  ;;  %v6918_v17 = vld [vmem:[#allocation6 + $0x15c] ss:$24 sps:$4 sm:$0xff]  }
 0x778   :  { %v6874_v18 = vadd.f32 %v2825_v63, %v2824_v11  ;;  %8627 = vst [vmem:[#allocation60_spill] sm:$0xff] %v6918_v17  ;;  %v6922_v11 = vld [vmem:[#allocation6 + $0x158] ss:$24 sps:$4 sm:$0xff]   ;;  %v6925_v63 = vld [vmem:[#allocation6 + $0x12c] ss:$24 sps:$4 sm:$0xff]  }
 0x779   :  { %8628 = vst [vmem:[#allocation43_spill] sm:$0xff] %v6922_v11  ;;  %8629 = vst [vmem:[#allocation44_spill] sm:$0xff] %v6925_v63 }
 0x77a   :  { %v6878_v60 = vpack.c.bf16 %v6874_v18, %v6874_v18 }
 0x77c   :  { %2861 = vmatmul.mubr.bf16.vlgmr.msra.gmra.mxu1 %v6878_v60 }
 0x77d   :  { %4677 = vmatpush3.bf16.msra.mxu1 %v6881_v27  ;;  %4692 = vmatprep.mubr.msk.bf16.mxu1 %vm5551_vm1, %v8367_v44 }
 0x77e   :  { %4678 = vmatprep.subr.bf16.mxu1 %v8367_v44 }
 0x781   :  { %v6887_v10 = vpop.f32.mrf.mxu0  ;;  %4679 = vmatpush3.bf16.msra.mxu1 %v6889_v29 }
 0x782   :  { %4680 = vmatprep.subr.bf16.mxu1 %v8367_v44 }
 0x783   :  { %v6893_v61 = vpop.f32.mrf.mxu0 }
 0x785   :  { %v2797_v59 = vpop.f32.mrf.mxu0  ;;  %4681 = vmatpush3.bf16.msra.mxu1 %v6895_v16 }
 0x786   :  { %4682 = vmatprep.subr.bf16.mxu1 %v8367_v44  ;;  %v6928_v59 = vld [vmem:[#allocation6 + $0x128] ss:$24 sps:$4 sm:$0xff]  }
 0x787   :  { %v2798_v30 = vpop.f32.mrf.mxu0 }
 0x788   :  { %v6931_v30 = vld [vmem:[#allocation6 + $0xfc] ss:$24 sps:$4 sm:$0xff]  }
 0x789   :  { %4683 = vmatpush3.bf16.msra.mxu1 %v6899_v33 }
 0x78a   :  { %4684 = vmatprep.subr.bf16.mxu1 %v8367_v44 }
 0x78d   :  { %4685 = vmatpush3.bf16.msra.mxu1 %v6903_v39 }
 0x78e   :  { %4686 = vmatprep.subr.bf16.mxu1 %v8367_v44 }
 0x791   :  { %4687 = vmatpush3.bf16.msra.mxu1 %v6907_v53 }
 0x792   :  { %4688 = vmatprep.subr.bf16.mxu1 %v8367_v44 }
 0x795   :  { %4689 = vmatpush3.bf16.msra.mxu1 %v6911_v62 }
 0x796   :  { %4690 = vmatprep.subr.bf16.mxu1 %v8367_v44 }
 0x799   :  { %4691 = vmatpush3.bf16.msra.mxu1 %v6915_v46  ;;  %v6934_v46 = vld [vmem:[#allocation6 + $0xf8] ss:$24 sps:$4 sm:$0xff]  }
 0x79a   :  { %2974 = vmatprep.subr.bf16.mxu1 %v6918_v17  ;;  %v6937_v17 = vld [vmem:[#allocation6 + $0xcc] ss:$24 sps:$4 sm:$0xff]  }
 0x79c   :  { %4693 = vmatmul.mubr.bf16.vlgmr.msra.gmra.mxu1 %v6878_v60 }
 0x79d   :  { %2975 = vmatpush1.bf16.msra.mxu1 %v6922_v11  ;;  %v6940_v11 = vld [vmem:[#allocation6 + $0xc8] ss:$24 sps:$4 sm:$0xff]  }
 0x79e   :  { %2976 = vmatprep.subr.bf16.mxu1 %v6925_v63  ;;  %8630 = vst [vmem:[#allocation62_spill] sm:$0xff] %v6940_v11  ;;  %v6943_v63 = vld [vmem:[#allocation6 + $0x9c] ss:$24 sps:$4 sm:$0xff]  }
 0x79f   :  { %8631 = vst [vmem:[#allocation64_spill] sm:$0xff] %v6943_v63 }
 0x7a1   :  { %2977 = vmatpush1.bf16.msra.mxu1 %v6928_v59 }
 0x7a2   :  { %2978 = vmatprep.subr.bf16.mxu1 %v6931_v30 }
 0x7a5   :  { %2979 = vmatpush1.bf16.msra.mxu1 %v6934_v46 }
 0x7a6   :  { %2980 = vmatprep.subr.bf16.mxu1 %v6937_v17 }
 0x7a9   :  { %2981 = vmatpush1.bf16.msra.mxu1 %v6940_v11 }
 0x7aa   :  { %2982 = vmatprep.subr.bf16.mxu1 %v6943_v63 }
 0x7ad   :  { %2983 = vmatpush1.bf16.msra.mxu1 %v6444_v5  ;;  %v8632_v5 = vld [vmem:[#allocation51_spill] sm:$0xff] }
 0x7ae   :  { %2984 = vmatprep.subr.bf16.mxu1 %v6447_v21  ;;  %v8633_v21 = vld [vmem:[#allocation53_spill] sm:$0xff] }
 0x7b1   :  { %2985 = vmatpush1.bf16.msra.mxu1 %v8540_v13  ;;  %v8634_v13 = vld [vmem:[#allocation78_spill] sm:$0xff] }
 0x7b2   :  { %2986 = vmatprep.subr.bf16.mxu1 %v8541_v34 }
 0x7b5   :  { %2987 = vmatpush1.bf16.msra.mxu1 %v8542_v2 }
 0x7b6   :  { %2988 = vmatprep.subr.bf16.mxu1 %v8543_v26 }
 0x7b9   :  { %2989 = vmatpush1.bf16.msra.mxu1 %v8544_v37 }
 0x7ba   :  { %2990 = vmatprep.subr.bf16.mxu1 %v8545_v36 }
 0x7bd   :  { %2991 = vmatpush2.bf16.msra.mxu1 %v8546_v54 }
 0x7be   :  { %2992 = vmatprep.subr.bf16.mxu1 %v8547_v41 }
 0x7c1   :  { %2993 = vmatpush2.bf16.msra.mxu1 %v8548_v23 }
 0x7c2   :  { %2994 = vmatprep.subr.bf16.mxu1 %v8549_v56 }
 0x7c5   :  { %2995 = vmatpush2.bf16.msra.mxu1 %v8550_v15 }
 0x7c6   :  { %2996 = vmatprep.subr.bf16.mxu1 %v8551_v52 }
 0x7c9   :  { %2997 = vmatpush2.bf16.msra.mxu1 %v8552_v25 }
 0x7ca   :  { %2998 = vmatprep.subr.bf16.mxu1 %v8553_v43 }
 0x7cd   :  { %2999 = vmatpush2.bf16.msra.mxu1 %v8554_v0 }
 0x7ce   :  { %3000 = vmatprep.subr.bf16.mxu1 %v8555_v8 }
 0x7d1   :  { %3001 = vmatpush2.bf16.msra.mxu1 %v8556_v35 }
 0x7d2   :  { %3002 = vmatprep.subr.bf16.mxu1 %v8557_v49  ;;  %v6977_v49 = vld [vmem:[%s7882_s7] ss:$0 sm:$0xff] }
 0x7d5   :  { %3003 = vmatpush2.bf16.msra.mxu1 %v8558_v51  ;;  %v2923_v51 = vadd.f32 %v6977_v49, %v6893_v61 }
 0x7d6   :  { %3004 = vmatprep.subr.bf16.mxu1 %v8632_v5 }
 0x7d9   :  { %3005 = vmatpush2.bf16.msra.mxu1 %v8633_v21 }
 0x7da   :  { %3084 = vmatprep.subr.bf16.mxu1 %v8634_v13 }
 0x83c   :  { %v2862_v34 = vpop.f32.mrf.mxu1 }
 0x83d   :  { %v2863_v2 = vadd.f32 %v2862_v34, %v6232_v22 }
 0x83e   :  { %v2864_v26 = vpop.f32.mrf.mxu1 }
 0x83f   :  { %v2909_v37 = vadd.f32 %v2863_v2, %v6865_v3  ;;  %v2865_v41 = vadd.f32 %v2864_v26, %v6235_v32 }
 0x840   :  { %v2866_v36 = vpop.f32.mrf.mxu1 }
 0x841   :  { %v4479_v54 = vmul.f32 -1.442695, %v2909_v37  ;;  %v2916_v56 = vadd.f32 %v2865_v41, %v6887_v10 }
 0x842   :  { %v2867_v23 = vpop.f32.mrf.mxu1 }
 0x843   :  { %5109 = vpow2.f32 %v4479_v54  ;;  %v4480_v15 = vmul.f32 -1.442695, %v2916_v56  ;;  %v8654_v23 = vld [vmem:[#allocation92_spill] sm:$0xff]  ;;  %v8655_v56 = vld [vmem:[#allocation93_spill] sm:$0xff] }
 0x845   :  { %5111 = vpow2.f32 %v4480_v15  ;;  %v8656_v15 = vld [vmem:[#allocation94_spill] sm:$0xff] }
 0x850   :  { %v5110_v52 = vpop.eup %5109 }
 0x851   :  { %v2913_v25 = vadd.f32 1.0, %v5110_v52  ;;  %v8657_v52 = vld [vmem:[#allocation95_spill] sm:$0xff] }
 0x852   :  { %v5112_v43 = vpop.eup %5111 }
 0x853   :  { %5113 = vrcp.f32 %v2913_v25  ;;  %v2920_v8 = vadd.f32 1.0, %v5112_v43  ;;  %v8658_v25 = vld [vmem:[#allocation96_spill] sm:$0xff]  ;;  %v8659_v43 = vld [vmem:[#allocation97_spill] sm:$0xff] }
 0x855   :  { %5115 = vrcp.f32 %v2920_v8  ;;  %v8661_v8 = vld [vmem:[#allocation99_spill] sm:$0xff] }
 0x85c   :  { %v2903_v0 = vpop.f32.mrf.mxu1 }
 0x85d   :  { %v2904_v10 = vadd.f32 %v2903_v0, %v6246_v12  ;;  %v8660_v0 = vld [vmem:[#allocation98_spill] sm:$0xff] }
 0x85e   :  { %v4694_v35 = vpop.f32.mrf.mxu1 }
 0x85f   :  { %v8662_v35 = vld [vmem:[#allocation42_spill] sm:$0xff] }
 0x860   :  { %v5114_v3 = vpop.eup %5113  ;;  %v2906_v5 = vpop.f32.mrf.mxu1 }
 0x861   :  { %v2924_v21 = vmul.f32 %v5114_v3, %v2923_v51  ;;  %v7037_v51 = vld [vmem:[#allocation6 + $0x154] ss:$24 sps:$4 sm:$0xff]   ;;  %v7041_v3 = vld [vmem:[#allocation6 + $0x150] ss:$24 sps:$4 sm:$0xff]   ;;  %v7044_v5 = vld [vmem:[#allocation6 + $0x124] ss:$24 sps:$4 sm:$0xff]  }
 0x862   :  { %v4695_v13 = vpop.f32.mrf.mxu1  ;;  %v5116_v2 = vpop.eup %5115  ;;  %8663 = vst [vmem:[#allocation45_spill] sm:$0xff] %v7041_v3  ;;  %8664 = vst [vmem:[#allocation46_spill] sm:$0xff] %v7044_v5 }
 0x863   :  { %v2925_v34 = vadd.f32 %v2924_v21, %v2904_v10  ;;  %v2927_v26 = vsub.f32 1.0, %v5116_v2  ;;  %v2929_v54 = vmul.f32 %v5116_v2, %v6775_v47  ;;  %v8647_v47 = vld [vmem:[#allocation85_spill] sm:$0xff]  ;;  %v7050_v21 = vld [vmem:[#allocation6 + $0xf4] ss:$24 sps:$4 sm:$0xff]  }
 0x864   :  { %v7047_v10 = vld [vmem:[#allocation6 + $0x120] ss:$24 sps:$4 sm:$0xff]   ;;  %8666 = vst [vmem:[#allocation68_spill] sm:$0xff] %v7050_v21  ;;  %v7053_v13 = vld [vmem:[#allocation6 + $0xf0] ss:$24 sps:$4 sm:$0xff]  }
 0x865   :  { %5117 = vtanh.f32 %v2925_v34  ;;  %8665 = vst [vmem:[#allocation66_spill] sm:$0xff] %v7047_v10  ;;  %8667 = vst [vmem:[#allocation47_spill] sm:$0xff] %v7053_v13  ;;  %v7059_v34 = vld [vmem:[#allocation6 + $0xc0] ss:$24 sps:$4 sm:$0xff]   ;;  %v7062_v2 = vld [vmem:[#allocation6 + $0x94] ss:$24 sps:$4 sm:$0xff]  }
 0x866   :  { %8669 = vst [vmem:[#allocation70_spill] sm:$0xff] %v7059_v34  ;;  %8670 = vst [vmem:[#allocation72_spill] sm:$0xff] %v7062_v2 }
 0x872   :  { %v5118_v37 = vpop.eup %5117 }
 0x873   :  { %v2928_v36 = vmul.f32 %v5118_v37, %v2927_v26  ;;  %v7065_v26 = vld [vmem:[#allocation6 + $0x90] ss:$24 sps:$4 sm:$0xff]   ;;  %v7068_v37 = vld [vmem:[#allocation6 + $0x64] ss:$24 sps:$4 sm:$0xff]  }
 0x874   :  { %8671 = vst [vmem:[#allocation49_spill] sm:$0xff] %v7065_v26  ;;  %8672 = vst [vmem:[#allocation50_spill] sm:$0xff] %v7068_v37 }
 0x875   :  { %v6983_v41 = vadd.f32 %v2929_v54, %v2928_v36  ;;  %v7071_v36 = vld [vmem:[#allocation6 + $0x60] ss:$24 sps:$4 sm:$0xff]   ;;  %v7074_v54 = vld [vmem:[#allocation6 + $0x34] ss:$24 sps:$4 sm:$0xff]  }
 0x876   :  { %8673 = vst [vmem:[#allocation74_spill] sm:$0xff] %v7071_v36  ;;  %8674 = vst [vmem:[#allocation76_spill] sm:$0xff] %v7074_v54 }
 0x877   :  { %v2932_v61 = vpack.c.bf16 %v6983_v41, %v6983_v41 }
 0x879   :  { %2965 = vmatprep.mubr.bf16.mxu0 %v2932_v61  ;;  %3006 = vmatprep.mubr.bf16.mxu1 %v2932_v61 }
 0x87a   :  { %2966 = vmatmul.mubr.bf16.vlgmr.msra.gmra.mxu0 %v6878_v60  ;;  %3007 = vmatmul.mubr.bf16.vlgmr.msra.gmra.mxu1 %v6878_v60 }
 0x87b   :  { %3016 = vmatpush1.bf16.msra.mxu0 %v6530_v9  ;;  %3047 = vmatprep.mubr.bf16.mxu0 %v2932_v61  ;;  %v8635_v9 = vld [vmem:[#allocation65_spill] sm:$0xff] }
 0x87c   :  { %3017 = vmatprep.subr.bf16.mxu0 %v6533_v58  ;;  %3085 = vmatpush1.bf16.msra.mxu1 %v6536_v42  ;;  %v8636_v58 = vld [vmem:[#allocation67_spill] sm:$0xff]  ;;  %v8637_v42 = vld [vmem:[#allocation69_spill] sm:$0xff] }
 0x87d   :  { %3086 = vmatprep.subr.bf16.mxu1 %v6539_v4  ;;  %3116 = vmatprep.mubr.bf16.mxu1 %v8396_v31  ;;  %v8638_v4 = vld [vmem:[#allocation71_spill] sm:$0xff] }
 0x87e   :  { %v7077_v61 = vld [vmem:[#allocation6 + $0x30] ss:$24 sps:$4 sm:$0xff]  }
 0x87f   :  { %3018 = vmatpush1.bf16.msra.mxu0 %v6543_v19  ;;  %v8639_v19 = vld [vmem:[#allocation73_spill] sm:$0xff]  ;;  %8675 = vst [vmem:[#allocation80_spill] sm:$0xff] %v7077_v61 }
 0x880   :  { %3019 = vmatprep.subr.bf16.mxu0 %v6546_v40  ;;  %3087 = vmatpush1.bf16.msra.mxu1 %v6549_v7  ;;  %v8640_v40 = vld [vmem:[#allocation75_spill] sm:$0xff]  ;;  %v8641_v7 = vld [vmem:[#allocation77_spill] sm:$0xff] }
 0x881   :  { %3088 = vmatprep.subr.bf16.mxu1 %v6552_v24  ;;  %v8642_v24 = vld [vmem:[#allocation79_spill] sm:$0xff] }
 0x883   :  { %3020 = vmatpush1.bf16.msra.mxu0 %v6555_v38  ;;  %v8643_v38 = vld [vmem:[#allocation81_spill] sm:$0xff] }
 0x884   :  { %3021 = vmatprep.subr.bf16.mxu0 %v6558_v20  ;;  %3089 = vmatpush1.bf16.msra.mxu1 %v6561_v28  ;;  %v8644_v20 = vld [vmem:[#allocation82_spill] sm:$0xff]  ;;  %v8645_v28 = vld [vmem:[#allocation83_spill] sm:$0xff] }
 0x885   :  { %3090 = vmatprep.subr.bf16.mxu1 %v6564_v1  ;;  %v8646_v1 = vld [vmem:[#allocation84_spill] sm:$0xff] }
 0x887   :  { %3022 = vmatpush1.bf16.msra.mxu0 %v8562_v48  ;;  %v8648_v48 = vld [vmem:[#allocation86_spill] sm:$0xff] }
 0x888   :  { %3023 = vmatprep.subr.bf16.mxu0 %v8563_v6  ;;  %3091 = vmatpush1.bf16.msra.mxu1 %v8564_v55  ;;  %v8649_v6 = vld [vmem:[#allocation87_spill] sm:$0xff]  ;;  %v8650_v55 = vld [vmem:[#allocation88_spill] sm:$0xff] }
 0x889   :  { %3092 = vmatprep.subr.bf16.mxu1 %v8565_v57  ;;  %v8651_v57 = vld [vmem:[#allocation89_spill] sm:$0xff] }
 0x88b   :  { %3024 = vmatpush1.bf16.msra.mxu0 %v8566_v14  ;;  %v8652_v14 = vld [vmem:[#allocation90_spill] sm:$0xff] }
 0x88c   :  { %3025 = vmatprep.subr.bf16.mxu0 %v8567_v50  ;;  %3093 = vmatpush1.bf16.msra.mxu1 %v8635_v9  ;;  %v8653_v50 = vld [vmem:[#allocation91_spill] sm:$0xff]  ;;  %v7080_v9 = vld [vmem:[#allocation6 + $0x4] ss:$24 sps:$4 sm:$0xff]  }
 0x88d   :  { %3094 = vmatprep.subr.bf16.mxu1 %v8636_v58  ;;  %8676 = vst [vmem:[#allocation55_spill] sm:$0xff] %v7080_v9  ;;  %v7083_v58 = vld [vmem:[#allocation6] ss:$24 sps:$4 sm:$0xff]  }
 0x88e   :  { %8677 = vst [vmem:[#allocation57_spill] sm:$0xff] %v7083_v58 }
 0x88f   :  { %3026 = vmatpush1.bf16.msra.mxu0 %v8637_v42  ;;  %v7086_v42 = vld [vmem:[#allocation6 + $0x2d4] ss:$24 sps:$4 sm:$0xff]  }
 0x890   :  { %3027 = vmatprep.subr.bf16.mxu0 %v8638_v4  ;;  %3095 = vmatpush1.bf16.msra.mxu1 %v8639_v19  ;;  %8678 = vst [vmem:[#allocation59_spill] sm:$0xff] %v7086_v42  ;;  %v7089_v4 = vld [vmem:[#allocation6 + $0x2d0] ss:$24 sps:$4 sm:$0xff]   ;;  %v7092_v19 = vld [vmem:[#allocation6 + $0x2a4] ss:$24 sps:$4 sm:$0xff]  }
 0x891   :  { %3096 = vmatprep.subr.bf16.mxu1 %v8640_v40  ;;  %8679 = vst [vmem:[#allocation61_spill] sm:$0xff] %v7089_v4  ;;  %8680 = vst [vmem:[#allocation63_spill] sm:$0xff] %v7092_v19  ;;  %v7095_v40 = vld [vmem:[#allocation6 + $0x2a0] ss:$24 sps:$4 sm:$0xff]  }
 0x892   :  { %8681 = vst [vmem:[#allocation27_spill] sm:$0xff] %v7095_v40 }
 0x893   :  { %3028 = vmatpush1.bf16.msra.mxu0 %v8641_v7  ;;  %v7098_v7 = vld [vmem:[#allocation6 + $0x274] ss:$24 sps:$4 sm:$0xff]  }
 0x894   :  { %3029 = vmatprep.subr.bf16.mxu0 %v8642_v24  ;;  %3097 = vmatpush1.bf16.msra.mxu1 %v8643_v38  ;;  %8682 = vst [vmem:[#allocation29_spill] sm:$0xff] %v7098_v7  ;;  %v7101_v24 = vld [vmem:[#allocation6 + $0x270] ss:$24 sps:$4 sm:$0xff]   ;;  %v7104_v38 = vld [vmem:[#allocation6 + $0x244] ss:$24 sps:$4 sm:$0xff]  }
 0x895   :  { %3098 = vmatprep.subr.bf16.mxu1 %v8644_v20  ;;  %8683 = vst [vmem:[#allocation38_spill] sm:$0xff] %v7101_v24  ;;  %8684 = vst [vmem:[#allocation13_spill] sm:$0xff] %v7104_v38  ;;  %v7107_v20 = vld [vmem:[#allocation6 + $0x240] ss:$24 sps:$4 sm:$0xff]  }
 0x896   :  { %8685 = vst [vmem:[#allocation14_spill] sm:$0xff] %v7107_v20 }
 0x897   :  { %3030 = vmatpush1.bf16.msra.mxu0 %v8645_v28  ;;  %v7110_v28 = vld [vmem:[#allocation6 + $0x214] ss:$24 sps:$4 sm:$0xff]  }
 0x898   :  { %3031 = vmatprep.subr.bf16.mxu0 %v8646_v1  ;;  %3099 = vmatpush1.bf16.msra.mxu1 %v8647_v47  ;;  %8686 = vst [vmem:[#allocation15_spill] sm:$0xff] %v7110_v28  ;;  %v7113_v1 = vld [vmem:[#allocation6 + $0x210] ss:$24 sps:$4 sm:$0xff]   ;;  %v7116_v47 = vld [vmem:[#allocation6 + $0x1e4] ss:$24 sps:$4 sm:$0xff]  }
 0x899   :  { %4696 = vmatprep.subr.bf16.mxu1 %v8367_v44  ;;  %8687 = vst [vmem:[#allocation16_spill] sm:$0xff] %v7113_v1  ;;  %8688 = vst [vmem:[#allocation17_spill] sm:$0xff] %v7116_v47 }
 0x89b   :  { %3032 = vmatpush2.bf16.msra.mxu0 %v8648_v48  ;;  %v7119_v48 = vld [vmem:[#allocation6 + $0x1e0] ss:$24 sps:$4 sm:$0xff]  }
 0x89c   :  { %3033 = vmatprep.subr.bf16.mxu0 %v8649_v6  ;;  %8689 = vst [vmem:[#allocation18_spill] sm:$0xff] %v7119_v48  ;;  %v7122_v6 = vld [vmem:[#allocation6 + $0x1b4] ss:$24 sps:$4 sm:$0xff]  }
 0x89d   :  { %8690 = vst [vmem:[#allocation19_spill] sm:$0xff] %v7122_v6 }
 0x89f   :  { %3034 = vmatpush2.bf16.msra.mxu0 %v8650_v55  ;;  %v7125_v55 = vld [vmem:[#allocation6 + $0x1b0] ss:$24 sps:$4 sm:$0xff]  }
 0x8a0   :  { %3035 = vmatprep.subr.bf16.mxu0 %v8651_v57  ;;  %8691 = vst [vmem:[#allocation20_spill] sm:$0xff] %v7125_v55  ;;  %v7128_v57 = vld [vmem:[#allocation6 + $0x184] ss:$24 sps:$4 sm:$0xff]  }
 0x8a1   :  { %8692 = vst [vmem:[#allocation21_spill] sm:$0xff] %v7128_v57 }
 0x8a3   :  { %3036 = vmatpush2.bf16.msra.mxu0 %v8652_v14  ;;  %v7131_v14 = vld [vmem:[#allocation6 + $0x180] ss:$24 sps:$4 sm:$0xff]  }
 0x8a4   :  { %3037 = vmatprep.subr.bf16.mxu0 %v8653_v50  ;;  %8693 = vst [vmem:[#allocation22_spill] sm:$0xff] %v7131_v14  ;;  %v8694_v50 = vld [vmem:[#allocation100_spill] sm:$0xff] }
 0x8a7   :  { %3038 = vmatpush2.bf16.msra.mxu0 %v8654_v23  ;;  %v2931_v23 = vld [vmem:[#allocation2 + $0x18] sm:$0x3f] }
 0x8a8   :  { %3039 = vmatprep.subr.bf16.mxu0 %v8655_v56 }
 0x8ab   :  { %3040 = vmatpush2.bf16.msra.mxu0 %v8656_v15 }
 0x8ac   :  { %3041 = vmatprep.subr.bf16.mxu0 %v8657_v52 }
 0x8af   :  { %3042 = vmatpush2.bf16.msra.mxu0 %v8658_v25 }
 0x8b0   :  { %3043 = vmatprep.subr.bf16.mxu0 %v8659_v43 }
 0x8b3   :  { %3044 = vmatpush2.bf16.msra.mxu0 %v8660_v0 }
 0x8b4   :  { %3045 = vmatprep.subr.bf16.mxu0 %v8661_v8 }
 0x8b7   :  { %3046 = vmatpush2.bf16.msra.mxu0 %v8662_v35 }
 0x8b8   :  { %3189 = vmatprep.subr.bf16.mxu0 %v7037_v51 }
 0x8ba   :  { %3048 = vmatmul.mubr.bf16.vlgmr.msra.gmra.mxu0 %v6878_v60  ;;  %v7056_v60 = vld [vmem:[#allocation6 + $0xc4] ss:$24 sps:$4 sm:$0xff]  }
 0x8bb   :  { %3190 = vmatpush1.bf16.msra.mxu0 %v7041_v3  ;;  %8668 = vst [vmem:[#allocation48_spill] sm:$0xff] %v7056_v60 }
 0x8bc   :  { %3191 = vmatprep.subr.bf16.mxu0 %v7044_v5 }
 0x8bf   :  { %3192 = vmatpush1.bf16.msra.mxu0 %v7047_v10 }
 0x8c0   :  { %3193 = vmatprep.subr.bf16.mxu0 %v7050_v21 }
 0x8c3   :  { %3194 = vmatpush1.bf16.msra.mxu0 %v7053_v13 }
 0x8c4   :  { %3195 = vmatprep.subr.bf16.mxu0 %v7056_v60 }
 0x8c7   :  { %3196 = vmatpush1.bf16.msra.mxu0 %v7059_v34 }
 0x8c8   :  { %3197 = vmatprep.subr.bf16.mxu0 %v7062_v2 }
 0x8cb   :  { %3198 = vmatpush1.bf16.msra.mxu0 %v7065_v26 }
 0x8cc   :  { %3199 = vmatprep.subr.bf16.mxu0 %v7068_v37 }
 0x8cf   :  { %3200 = vmatpush1.bf16.msra.mxu0 %v7071_v36 }
 0x8d0   :  { %3201 = vmatprep.subr.bf16.mxu0 %v7074_v54 }
 0x8d3   :  { %3202 = vmatpush1.bf16.msra.mxu0 %v7077_v61 }
 0x8d4   :  { %3203 = vmatprep.subr.bf16.mxu0 %v7080_v9 }
 0x8d7   :  { %3204 = vmatpush1.bf16.msra.mxu0 %v7083_v58 }
 0x8d8   :  { %3205 = vmatprep.subr.bf16.mxu0 %v7086_v42 }
 0x8db   :  { %3206 = vmatpush2.bf16.msra.mxu0 %v7089_v4 }
 0x8dc   :  { %3207 = vmatprep.subr.bf16.mxu0 %v7092_v19 }
 0x8df   :  { %3208 = vmatpush2.bf16.msra.mxu0 %v7095_v40 }
 0x8e0   :  { %3209 = vmatprep.subr.bf16.mxu0 %v7098_v7 }
 0x8e3   :  { %3210 = vmatpush2.bf16.msra.mxu0 %v7101_v24  ;;  %v3075_v24 = vrot.slane %v2931_v23, 4 }
 0x8e4   :  { %3211 = vmatprep.subr.bf16.mxu0 %v7104_v38 }
 0x8e7   :  { %3212 = vmatpush2.bf16.msra.mxu0 %v7107_v20 }
 0x8e8   :  { %3213 = vmatprep.subr.bf16.mxu0 %v7110_v28 }
 0x8eb   :  { %3214 = vmatpush2.bf16.msra.mxu0 %v7113_v1 }
 0x8ec   :  { %3215 = vmatprep.subr.bf16.mxu0 %v7116_v47 }
 0x8ef   :  { %3216 = vmatpush2.bf16.msra.mxu0 %v7119_v48 }
 0x8f0   :  { %3217 = vmatprep.subr.bf16.mxu0 %v7122_v6  ;;  %v3064_v6 = vrot.slane %v2931_v23, 2 }
 0x8f3   :  { %3218 = vmatpush2.bf16.msra.mxu0 %v7125_v55 }
 0x8f4   :  { %3219 = vmatprep.subr.bf16.mxu0 %v7128_v57 }
 0x8f7   :  { %3220 = vmatpush2.bf16.msra.mxu0 %v7131_v14 }
 0x8f8   :  { %3271 = vmatprep.subr.bf16.mxu0 %v8694_v50 }
 0x93a   :  { %v2967_v56 = vpop.f32.mrf.mxu0  ;;  %v3008_v15 = vpop.f32.mrf.mxu1 }
 0x93b   :  { %v3056_v52 = vadd.f32 %v2967_v56, %v2931_v23  ;;  %v3073_v56 = vadd.f32 %v6870_v45, %v3008_v15  ;;  %v8698_v23 = vld [vmem:[#allocation44_spill] sm:$0xff] }
 0x93c   :  { %v2969_v25 = vpop.f32.mrf.mxu0  ;;  %v7135_v43 = vpop.f32.mrf.mxu1  ;;  %v7177_v15 = vld [vmem:[#allocation6 + $0x98] ss:$24 sps:$4 sm:$0xff]  }
 0x93d   :  { %v4481_v0 = vmul.f32 -1.442695, %v3056_v52  ;;  %v3066_v47 = vadd.f32 %v3064_v6, %v2969_v25  ;;  %v8696_v6 = vld [vmem:[#allocation60_spill] sm:$0xff]  ;;  %8699 = vst [vmem:[#allocation23_spill] sm:$0xff] %v7177_v15  ;;  %v7180_v25 = vld [vmem:[#allocation6 + $0x6c] ss:$24 sps:$4 sm:$0xff]  }
 0x93e   :  { %v2971_v8 = vpop.f32.mrf.mxu0  ;;  %v3012_v55 = vpop.f32.mrf.mxu1  ;;  %8700 = vst [vmem:[#allocation24_spill] sm:$0xff] %v7180_v25 }
 0x93f   :  { %5119 = vpow2.f32 %v4481_v0  ;;  %v4482_v1 = vmul.f32 -1.442695, %v3066_v47  ;;  %v7183_v8 = vld [vmem:[#allocation6 + $0x68] ss:$24 sps:$4 sm:$0xff]  }
 0x940   :  { %v2972_v48 = vpop.f32.mrf.mxu0  ;;  %v3013_v57 = vpop.f32.mrf.mxu1  ;;  %8701 = vst [vmem:[#allocation25_spill] sm:$0xff] %v7183_v8 }
 0x941   :  { %5121 = vpow2.f32 %v4482_v1 }
 0x94c   :  { %v5120_v14 = vpop.eup %5119 }
 0x94d   :  { %v3060_v28 = vadd.f32 1.0, %v5120_v14  ;;  %v8697_v14 = vld [vmem:[#allocation43_spill] sm:$0xff] }
 0x94e   :  { %v5122_v50 = vpop.eup %5121 }
 0x94f   :  { %5123 = vrcp.f32 %v3060_v28  ;;  %v3070_v20 = vadd.f32 1.0, %v5122_v50  ;;  %v7186_v50 = vld [vmem:[#allocation6 + $0x3c] ss:$24 sps:$4 sm:$0xff]  }
 0x950   :  { %8702 = vst [vmem:[#allocation26_spill] sm:$0xff] %v7186_v50 }
 0x951   :  { %5125 = vrcp.f32 %v3070_v20  ;;  %v8695_v20 = vld [vmem:[#allocation58_spill] sm:$0xff] }
 0x95c   :  { %v5124_v38 = vpop.eup %5123 }
 0x95d   :  { %v3074_v7 = vmul.f32 %v5124_v38, %v3073_v56  ;;  %v7189_v56 = vld [vmem:[#allocation6 + $0x38] ss:$24 sps:$4 sm:$0xff]  }
 0x95e   :  { %v5126_v55 = vpop.eup %5125  ;;  %8703 = vst [vmem:[#allocation28_spill] sm:$0xff] %v7189_v56 }
 0x95f   :  { %v3077_v52 = vadd.f32 %v3075_v24, %v3074_v7  ;;  %v3079_v0 = vsub.f32 1.0, %v5126_v55  ;;  %v3081_v47 = vmul.f32 %v5126_v55, %v6874_v18  ;;  %v7195_v55 = vld [vmem:[#allocation6 + $0x8] ss:$24 sps:$4 sm:$0xff]  }
 0x960   :  { %8705 = vst [vmem:[#allocation31_spill] sm:$0xff] %v7195_v55 }
 0x961   :  { %5127 = vtanh.f32 %v3077_v52  ;;  %v7192_v52 = vld [vmem:[#allocation6 + $0xc] ss:$24 sps:$4 sm:$0xff]  }
 0x962   :  { %8704 = vst [vmem:[#allocation30_spill] sm:$0xff] %v7192_v52 }
 0x96e   :  { %v5128_v48 = vpop.eup %5127 }
 0x96f   :  { %v3080_v57 = vmul.f32 %v5128_v48, %v3079_v0  ;;  %v7198_v0 = vld [vmem:[#allocation6 + $0x2dc] ss:$24 sps:$4 sm:$0xff]   ;;  %v7201_v48 = vld [vmem:[#allocation6 + $0x2d8] ss:$24 sps:$4 sm:$0xff]  }
 0x970   :  { %8706 = vst [vmem:[#allocation32_spill] sm:$0xff] %v7198_v0  ;;  %8707 = vst [vmem:[#allocation33_spill] sm:$0xff] %v7201_v48 }
 0x971   :  { %v7139_v1 = vadd.f32 %v3081_v47, %v3080_v57  ;;  %v7204_v57 = vld [vmem:[#allocation6 + $0x2ac] ss:$24 sps:$4 sm:$0xff]   ;;  %v7207_v47 = vld [vmem:[#allocation6 + $0x2a8] ss:$24 sps:$4 sm:$0xff]  }
 0x972   :  { %8708 = vst [vmem:[#allocation34_spill] sm:$0xff] %v7204_v57  ;;  %8709 = vst [vmem:[#allocation35_spill] sm:$0xff] %v7207_v47 }
 0x973   :  { %v7143_v28 = vpack.c.bf16 %v7139_v1, %v7139_v1 }
 0x975   :  { %3117 = vmatmul.mubr.bf16.vlgmr.msra.gmra.mxu1 %v7143_v28 }
 0x976   :  { %4697 = vmatpush3.bf16.msra.mxu1 %v6881_v27  ;;  %4712 = vmatprep.mubr.msk.bf16.mxu1 %vm5551_vm1, %v8367_v44 }
 0x977   :  { %4698 = vmatprep.subr.bf16.mxu1 %v8367_v44 }
 0x97a   :  { %v7150_v7 = vpop.f32.mrf.mxu0  ;;  %4699 = vmatpush3.bf16.msra.mxu1 %v6889_v29 }
 0x97b   :  { %4700 = vmatprep.subr.bf16.mxu1 %v8367_v44 }
 0x97c   :  { %v7154_v18 = vpop.f32.mrf.mxu0 }
 0x97e   :  { %v3053_v24 = vpop.f32.mrf.mxu0  ;;  %4701 = vmatpush3.bf16.msra.mxu1 %v6895_v16 }
 0x97f   :  { %4702 = vmatprep.subr.bf16.mxu1 %v8367_v44  ;;  %v7210_v24 = vld [vmem:[#allocation6 + $0x27c] ss:$24 sps:$4 sm:$0xff]  }
 0x980   :  { %v3054_v38 = vpop.f32.mrf.mxu0  ;;  %8710 = vst [vmem:[#allocation36_spill] sm:$0xff] %v7210_v24 }
 0x981   :  { %v7213_v38 = vld [vmem:[#allocation6 + $0x278] ss:$24 sps:$4 sm:$0xff]  }
 0x982   :  { %4703 = vmatpush3.bf16.msra.mxu1 %v6899_v33  ;;  %8711 = vst [vmem:[#allocation37_spill] sm:$0xff] %v7213_v38 }
 0x983   :  { %4704 = vmatprep.subr.bf16.mxu1 %v8367_v44 }
 0x986   :  { %4705 = vmatpush3.bf16.msra.mxu1 %v6903_v39 }
 0x987   :  { %4706 = vmatprep.subr.bf16.mxu1 %v8367_v44 }
 0x98a   :  { %4707 = vmatpush3.bf16.msra.mxu1 %v6907_v53 }
 0x98b   :  { %4708 = vmatprep.subr.bf16.mxu1 %v8367_v44 }
 0x98e   :  { %4709 = vmatpush3.bf16.msra.mxu1 %v6911_v62 }
 0x98f   :  { %4710 = vmatprep.subr.bf16.mxu1 %v8367_v44 }
 0x992   :  { %4711 = vmatpush3.bf16.msra.mxu1 %v8695_v20 }
 0x993   :  { %3230 = vmatprep.subr.bf16.mxu1 %v8696_v6 }
 0x995   :  { %4713 = vmatmul.mubr.bf16.vlgmr.msra.gmra.mxu1 %v7143_v28 }
 0x996   :  { %3231 = vmatpush1.bf16.msra.mxu1 %v8697_v14 }
 0x997   :  { %3232 = vmatprep.subr.bf16.mxu1 %v8698_v23 }
 0x99a   :  { %3233 = vmatpush1.bf16.msra.mxu1 %v6928_v59 }
 0x99b   :  { %3234 = vmatprep.subr.bf16.mxu1 %v6931_v30 }
 0x99e   :  { %3235 = vmatpush1.bf16.msra.mxu1 %v6934_v46 }
 0x99f   :  { %3236 = vmatprep.subr.bf16.mxu1 %v6937_v17 }
 0x9a2   :  { %3237 = vmatpush1.bf16.msra.mxu1 %v6940_v11 }
 0x9a3   :  { %3238 = vmatprep.subr.bf16.mxu1 %v6943_v63 }
 0x9a6   :  { %3239 = vmatpush1.bf16.msra.mxu1 %v7177_v15 }
 0x9a7   :  { %3240 = vmatprep.subr.bf16.mxu1 %v7180_v25 }
 0x9aa   :  { %3241 = vmatpush1.bf16.msra.mxu1 %v7183_v8 }
 0x9ab   :  { %3242 = vmatprep.subr.bf16.mxu1 %v7186_v50 }
 0x9ae   :  { %3243 = vmatpush1.bf16.msra.mxu1 %v7189_v56 }
 0x9af   :  { %3244 = vmatprep.subr.bf16.mxu1 %v7192_v52 }
 0x9b2   :  { %3245 = vmatpush1.bf16.msra.mxu1 %v7195_v55 }
 0x9b3   :  { %3246 = vmatprep.subr.bf16.mxu1 %v7198_v0  ;;  %v7216_v0 = vld [vmem:[#allocation6 + $0x24c] ss:$24 sps:$4 sm:$0xff]  }
 0x9b4   :  { %8712 = vst [vmem:[#allocation52_spill] sm:$0xff] %v7216_v0 }
 0x9b6   :  { %3247 = vmatpush2.bf16.msra.mxu1 %v7201_v48  ;;  %v7219_v48 = vld [vmem:[#allocation6 + $0x248] ss:$24 sps:$4 sm:$0xff]  }
 0x9b7   :  { %3248 = vmatprep.subr.bf16.mxu1 %v7204_v57  ;;  %8713 = vst [vmem:[#allocation39_spill] sm:$0xff] %v7219_v48  ;;  %v7222_v57 = vld [vmem:[#allocation6 + $0x21c] ss:$24 sps:$4 sm:$0xff]  }
 0x9b8   :  { %8714 = vst [vmem:[#allocation40_spill] sm:$0xff] %v7222_v57 }
 0x9ba   :  { %3249 = vmatpush2.bf16.msra.mxu1 %v7207_v47  ;;  %v7225_v47 = vld [vmem:[#allocation6 + $0x218] ss:$24 sps:$4 sm:$0xff]  }
 0x9bb   :  { %3250 = vmatprep.subr.bf16.mxu1 %v7210_v24  ;;  %8715 = vst [vmem:[#allocation54_spill] sm:$0xff] %v7225_v47  ;;  %v7228_v24 = vld [vmem:[#allocation6 + $0x1ec] ss:$24 sps:$4 sm:$0xff]  }
 0x9bc   :  { %8716 = vst [vmem:[#allocation56_spill] sm:$0xff] %v7228_v24 }
 0x9be   :  { %3251 = vmatpush2.bf16.msra.mxu1 %v7213_v38  ;;  %v7231_v38 = vld [vmem:[#allocation6 + $0x1e8] ss:$24 sps:$4 sm:$0xff]  }
 0x9bf   :  { %3252 = vmatprep.subr.bf16.mxu1 %v7216_v0  ;;  %8717 = vst [vmem:[#allocation41_spill] sm:$0xff] %v7231_v38  ;;  %v7234_v0 = vld [vmem:[#allocation6 + $0x1bc] ss:$24 sps:$4 sm:$0xff]  }
 0x9c0   :  { %8718 = vst [vmem:[#allocation51_spill] sm:$0xff] %v7234_v0 }
 0x9c2   :  { %3253 = vmatpush2.bf16.msra.mxu1 %v7219_v48  ;;  %v7237_v48 = vld [vmem:[#allocation6 + $0x1b8] ss:$24 sps:$4 sm:$0xff]  }
 0x9c3   :  { %3254 = vmatprep.subr.bf16.mxu1 %v7222_v57  ;;  %8719 = vst [vmem:[#allocation53_spill] sm:$0xff] %v7237_v48  ;;  %v7240_v57 = vld [vmem:[#allocation6 + $0x18c] ss:$24 sps:$4 sm:$0xff]  }
 0x9c4   :  { %8720 = vst [vmem:[#allocation78_spill] sm:$0xff] %v7240_v57 }
 0x9c6   :  { %3255 = vmatpush2.bf16.msra.mxu1 %v7225_v47  ;;  %v7243_v47 = vld [vmem:[#allocation6 + $0x188] ss:$24 sps:$4 sm:$0xff]  }
 0x9c7   :  { %3256 = vmatprep.subr.bf16.mxu1 %v7228_v24  ;;  %8721 = vst [vmem:[#allocation65_spill] sm:$0xff] %v7243_v47  ;;  %v7246_v24 = vld [vmem:[#allocation8 + $0xac] ss:$12 sps:$4 sm:$0xff]  }
 0x9c8   :  { %8722 = vst [vmem:[#allocation67_spill] sm:$0xff] %v7246_v24 }
 0x9ca   :  { %3257 = vmatpush2.bf16.msra.mxu1 %v7231_v38 }
 0x9cb   :  { %3258 = vmatprep.subr.bf16.mxu1 %v7234_v0 }
 0x9ce   :  { %3259 = vmatpush2.bf16.msra.mxu1 %v7237_v48 }
 0x9cf   :  { %3260 = vmatprep.subr.bf16.mxu1 %v7240_v57 }
 0x9d2   :  { %3261 = vmatpush2.bf16.msra.mxu1 %v7243_v47 }
 0x9d3   :  { %3340 = vmatprep.subr.bf16.mxu1 %v7246_v24 }
 0xa35   :  { %v3118_v38 = vpop.f32.mrf.mxu1 }
 0xa36   :  { %v3119_v55 = vadd.f32 %v3118_v38, %v6232_v22 }
 0xa37   :  { %v3120_v0 = vpop.f32.mrf.mxu1 }
 0xa38   :  { %v3165_v52 = vadd.f32 %v3119_v55, %v7135_v43  ;;  %v3121_v50 = vadd.f32 %v3120_v0, %v6235_v32  ;;  %v3179_v43 = vadd.f32 %v6977_v49, %v7154_v18 }
 0xa39   :  { %v3122_v56 = vpop.f32.mrf.mxu1 }
 0xa3a   :  { %v4483_v48 = vmul.f32 -1.442695, %v3165_v52  ;;  %v3172_v57 = vadd.f32 %v3121_v50, %v7150_v7 }
 0xa3b   :  { %v3123_v8 = vpop.f32.mrf.mxu1 }
 0xa3c   :  { %5129 = vpow2.f32 %v4483_v48  ;;  %v4484_v25 = vmul.f32 -1.442695, %v3172_v57 }
 0xa3e   :  { %5131 = vpow2.f32 %v4484_v25 }
 0xa49   :  { %v5130_v47 = vpop.eup %5129 }
 0xa4a   :  { %v3169_v15 = vadd.f32 1.0, %v5130_v47 }
 0xa4b   :  { %v5132_v24 = vpop.eup %5131 }
 0xa4c   :  { %5133 = vrcp.f32 %v3169_v15  ;;  %v3176_v11 = vadd.f32 1.0, %v5132_v24  ;;  %v7272_v24 = vld [vmem:[#allocation8 + $0x94] ss:$12 sps:$4 sm:$0xff]  }
 0xa4e   :  { %5135 = vrcp.f32 %v3176_v11  ;;  %v7263_v11 = vld [vmem:[#allocation6 + $0x160] ss:$24 sps:$4 sm:$0xff]  }
 0xa55   :  { %v3159_v63 = vpop.f32.mrf.mxu1 }
 0xa56   :  { %v3160_v8 = vadd.f32 %v3159_v63, %v6246_v12  ;;  %v7266_v63 = vld [vmem:[#allocation6 + $0x134] ss:$24 sps:$4 sm:$0xff]  }
 0xa57   :  { %v4714_v38 = vpop.f32.mrf.mxu1 }
 0xa58   :  { %v7276_v38 = vld [vmem:[#allocation6 + $0x130] ss:$24 sps:$4 sm:$0xff]  }
 0xa59   :  { %v5134_v56 = vpop.eup %5133  ;;  %v3162_v52 = vpop.f32.mrf.mxu1 }
 0xa5a   :  { %v3180_v55 = vmul.f32 %v5134_v56, %v3179_v43  ;;  %v7279_v43 = vld [vmem:[#allocation6 + $0x104] ss:$24 sps:$4 sm:$0xff]  }
 0xa5b   :  { %v4715_v0 = vpop.f32.mrf.mxu1  ;;  %v5136_v25 = vpop.eup %5135  ;;  %v7282_v56 = vld [vmem:[#allocation8 + $0x90] ss:$12 sps:$4 sm:$0xff]  }
 0xa5c   :  { %v3181_v7 = vadd.f32 %v3180_v55, %v3160_v8  ;;  %v3183_v50 = vsub.f32 1.0, %v5136_v25  ;;  %v3185_v57 = vmul.f32 %v5136_v25, %v6983_v41  ;;  %v7269_v41 = vld [vmem:[#allocation8 + $0xa8] ss:$12 sps:$4 sm:$0xff]   ;;  %v7288_v8 = vld [vmem:[#allocation6 + $0x100] ss:$24 sps:$4 sm:$0xff]  }
 0xa5d   :  { %v7285_v52 = vld [vmem:[#allocation8 + $0x7c] ss:$12 sps:$4 sm:$0xff]   ;;  %v7291_v55 = vld [vmem:[#allocation6 + $0xd4] ss:$24 sps:$4 sm:$0xff]   ;;  %v7294_v0 = vld [vmem:[#allocation8 + $0x78] ss:$12 sps:$4 sm:$0xff]  }
 0xa5e   :  { %5137 = vtanh.f32 %v3181_v7  ;;  %v7297_v7 = vld [vmem:[#allocation8 + $0x64] ss:$12 sps:$4 sm:$0xff]  }
 0xa5f   :  { %v7300_v25 = vld [vmem:[#allocation6 + $0xd0] ss:$24 sps:$4 sm:$0xff]  }
 0xa60   :  { %8723 = vst [vmem:[#allocation69_spill] sm:$0xff] %v7300_v25 }
 0xa6b   :  { %v5138_v48 = vpop.eup %5137 }
 0xa6c   :  { %v3184_v15 = vmul.f32 %v5138_v48, %v3183_v50  ;;  %v7303_v50 = vld [vmem:[#allocation6 + $0xa4] ss:$24 sps:$4 sm:$0xff]   ;;  %v7306_v48 = vld [vmem:[#allocation8 + $0x60] ss:$12 sps:$4 sm:$0xff]  }
 0xa6d   :  { %8724 = vst [vmem:[#allocation71_spill] sm:$0xff] %v7303_v50  ;;  %8725 = vst [vmem:[#allocation73_spill] sm:$0xff] %v7306_v48 }
 0xa6e   :  { %v7257_v47 = vadd.f32 %v3185_v57, %v3184_v15  ;;  %v7309_v15 = vld [vmem:[#allocation8 + $0x4c] ss:$12 sps:$4 sm:$0xff]  }
 0xa6f   :  { %8726 = vst [vmem:[#allocation75_spill] sm:$0xff] %v7309_v15  ;;  %v7312_v57 = vld [vmem:[#allocation6 + $0xa0] ss:$24 sps:$4 sm:$0xff]  }
 0xa70   :  { %v3188_v18 = vpack.c.bf16 %v7257_v47, %v7257_v47  ;;  %8727 = vst [vmem:[#allocation77_spill] sm:$0xff] %v7312_v57 }
 0xa72   :  { %3221 = vmatprep.mubr.bf16.mxu0 %v3188_v18  ;;  %3262 = vmatprep.mubr.bf16.mxu1 %v3188_v18 }
 0xa73   :  { %3222 = vmatmul.mubr.bf16.vlgmr.msra.gmra.mxu0 %v7143_v28  ;;  %3263 = vmatmul.mubr.bf16.vlgmr.msra.gmra.mxu1 %v7143_v28 }
 0xa74   :  { %3272 = vmatpush1.bf16.msra.mxu0 %v7263_v11  ;;  %3303 = vmatprep.mubr.bf16.mxu0 %v3188_v18  ;;  %v7315_v18 = vld [vmem:[#allocation6 + $0x74] ss:$24 sps:$4 sm:$0xff]  }
 0xa75   :  { %3273 = vmatprep.subr.bf16.mxu0 %v7266_v63  ;;  %3341 = vmatpush1.bf16.msra.mxu1 %v7269_v41  ;;  %8728 = vst [vmem:[#allocation79_spill] sm:$0xff] %v7315_v18 }
 0xa76   :  { %3342 = vmatprep.subr.bf16.mxu1 %v7272_v24  ;;  %3372 = vmatprep.mubr.bf16.mxu1 %v8396_v31 }
 0xa78   :  { %3274 = vmatpush1.bf16.msra.mxu0 %v7276_v38 }
 0xa79   :  { %3275 = vmatprep.subr.bf16.mxu0 %v7279_v43  ;;  %3343 = vmatpush1.bf16.msra.mxu1 %v7282_v56 }
 0xa7a   :  { %3344 = vmatprep.subr.bf16.mxu1 %v7285_v52 }
 0xa7c   :  { %3276 = vmatpush1.bf16.msra.mxu0 %v7288_v8 }
 0xa7d   :  { %3277 = vmatprep.subr.bf16.mxu0 %v7291_v55  ;;  %3345 = vmatpush1.bf16.msra.mxu1 %v7294_v0 }
 0xa7e   :  { %3346 = vmatprep.subr.bf16.mxu1 %v7297_v7 }
 0xa80   :  { %3278 = vmatpush1.bf16.msra.mxu0 %v7300_v25  ;;  %v7318_v25 = vld [vmem:[#allocation8 + $0x48] ss:$12 sps:$4 sm:$0xff]  }
 0xa81   :  { %3279 = vmatprep.subr.bf16.mxu0 %v7303_v50  ;;  %3347 = vmatpush1.bf16.msra.mxu1 %v7306_v48  ;;  %8729 = vst [vmem:[#allocation81_spill] sm:$0xff] %v7318_v25  ;;  %v7321_v50 = vld [vmem:[#allocation8 + $0x34] ss:$12 sps:$4 sm:$0xff]   ;;  %v7324_v48 = vld [vmem:[#allocation6 + $0x70] ss:$24 sps:$4 sm:$0xff]  }
 0xa82   :  { %3348 = vmatprep.subr.bf16.mxu1 %v7309_v15  ;;  %8730 = vst [vmem:[#allocation82_spill] sm:$0xff] %v7321_v50  ;;  %8731 = vst [vmem:[#allocation83_spill] sm:$0xff] %v7324_v48  ;;  %v7327_v15 = vld [vmem:[#allocation6 + $0x44] ss:$24 sps:$4 sm:$0xff]  }
 0xa83   :  { %8732 = vst [vmem:[#allocation84_spill] sm:$0xff] %v7327_v15 }
 0xa84   :  { %3280 = vmatpush1.bf16.msra.mxu0 %v7312_v57  ;;  %v7330_v57 = vld [vmem:[#allocation8 + $0x30] ss:$12 sps:$4 sm:$0xff]  }
 0xa85   :  { %3281 = vmatprep.subr.bf16.mxu0 %v7315_v18  ;;  %3349 = vmatpush1.bf16.msra.mxu1 %v7318_v25  ;;  %8733 = vst [vmem:[#allocation85_spill] sm:$0xff] %v7330_v57  ;;  %v7333_v18 = vld [vmem:[#allocation8 + $0x1c] ss:$12 sps:$4 sm:$0xff]   ;;  %v7336_v25 = vld [vmem:[#allocation6 + $0x40] ss:$24 sps:$4 sm:$0xff]  }
 0xa86   :  { %3350 = vmatprep.subr.bf16.mxu1 %v7321_v50  ;;  %8734 = vst [vmem:[#allocation86_spill] sm:$0xff] %v7333_v18  ;;  %8735 = vst [vmem:[#allocation87_spill] sm:$0xff] %v7336_v25  ;;  %v7339_v50 = vld [vmem:[#allocation6 + $0x14] ss:$24 sps:$4 sm:$0xff]  }
 0xa87   :  { %8736 = vst [vmem:[#allocation88_spill] sm:$0xff] %v7339_v50 }
 0xa88   :  { %3282 = vmatpush1.bf16.msra.mxu0 %v7324_v48  ;;  %v7342_v48 = vld [vmem:[#allocation8 + $0x18] ss:$12 sps:$4 sm:$0xff]  }
 0xa89   :  { %3283 = vmatprep.subr.bf16.mxu0 %v7327_v15  ;;  %3351 = vmatpush1.bf16.msra.mxu1 %v7330_v57  ;;  %8737 = vst [vmem:[#allocation89_spill] sm:$0xff] %v7342_v48  ;;  %v7345_v15 = vld [vmem:[#allocation8 + $0x4] ss:$12 sps:$4 sm:$0xff]  }
 0xa8a   :  { %3352 = vmatprep.subr.bf16.mxu1 %v7333_v18  ;;  %8738 = vst [vmem:[#allocation90_spill] sm:$0xff] %v7345_v15  ;;  %v7348_v57 = vld [vmem:[#allocation6 + $0x10] ss:$24 sps:$4 sm:$0xff]   ;;  %v7351_v18 = vld [vmem:[#allocation6 + $0x2e4] ss:$24 sps:$4 sm:$0xff]  }
 0xa8b   :  { %8739 = vst [vmem:[#allocation91_spill] sm:$0xff] %v7348_v57  ;;  %8740 = vst [vmem:[#allocation92_spill] sm:$0xff] %v7351_v18 }
 0xa8c   :  { %3284 = vmatpush1.bf16.msra.mxu0 %v7336_v25  ;;  %v7354_v25 = vld [vmem:[#allocation8] ss:$12 sps:$4 sm:$0xff]  }
 0xa8d   :  { %3285 = vmatprep.subr.bf16.mxu0 %v7339_v50  ;;  %3353 = vmatpush1.bf16.msra.mxu1 %v7342_v48  ;;  %8741 = vst [vmem:[#allocation93_spill] sm:$0xff] %v7354_v25  ;;  %v7358_v50 = vld [vmem:[#allocation6 + $0x2e0] ss:$24 sps:$4 sm:$0xff]   ;;  %v7361_v48 = vld [vmem:[#allocation6 + $0x2b4] ss:$24 sps:$4 sm:$0xff]  }
 0xa8e   :  { %3354 = vmatprep.subr.bf16.mxu1 %v7345_v15  ;;  %8742 = vst [vmem:[#allocation94_spill] sm:$0xff] %v7358_v50  ;;  %8743 = vst [vmem:[#allocation95_spill] sm:$0xff] %v7361_v48  ;;  %v7364_v15 = vld [vmem:[#allocation6 + $0x2b0] ss:$24 sps:$4 sm:$0xff]  }
 0xa8f   :  { %8744 = vst [vmem:[#allocation96_spill] sm:$0xff] %v7364_v15 }
 0xa90   :  { %3286 = vmatpush1.bf16.msra.mxu0 %v7348_v57  ;;  %v7367_v57 = vld [vmem:[#allocation6 + $0x284] ss:$24 sps:$4 sm:$0xff]  }
 0xa91   :  { %3287 = vmatprep.subr.bf16.mxu0 %v7351_v18  ;;  %3355 = vmatpush1.bf16.msra.mxu1 %v7354_v25  ;;  %8745 = vst [vmem:[#allocation97_spill] sm:$0xff] %v7367_v57  ;;  %v7370_v18 = vld [vmem:[#allocation6 + $0x280] ss:$24 sps:$4 sm:$0xff]   ;;  %v7373_v25 = vld [vmem:[#allocation6 + $0x254] ss:$24 sps:$4 sm:$0xff]  }
 0xa92   :  { %4716 = vmatprep.subr.bf16.mxu1 %v8367_v44  ;;  %8746 = vst [vmem:[#allocation98_spill] sm:$0xff] %v7370_v18  ;;  %8747 = vst [vmem:[#allocation99_spill] sm:$0xff] %v7373_v25 }
 0xa94   :  { %3288 = vmatpush2.bf16.msra.mxu0 %v7358_v50  ;;  %v7376_v50 = vld [vmem:[#allocation6 + $0x250] ss:$24 sps:$4 sm:$0xff]  }
 0xa95   :  { %3289 = vmatprep.subr.bf16.mxu0 %v7361_v48  ;;  %8748 = vst [vmem:[#allocation42_spill] sm:$0xff] %v7376_v50  ;;  %v7379_v48 = vld [vmem:[#allocation6 + $0x224] ss:$24 sps:$4 sm:$0xff]  }
 0xa96   :  { %8749 = vst [vmem:[#allocation100_spill] sm:$0xff] %v7379_v48 }
 0xa98   :  { %3290 = vmatpush2.bf16.msra.mxu0 %v7364_v15  ;;  %v7382_v15 = vld [vmem:[#allocation6 + $0x220] ss:$24 sps:$4 sm:$0xff]  }
 0xa99   :  { %3291 = vmatprep.subr.bf16.mxu0 %v7367_v57  ;;  %8750 = vst [vmem:[#allocation58_spill] sm:$0xff] %v7382_v15  ;;  %v7385_v57 = vld [vmem:[#allocation6 + $0x1f4] ss:$24 sps:$4 sm:$0xff]  }
 0xa9a   :  { %8751 = vst [vmem:[#allocation60_spill] sm:$0xff] %v7385_v57 }
 0xa9c   :  { %3292 = vmatpush2.bf16.msra.mxu0 %v7370_v18  ;;  %v7388_v18 = vld [vmem:[#allocation6 + $0x1f0] ss:$24 sps:$4 sm:$0xff]  }
 0xa9d   :  { %3293 = vmatprep.subr.bf16.mxu0 %v7373_v25  ;;  %8752 = vst [vmem:[#allocation43_spill] sm:$0xff] %v7388_v18  ;;  %v7391_v25 = vld [vmem:[#allocation6 + $0x1c4] ss:$24 sps:$4 sm:$0xff]  }
 0xa9e   :  { %8753 = vst [vmem:[#allocation44_spill] sm:$0xff] %v7391_v25 }
 0xaa0   :  { %3294 = vmatpush2.bf16.msra.mxu0 %v7376_v50  ;;  %v7394_v50 = vld [vmem:[#allocation6 + $0x1c0] ss:$24 sps:$4 sm:$0xff]  }
 0xaa1   :  { %3295 = vmatprep.subr.bf16.mxu0 %v7379_v48  ;;  %8754 = vst [vmem:[#allocation101_spill] sm:$0xff] %v7394_v50  ;;  %v7397_v48 = vld [vmem:[#allocation6 + $0x194] ss:$24 sps:$4 sm:$0xff]  }
 0xaa2   :  { %8755 = vst [vmem:[#allocation102_spill] sm:$0xff] %v7397_v48 }
 0xaa4   :  { %3296 = vmatpush2.bf16.msra.mxu0 %v7382_v15 }
 0xaa5   :  { %3297 = vmatprep.subr.bf16.mxu0 %v7385_v57 }
 0xaa8   :  { %3298 = vmatpush2.bf16.msra.mxu0 %v7388_v18 }
 0xaa9   :  { %3299 = vmatprep.subr.bf16.mxu0 %v7391_v25 }
 0xaac   :  { %3300 = vmatpush2.bf16.msra.mxu0 %v7394_v50 }
 0xaad   :  { %3301 = vmatprep.subr.bf16.mxu0 %v7397_v48 }
 0xab0   :  { %3302 = vmatpush2.bf16.msra.mxu0 %v8662_v35  ;;  %v8756_v35 = vld [vmem:[#allocation29_spill] sm:$0xff] }
 0xab1   :  { %3445 = vmatprep.subr.bf16.mxu0 %v7037_v51 }
 0xab3   :  { %3304 = vmatmul.mubr.bf16.vlgmr.msra.gmra.mxu0 %v7143_v28  ;;  %v8757_v28 = vld [vmem:[#allocation38_spill] sm:$0xff] }
 0xab4   :  { %3446 = vmatpush1.bf16.msra.mxu0 %v7041_v3 }
 0xab5   :  { %3447 = vmatprep.subr.bf16.mxu0 %v7044_v5 }
 0xab8   :  { %3448 = vmatpush1.bf16.msra.mxu0 %v7047_v10 }
 0xab9   :  { %3449 = vmatprep.subr.bf16.mxu0 %v7050_v21 }
 0xabc   :  { %3450 = vmatpush1.bf16.msra.mxu0 %v7053_v13 }
 0xabd   :  { %3451 = vmatprep.subr.bf16.mxu0 %v7056_v60 }
 0xac0   :  { %3452 = vmatpush1.bf16.msra.mxu0 %v7059_v34 }
 0xac1   :  { %3453 = vmatprep.subr.bf16.mxu0 %v7062_v2 }
 0xac4   :  { %3454 = vmatpush1.bf16.msra.mxu0 %v7065_v26 }
 0xac5   :  { %3455 = vmatprep.subr.bf16.mxu0 %v7068_v37 }
 0xac8   :  { %3456 = vmatpush1.bf16.msra.mxu0 %v7071_v36  ;;  %v8758_v36 = vld [vmem:[#allocation13_spill] sm:$0xff] }
 0xac9   :  { %3457 = vmatprep.subr.bf16.mxu0 %v7074_v54  ;;  %v8759_v54 = vld [vmem:[#allocation14_spill] sm:$0xff] }
 0xacc   :  { %3458 = vmatpush1.bf16.msra.mxu0 %v7077_v61  ;;  %v8760_v61 = vld [vmem:[#allocation15_spill] sm:$0xff] }
 0xacd   :  { %3459 = vmatprep.subr.bf16.mxu0 %v7080_v9  ;;  %v8761_v9 = vld [vmem:[#allocation16_spill] sm:$0xff] }
 0xad0   :  { %3460 = vmatpush1.bf16.msra.mxu0 %v7083_v58  ;;  %v8762_v58 = vld [vmem:[#allocation17_spill] sm:$0xff] }
 0xad1   :  { %3461 = vmatprep.subr.bf16.mxu0 %v7086_v42  ;;  %v8763_v42 = vld [vmem:[#allocation18_spill] sm:$0xff] }
 0xad4   :  { %3462 = vmatpush2.bf16.msra.mxu0 %v7089_v4  ;;  %v8764_v4 = vld [vmem:[#allocation19_spill] sm:$0xff] }
 0xad5   :  { %3463 = vmatprep.subr.bf16.mxu0 %v7092_v19  ;;  %v8765_v19 = vld [vmem:[#allocation20_spill] sm:$0xff] }
 0xad8   :  { %3464 = vmatpush2.bf16.msra.mxu0 %v7095_v40  ;;  %v8766_v40 = vld [vmem:[#allocation21_spill] sm:$0xff] }
 0xad9   :  { %3465 = vmatprep.subr.bf16.mxu0 %v8756_v35  ;;  %v8767_v35 = vld [vmem:[#allocation22_spill] sm:$0xff] }
 0xadc   :  { %3466 = vmatpush2.bf16.msra.mxu0 %v8757_v28  ;;  %v7434_v28 = vld [vmem:[#allocation6 + $0x164] ss:$24 sps:$4 sm:$0xff]  }
 0xadd   :  { %3467 = vmatprep.subr.bf16.mxu0 %v8758_v36  ;;  %8768 = vst [vmem:[#allocation103_spill] sm:$0xff] %v7434_v28 }
 0xae0   :  { %3468 = vmatpush2.bf16.msra.mxu0 %v8759_v54  ;;  %v3187_v54 = vld [vmem:[#allocation2 + $0x1e] sm:$0x3f] }
 0xae1   :  { %3469 = vmatprep.subr.bf16.mxu0 %v8760_v61  ;;  %v3331_v5 = vrot.slane %v3187_v54, 4 }
 0xae4   :  { %3470 = vmatpush2.bf16.msra.mxu0 %v8761_v9 }
 0xae5   :  { %3471 = vmatprep.subr.bf16.mxu0 %v8762_v58 }
 0xae8   :  { %3472 = vmatpush2.bf16.msra.mxu0 %v8763_v42 }
 0xae9   :  { %3473 = vmatprep.subr.bf16.mxu0 %v8764_v4 }
 0xaec   :  { %3474 = vmatpush2.bf16.msra.mxu0 %v8765_v19  ;;  %v3320_v19 = vrot.slane %v3187_v54, 2 }
 0xaed   :  { %3475 = vmatprep.subr.bf16.mxu0 %v8766_v40 }
 0xaf0   :  { %3476 = vmatpush2.bf16.msra.mxu0 %v8767_v35 }
 0xaf1   :  { %3527 = vmatprep.subr.bf16.mxu0 %v7434_v28 }
 0xb33   :  { %v3223_v61 = vpop.f32.mrf.mxu0  ;;  %v3264_v36 = vpop.f32.mrf.mxu1 }
 0xb34   :  { %v3312_v9 = vadd.f32 %v3223_v61, %v3187_v54  ;;  %v3329_v61 = vadd.f32 %v6870_v45, %v3264_v36  ;;  %v8782_v36 = vld [vmem:[#allocation36_spill] sm:$0xff]  ;;  %v8783_v54 = vld [vmem:[#allocation37_spill] sm:$0xff] }
 0xb35   :  { %v3225_v37 = vpop.f32.mrf.mxu0  ;;  %v7437_v58 = vpop.f32.mrf.mxu1 }
 0xb36   :  { %v4485_v42 = vmul.f32 -1.442695, %v3312_v9  ;;  %v3322_v34 = vadd.f32 %v3320_v19, %v3225_v37  ;;  %v8784_v19 = vld [vmem:[#allocation52_spill] sm:$0xff] }
 0xb37   :  { %v3227_v26 = vpop.f32.mrf.mxu0  ;;  %v3268_v4 = vpop.f32.mrf.mxu1 }
 0xb38   :  { %5139 = vpow2.f32 %v4485_v42  ;;  %v4486_v35 = vmul.f32 -1.442695, %v3322_v34 }
 0xb39   :  { %v3228_v2 = vpop.f32.mrf.mxu0  ;;  %v3269_v40 = vpop.f32.mrf.mxu1 }
 0xb3a   :  { %5141 = vpow2.f32 %v4486_v35  ;;  %v8785_v40 = vld [vmem:[#allocation39_spill] sm:$0xff]  ;;  %v8791_v35 = vld [vmem:[#allocation53_spill] sm:$0xff] }
 0xb45   :  { %v5140_v60 = vpop.eup %5139 }
 0xb46   :  { %v3316_v13 = vadd.f32 1.0, %v5140_v60  ;;  %v8781_v60 = vld [vmem:[#allocation35_spill] sm:$0xff] }
 0xb47   :  { %v5142_v28 = vpop.eup %5141 }
 0xb48   :  { %5143 = vrcp.f32 %v3316_v13  ;;  %v3326_v21 = vadd.f32 1.0, %v5142_v28  ;;  %v8792_v28 = vld [vmem:[#allocation78_spill] sm:$0xff] }
 0xb4a   :  { %5145 = vrcp.f32 %v3326_v21  ;;  %v8780_v21 = vld [vmem:[#allocation34_spill] sm:$0xff] }
 0xb55   :  { %v5144_v10 = vpop.eup %5143 }
 0xb56   :  { %v3330_v3 = vmul.f32 %v5144_v10, %v3329_v61  ;;  %v8793_v61 = vld [vmem:[#allocation65_spill] sm:$0xff] }
 0xb57   :  { %v5146_v9 = vpop.eup %5145 }
 0xb58   :  { %v3333_v26 = vadd.f32 %v3331_v5, %v3330_v3  ;;  %v3335_v42 = vsub.f32 1.0, %v5146_v9  ;;  %v3337_v34 = vmul.f32 %v5146_v9, %v7139_v1  ;;  %v8786_v1 = vld [vmem:[#allocation40_spill] sm:$0xff] }
 0xb5a   :  { %5147 = vtanh.f32 %v3333_v26  ;;  %v8794_v26 = vld [vmem:[#allocation67_spill] sm:$0xff] }
 0xb67   :  { %v5148_v2 = vpop.eup %5147 }
 0xb68   :  { %v3336_v4 = vmul.f32 %v5148_v2, %v3335_v42 }
 0xb6a   :  { %v7441_v37 = vadd.f32 %v3337_v34, %v3336_v4 }
 0xb6c   :  { %v7445_v13 = vpack.c.bf16 %v7441_v37, %v7441_v37 }
 0xb6e   :  { %3373 = vmatmul.mubr.bf16.vlgmr.msra.gmra.mxu1 %v7445_v13 }
 0xb6f   :  { %4717 = vmatpush3.bf16.msra.mxu1 %v6881_v27  ;;  %4732 = vmatprep.mubr.msk.bf16.mxu1 %vm5551_vm1, %v8367_v44  ;;  %v8769_v27 = vld [vmem:[#allocation62_spill] sm:$0xff] }
 0xb70   :  { %4718 = vmatprep.subr.bf16.mxu1 %v8367_v44 }
 0xb73   :  { %v3305_v45 = vpop.f32.mrf.mxu0  ;;  %4719 = vmatpush3.bf16.msra.mxu1 %v6889_v29  ;;  %v8770_v29 = vld [vmem:[#allocation64_spill] sm:$0xff] }
 0xb74   :  { %4720 = vmatprep.subr.bf16.mxu1 %v8367_v44 }
 0xb75   :  { %v7454_v3 = vpop.f32.mrf.mxu0 }
 0xb77   :  { %v3309_v5 = vpop.f32.mrf.mxu0  ;;  %4721 = vmatpush3.bf16.msra.mxu1 %v6895_v16  ;;  %v8771_v16 = vld [vmem:[#allocation23_spill] sm:$0xff] }
 0xb78   :  { %4722 = vmatprep.subr.bf16.mxu1 %v8367_v44 }
 0xb79   :  { %v3310_v10 = vpop.f32.mrf.mxu0 }
 0xb7b   :  { %4723 = vmatpush3.bf16.msra.mxu1 %v6899_v33  ;;  %v8772_v33 = vld [vmem:[#allocation24_spill] sm:$0xff] }
 0xb7c   :  { %4724 = vmatprep.subr.bf16.mxu1 %v8367_v44 }
 0xb7f   :  { %4725 = vmatpush3.bf16.msra.mxu1 %v6903_v39  ;;  %v8773_v39 = vld [vmem:[#allocation25_spill] sm:$0xff] }
 0xb80   :  { %4726 = vmatprep.subr.bf16.mxu1 %v8367_v44 }
 0xb83   :  { %4727 = vmatpush3.bf16.msra.mxu1 %v6907_v53  ;;  %v8774_v53 = vld [vmem:[#allocation26_spill] sm:$0xff] }
 0xb84   :  { %4728 = vmatprep.subr.bf16.mxu1 %v8367_v44 }
 0xb87   :  { %4729 = vmatpush3.bf16.msra.mxu1 %v6911_v62  ;;  %v8775_v62 = vld [vmem:[#allocation28_spill] sm:$0xff] }
 0xb88   :  { %4730 = vmatprep.subr.bf16.mxu1 %v8367_v44 }
 0xb8b   :  { %4731 = vmatpush3.bf16.msra.mxu1 %v8695_v20  ;;  %v8787_v20 = vld [vmem:[#allocation54_spill] sm:$0xff] }
 0xb8c   :  { %3486 = vmatprep.subr.bf16.mxu1 %v8696_v6  ;;  %v8788_v6 = vld [vmem:[#allocation56_spill] sm:$0xff] }
 0xb8e   :  { %4733 = vmatmul.mubr.bf16.vlgmr.msra.gmra.mxu1 %v7445_v13 }
 0xb8f   :  { %3487 = vmatpush1.bf16.msra.mxu1 %v8697_v14  ;;  %v8789_v14 = vld [vmem:[#allocation41_spill] sm:$0xff] }
 0xb90   :  { %3488 = vmatprep.subr.bf16.mxu1 %v8698_v23  ;;  %v8790_v23 = vld [vmem:[#allocation51_spill] sm:$0xff] }
 0xb93   :  { %3489 = vmatpush1.bf16.msra.mxu1 %v6928_v59  ;;  %v8776_v59 = vld [vmem:[#allocation30_spill] sm:$0xff] }
 0xb94   :  { %3490 = vmatprep.subr.bf16.mxu1 %v6931_v30  ;;  %v8777_v30 = vld [vmem:[#allocation31_spill] sm:$0xff] }
 0xb97   :  { %3491 = vmatpush1.bf16.msra.mxu1 %v6934_v46  ;;  %v8778_v46 = vld [vmem:[#allocation32_spill] sm:$0xff] }
 0xb98   :  { %3492 = vmatprep.subr.bf16.mxu1 %v6937_v17  ;;  %v8779_v17 = vld [vmem:[#allocation33_spill] sm:$0xff] }
 0xb9b   :  { %3493 = vmatpush1.bf16.msra.mxu1 %v8769_v27 }
 0xb9c   :  { %3494 = vmatprep.subr.bf16.mxu1 %v8770_v29 }
 0xb9f   :  { %3495 = vmatpush1.bf16.msra.mxu1 %v8771_v16 }
 0xba0   :  { %3496 = vmatprep.subr.bf16.mxu1 %v8772_v33 }
 0xba3   :  { %3497 = vmatpush1.bf16.msra.mxu1 %v8773_v39 }
 0xba4   :  { %3498 = vmatprep.subr.bf16.mxu1 %v8774_v53 }
 0xba7   :  { %3499 = vmatpush1.bf16.msra.mxu1 %v8775_v62 }
 0xba8   :  { %3500 = vmatprep.subr.bf16.mxu1 %v8776_v59 }
 0xbab   :  { %3501 = vmatpush1.bf16.msra.mxu1 %v8777_v30 }
 0xbac   :  { %3502 = vmatprep.subr.bf16.mxu1 %v8778_v46 }
 0xbaf   :  { %3503 = vmatpush2.bf16.msra.mxu1 %v8779_v17 }
 0xbb0   :  { %3504 = vmatprep.subr.bf16.mxu1 %v8780_v21 }
 0xbb3   :  { %3505 = vmatpush2.bf16.msra.mxu1 %v8781_v60 }
 0xbb4   :  { %3506 = vmatprep.subr.bf16.mxu1 %v8782_v36 }
 0xbb7   :  { %3507 = vmatpush2.bf16.msra.mxu1 %v8783_v54 }
 0xbb8   :  { %3508 = vmatprep.subr.bf16.mxu1 %v8784_v19 }
 0xbbb   :  { %3509 = vmatpush2.bf16.msra.mxu1 %v8785_v40 }
 0xbbc   :  { %3510 = vmatprep.subr.bf16.mxu1 %v8786_v1 }
 0xbbf   :  { %3511 = vmatpush2.bf16.msra.mxu1 %v8787_v20 }
 0xbc0   :  { %3512 = vmatprep.subr.bf16.mxu1 %v8788_v6 }
 0xbc3   :  { %3513 = vmatpush2.bf16.msra.mxu1 %v8789_v14 }
 0xbc4   :  { %3514 = vmatprep.subr.bf16.mxu1 %v8790_v23 }
 0xbc7   :  { %3515 = vmatpush2.bf16.msra.mxu1 %v8791_v35 }
 0xbc8   :  { %3516 = vmatprep.subr.bf16.mxu1 %v8792_v28 }
 0xbcb   :  { %3517 = vmatpush2.bf16.msra.mxu1 %v8793_v61 }
 0xbcc   :  { %3596 = vmatprep.subr.bf16.mxu1 %v8794_v26 }
 0xc2e   :  { %v3374_v9 = vpop.f32.mrf.mxu1 }
 0xc2f   :  { %v3375_v42 = vadd.f32 %v3374_v9, %v6232_v22  ;;  %v3435_v9 = vadd.f32 %v6977_v49, %v7454_v3  ;;  %v8796_v3 = vld [vmem:[#allocation71_spill] sm:$0xff] }
 0xc30   :  { %v3376_v2 = vpop.f32.mrf.mxu1 }
 0xc31   :  { %v3421_v4 = vadd.f32 %v3375_v42, %v7437_v58  ;;  %v3377_v10 = vadd.f32 %v3376_v2, %v6235_v32 }
 0xc32   :  { %v3378_v34 = vpop.f32.mrf.mxu1 }
 0xc33   :  { %v4487_v5 = vmul.f32 -1.442695, %v3421_v4  ;;  %v3428_v29 = vadd.f32 %v3377_v10, %v3305_v45 }
 0xc34   :  { %v3379_v27 = vpop.f32.mrf.mxu1 }
 0xc35   :  { %5149 = vpow2.f32 %v4487_v5  ;;  %v4488_v35 = vmul.f32 -1.442695, %v3428_v29  ;;  %v8800_v27 = vld [vmem:[#allocation79_spill] sm:$0xff]  ;;  %v8801_v29 = vld [vmem:[#allocation81_spill] sm:$0xff] }
 0xc37   :  { %5151 = vpow2.f32 %v4488_v35 }
 0xc42   :  { %v5150_v28 = vpop.eup %5149 }
 0xc43   :  { %v3425_v23 = vadd.f32 1.0, %v5150_v28 }
 0xc44   :  { %v5152_v61 = vpop.eup %5151 }
 0xc45   :  { %5153 = vrcp.f32 %v3425_v23  ;;  %v3432_v14 = vadd.f32 1.0, %v5152_v61 }
 0xc47   :  { %5155 = vrcp.f32 %v3432_v14  ;;  %v8798_v14 = vld [vmem:[#allocation75_spill] sm:$0xff] }
 0xc4e   :  { %v3415_v26 = vpop.f32.mrf.mxu1 }
 0xc4f   :  { %v3416_v2 = vadd.f32 %v3415_v26, %v6246_v12  ;;  %v8799_v26 = vld [vmem:[#allocation77_spill] sm:$0xff] }
 0xc50   :  { %v4734_v6 = vpop.f32.mrf.mxu1 }
 0xc51   :  { %v8797_v6 = vld [vmem:[#allocation73_spill] sm:$0xff] }
 0xc52   :  { %v5154_v58 = vpop.eup %5153  ;;  %v3418_v42 = vpop.f32.mrf.mxu1 }
 0xc53   :  { %v3436_v4 = vmul.f32 %v5154_v58, %v3435_v9  ;;  %v8802_v9 = vld [vmem:[#allocation82_spill] sm:$0xff]  ;;  %v8803_v58 = vld [vmem:[#allocation83_spill] sm:$0xff]  ;;  %v8804_v42 = vld [vmem:[#allocation84_spill] sm:$0xff] }
 0xc54   :  { %v4735_v34 = vpop.f32.mrf.mxu1  ;;  %v5156_v35 = vpop.eup %5155 }
 0xc55   :  { %v3437_v45 = vadd.f32 %v3436_v4, %v3416_v2  ;;  %v3439_v5 = vsub.f32 1.0, %v5156_v35  ;;  %v3441_v10 = vmul.f32 %v5156_v35, %v7257_v47  ;;  %v8795_v47 = vld [vmem:[#allocation69_spill] sm:$0xff]  ;;  %v8806_v4 = vld [vmem:[#allocation86_spill] sm:$0xff]  ;;  %v8807_v34 = vld [vmem:[#allocation87_spill] sm:$0xff] }
 0xc56   :  { %v8805_v2 = vld [vmem:[#allocation85_spill] sm:$0xff] }
 0xc57   :  { %5157 = vtanh.f32 %v3437_v45  ;;  %v8808_v45 = vld [vmem:[#allocation88_spill] sm:$0xff]  ;;  %v8809_v35 = vld [vmem:[#allocation89_spill] sm:$0xff] }
 0xc64   :  { %v5158_v28 = vpop.eup %5157 }
 0xc65   :  { %v3440_v23 = vmul.f32 %v5158_v28, %v3439_v5  ;;  %v8810_v5 = vld [vmem:[#allocation90_spill] sm:$0xff]  ;;  %v8811_v28 = vld [vmem:[#allocation91_spill] sm:$0xff] }
 0xc67   :  { %v7508_v61 = vadd.f32 %v3441_v10, %v3440_v23  ;;  %v8812_v23 = vld [vmem:[#allocation92_spill] sm:$0xff]  ;;  %v8813_v10 = vld [vmem:[#allocation93_spill] sm:$0xff] }
 0xc69   :  { %v3444_v49 = vpack.c.bf16 %v7508_v61, %v7508_v61 }
 0xc6b   :  { %3477 = vmatprep.mubr.bf16.mxu0 %v3444_v49  ;;  %3518 = vmatprep.mubr.bf16.mxu1 %v3444_v49 }
 0xc6c   :  { %3478 = vmatmul.mubr.bf16.vlgmr.msra.gmra.mxu0 %v7445_v13  ;;  %3519 = vmatmul.mubr.bf16.vlgmr.msra.gmra.mxu1 %v7445_v13 }
 0xc6d   :  { %3528 = vmatpush1.bf16.msra.mxu0 %v7263_v11  ;;  %3559 = vmatprep.mubr.bf16.mxu0 %v3444_v49  ;;  %v8814_v49 = vld [vmem:[#allocation94_spill] sm:$0xff] }
 0xc6e   :  { %3529 = vmatprep.subr.bf16.mxu0 %v7266_v63  ;;  %3597 = vmatpush1.bf16.msra.mxu1 %v7269_v41 }
 0xc6f   :  { %3598 = vmatprep.subr.bf16.mxu1 %v7272_v24  ;;  %3628 = vmatprep.mubr.bf16.mxu1 %v8396_v31 }
 0xc71   :  { %3530 = vmatpush1.bf16.msra.mxu0 %v7276_v38 }
 0xc72   :  { %3531 = vmatprep.subr.bf16.mxu0 %v7279_v43  ;;  %3599 = vmatpush1.bf16.msra.mxu1 %v7282_v56 }
 0xc73   :  { %3600 = vmatprep.subr.bf16.mxu1 %v7285_v52 }
 0xc75   :  { %3532 = vmatpush1.bf16.msra.mxu0 %v7288_v8 }
 0xc76   :  { %3533 = vmatprep.subr.bf16.mxu0 %v7291_v55  ;;  %3601 = vmatpush1.bf16.msra.mxu1 %v7294_v0 }
 0xc77   :  { %3602 = vmatprep.subr.bf16.mxu1 %v7297_v7 }
 0xc79   :  { %3534 = vmatpush1.bf16.msra.mxu0 %v8795_v47 }
 0xc7a   :  { %3535 = vmatprep.subr.bf16.mxu0 %v8796_v3  ;;  %3603 = vmatpush1.bf16.msra.mxu1 %v8797_v6 }
 0xc7b   :  { %3604 = vmatprep.subr.bf16.mxu1 %v8798_v14 }
 0xc7d   :  { %3536 = vmatpush1.bf16.msra.mxu0 %v8799_v26 }
 0xc7e   :  { %3537 = vmatprep.subr.bf16.mxu0 %v8800_v27  ;;  %3605 = vmatpush1.bf16.msra.mxu1 %v8801_v29 }
 0xc7f   :  { %3606 = vmatprep.subr.bf16.mxu1 %v8802_v9 }
 0xc81   :  { %3538 = vmatpush1.bf16.msra.mxu0 %v8803_v58 }
 0xc82   :  { %3539 = vmatprep.subr.bf16.mxu0 %v8804_v42  ;;  %3607 = vmatpush1.bf16.msra.mxu1 %v8805_v2  ;;  %v8815_v2 = vld [vmem:[#allocation95_spill] sm:$0xff] }
 0xc83   :  { %3608 = vmatprep.subr.bf16.mxu1 %v8806_v4  ;;  %v8816_v4 = vld [vmem:[#allocation96_spill] sm:$0xff] }
 0xc85   :  { %3540 = vmatpush1.bf16.msra.mxu0 %v8807_v34  ;;  %v8817_v34 = vld [vmem:[#allocation97_spill] sm:$0xff] }
 0xc86   :  { %3541 = vmatprep.subr.bf16.mxu0 %v8808_v45  ;;  %3609 = vmatpush1.bf16.msra.mxu1 %v8809_v35  ;;  %v8818_v45 = vld [vmem:[#allocation98_spill] sm:$0xff]  ;;  %v8819_v35 = vld [vmem:[#allocation99_spill] sm:$0xff] }
 0xc87   :  { %3610 = vmatprep.subr.bf16.mxu1 %v8810_v5  ;;  %v8820_v5 = vld [vmem:[#allocation42_spill] sm:$0xff] }
 0xc89   :  { %3542 = vmatpush1.bf16.msra.mxu0 %v8811_v28  ;;  %v8821_v28 = vld [vmem:[#allocation100_spill] sm:$0xff] }
 0xc8a   :  { %3543 = vmatprep.subr.bf16.mxu0 %v8812_v23  ;;  %3611 = vmatpush1.bf16.msra.mxu1 %v8813_v10 }
 0xc8b   :  { %4736 = vmatprep.subr.bf16.mxu1 %v8367_v44 }
 0xc8d   :  { %3544 = vmatpush2.bf16.msra.mxu0 %v8814_v49 }
 0xc8e   :  { %3545 = vmatprep.subr.bf16.mxu0 %v8815_v2 }
 0xc91   :  { %3546 = vmatpush2.bf16.msra.mxu0 %v8816_v4 }
 0xc92   :  { %3547 = vmatprep.subr.bf16.mxu0 %v8817_v34  ;;  %v7561_v34 = vld [vmem:[#allocation6 + $0x190] ss:$24 sps:$4 sm:$0xff]  }
 0xc93   :  { %8822 = vst [vmem:[#allocation62_spill] sm:$0xff] %v7561_v34 }
 0xc95   :  { %3548 = vmatpush2.bf16.msra.mxu0 %v8818_v45 }
 0xc96   :  { %3549 = vmatprep.subr.bf16.mxu0 %v8819_v35 }
 0xc99   :  { %3550 = vmatpush2.bf16.msra.mxu0 %v8820_v5  ;;  %v8830_v5 = vld [vmem:[#allocation72_spill] sm:$0xff] }
 0xc9a   :  { %3551 = vmatprep.subr.bf16.mxu0 %v8821_v28  ;;  %v8823_v28 = vld [vmem:[#allocation45_spill] sm:$0xff] }
 0xc9d   :  { %3552 = vmatpush2.bf16.msra.mxu0 %v7382_v15  ;;  %v8824_v15 = vld [vmem:[#allocation46_spill] sm:$0xff] }
 0xc9e   :  { %3553 = vmatprep.subr.bf16.mxu0 %v7385_v57  ;;  %v8825_v57 = vld [vmem:[#allocation66_spill] sm:$0xff] }
 0xca1   :  { %3554 = vmatpush2.bf16.msra.mxu0 %v7388_v18  ;;  %v8826_v18 = vld [vmem:[#allocation68_spill] sm:$0xff] }
 0xca2   :  { %3555 = vmatprep.subr.bf16.mxu0 %v7391_v25  ;;  %v8827_v25 = vld [vmem:[#allocation47_spill] sm:$0xff] }
 0xca5   :  { %3556 = vmatpush2.bf16.msra.mxu0 %v7394_v50  ;;  %v8828_v50 = vld [vmem:[#allocation48_spill] sm:$0xff] }
 0xca6   :  { %3557 = vmatprep.subr.bf16.mxu0 %v7397_v48  ;;  %v8829_v48 = vld [vmem:[#allocation70_spill] sm:$0xff] }
 0xca9   :  { %3558 = vmatpush2.bf16.msra.mxu0 %v7561_v34  ;;  %v8831_v34 = vld [vmem:[#allocation49_spill] sm:$0xff] }
 0xcaa   :  { %3701 = vmatprep.subr.bf16.mxu0 %v7037_v51  ;;  %v8832_v51 = vld [vmem:[#allocation50_spill] sm:$0xff] }
 0xcac   :  { %3560 = vmatmul.mubr.bf16.vlgmr.msra.gmra.mxu0 %v7445_v13  ;;  %v8833_v13 = vld [vmem:[#allocation74_spill] sm:$0xff] }
 0xcad   :  { %3702 = vmatpush1.bf16.msra.mxu0 %v8823_v28  ;;  %v8834_v28 = vld [vmem:[#allocation76_spill] sm:$0xff] }
 0xcae   :  { %3703 = vmatprep.subr.bf16.mxu0 %v8824_v15  ;;  %v8835_v15 = vld [vmem:[#allocation80_spill] sm:$0xff] }
 0xcb1   :  { %3704 = vmatpush1.bf16.msra.mxu0 %v8825_v57  ;;  %v8836_v57 = vld [vmem:[#allocation55_spill] sm:$0xff] }
 0xcb2   :  { %3705 = vmatprep.subr.bf16.mxu0 %v8826_v18  ;;  %v8837_v18 = vld [vmem:[#allocation57_spill] sm:$0xff] }
 0xcb5   :  { %3706 = vmatpush1.bf16.msra.mxu0 %v8827_v25  ;;  %v8838_v25 = vld [vmem:[#allocation59_spill] sm:$0xff] }
 0xcb6   :  { %3707 = vmatprep.subr.bf16.mxu0 %v8828_v50  ;;  %v8839_v50 = vld [vmem:[#allocation61_spill] sm:$0xff] }
 0xcb9   :  { %3708 = vmatpush1.bf16.msra.mxu0 %v8829_v48  ;;  %v8840_v48 = vld [vmem:[#allocation63_spill] sm:$0xff] }
 0xcba   :  { %3709 = vmatprep.subr.bf16.mxu0 %v8830_v5  ;;  %v8841_v5 = vld [vmem:[#allocation27_spill] sm:$0xff] }
 0xcbd   :  { %3710 = vmatpush1.bf16.msra.mxu0 %v8831_v34  ;;  %v8842_v34 = vld [vmem:[#allocation29_spill] sm:$0xff] }
 0xcbe   :  { %3711 = vmatprep.subr.bf16.mxu0 %v8832_v51  ;;  %v8843_v51 = vld [vmem:[#allocation38_spill] sm:$0xff] }
 0xcc1   :  { %3712 = vmatpush1.bf16.msra.mxu0 %v8833_v13  ;;  %v8844_v13 = vld [vmem:[#allocation13_spill] sm:$0xff] }
 0xcc2   :  { %3713 = vmatprep.subr.bf16.mxu0 %v8834_v28  ;;  %v8845_v28 = vld [vmem:[#allocation14_spill] sm:$0xff] }
 0xcc5   :  { %3714 = vmatpush1.bf16.msra.mxu0 %v8835_v15  ;;  %v8846_v15 = vld [vmem:[#allocation15_spill] sm:$0xff] }
 0xcc6   :  { %3715 = vmatprep.subr.bf16.mxu0 %v8836_v57  ;;  %v8847_v57 = vld [vmem:[#allocation16_spill] sm:$0xff] }
 0xcc9   :  { %3716 = vmatpush1.bf16.msra.mxu0 %v8837_v18  ;;  %v8848_v18 = vld [vmem:[#allocation17_spill] sm:$0xff] }
 0xcca   :  { %3717 = vmatprep.subr.bf16.mxu0 %v8838_v25  ;;  %v8849_v25 = vld [vmem:[#allocation18_spill] sm:$0xff] }
 0xccd   :  { %3718 = vmatpush2.bf16.msra.mxu0 %v8839_v50  ;;  %v8850_v50 = vld [vmem:[#allocation19_spill] sm:$0xff] }
 0xcce   :  { %3719 = vmatprep.subr.bf16.mxu0 %v8840_v48  ;;  %v8851_v48 = vld [vmem:[#allocation20_spill] sm:$0xff] }
 0xcd1   :  { %3720 = vmatpush2.bf16.msra.mxu0 %v8841_v5  ;;  %v8852_v5 = vld [vmem:[#allocation21_spill] sm:$0xff] }
 0xcd2   :  { %3721 = vmatprep.subr.bf16.mxu0 %v8842_v34  ;;  %v8853_v34 = vld [vmem:[#allocation22_spill] sm:$0xff] }
 0xcd5   :  { %3722 = vmatpush2.bf16.msra.mxu0 %v8843_v51  ;;  %v8854_v51 = vld [vmem:[#allocation103_spill] sm:$0xff] }
 0xcd6   :  { %3723 = vmatprep.subr.bf16.mxu0 %v8844_v13  ;;  %v3443_v13 = vld [vmem:[#allocation2 + $0x24] sm:$0x3f] }
 0xcd9   :  { %3724 = vmatpush2.bf16.msra.mxu0 %v8845_v28 }
 0xcda   :  { %3725 = vmatprep.subr.bf16.mxu0 %v8846_v15 }
 0xcdd   :  { %3726 = vmatpush2.bf16.msra.mxu0 %v8847_v57 }
 0xcde   :  { %3727 = vmatprep.subr.bf16.mxu0 %v8848_v18 }
 0xce1   :  { %3728 = vmatpush2.bf16.msra.mxu0 %v8849_v25 }
 0xce2   :  { %3729 = vmatprep.subr.bf16.mxu0 %v8850_v50  ;;  %v3576_v50 = vrot.slane %v3443_v13, 2 }
 0xce5   :  { %3730 = vmatpush2.bf16.msra.mxu0 %v8851_v48 }
 0xce6   :  { %3731 = vmatprep.subr.bf16.mxu0 %v8852_v5 }
 0xce9   :  { %3732 = vmatpush2.bf16.msra.mxu0 %v8853_v34 }
 0xcea   :  { %3783 = vmatprep.subr.bf16.mxu0 %v8854_v51 }
 0xd2c   :  { %v3479_v28 = vpop.f32.mrf.mxu0  ;;  %v3520_v35 = vpop.f32.mrf.mxu1 }
 0xd2d   :  { %v3568_v15 = vadd.f32 %v3479_v28, %v3443_v13  ;;  %v7603_v28 = vld [vmem:[%s7881_s6] ss:$0 sm:$0xff] }
 0xd2e   :  { %v3481_v45 = vpop.f32.mrf.mxu0  ;;  %v7598_v57 = vpop.f32.mrf.mxu1 }
 0xd2f   :  { %v4489_v18 = vmul.f32 -1.442695, %v3568_v15  ;;  %v3578_v49 = vadd.f32 %v3576_v50, %v3481_v45 }
 0xd30   :  { %v3483_v4 = vpop.f32.mrf.mxu0  ;;  %v3524_v25 = vpop.f32.mrf.mxu1 }
 0xd31   :  { %5159 = vpow2.f32 %v4489_v18  ;;  %v4490_v5 = vmul.f32 -1.442695, %v3578_v49  ;;  %v3585_v4 = vadd.f32 %v7603_v28, %v3520_v35  ;;  %v3587_v18 = vrot.slane %v3443_v13, 4  ;;  %v7614_v35 = vld [vmem:[#allocation8 + $0xb0] ss:$12 sps:$4 sm:$0xff]  }
 0xd32   :  { %v3484_v2 = vpop.f32.mrf.mxu0  ;;  %v3525_v48 = vpop.f32.mrf.mxu1 }
 0xd33   :  { %5161 = vpow2.f32 %v4490_v5 }
 0xd3e   :  { %v5160_v34 = vpop.eup %5159 }
 0xd3f   :  { %v3572_v10 = vadd.f32 1.0, %v5160_v34 }
 0xd40   :  { %v5162_v51 = vpop.eup %5161 }
 0xd41   :  { %5163 = vrcp.f32 %v3572_v10  ;;  %v3582_v23 = vadd.f32 1.0, %v5162_v51 }
 0xd43   :  { %5165 = vrcp.f32 %v3582_v23 }
 0xd4e   :  { %v5164_v15 = vpop.eup %5163 }
 0xd4f   :  { %v3586_v25 = vmul.f32 %v5164_v15, %v3585_v4  ;;  %v7628_v4 = vld [vmem:[#allocation8 + $0x80] ss:$12 sps:$4 sm:$0xff]  }
 0xd50   :  { %v5166_v45 = vpop.eup %5165 }
 0xd51   :  { %v3589_v2 = vadd.f32 %v3587_v18, %v3586_v25  ;;  %v3591_v49 = vsub.f32 1.0, %v5166_v45  ;;  %v3593_v10 = vmul.f32 %v5166_v45, %v7441_v37  ;;  %v7622_v37 = vld [vmem:[#allocation8 + $0x98] ss:$12 sps:$4 sm:$0xff]   ;;  %v7632_v18 = vld [vmem:[#allocation8 + $0x68] ss:$12 sps:$4 sm:$0xff]  }
 0xd52   :  { %8855 = vst [vmem:[#allocation64_spill] sm:$0xff] %v7632_v18  ;;  %v7636_v25 = vld [vmem:[#allocation8 + $0x50] ss:$12 sps:$4 sm:$0xff]   ;;  %v7644_v45 = vld [vmem:[#allocation8 + $0x20] ss:$12 sps:$4 sm:$0xff]  }
 0xd53   :  { %5167 = vtanh.f32 %v3589_v2  ;;  %8856 = vst [vmem:[#allocation23_spill] sm:$0xff] %v7636_v25  ;;  %v7640_v2 = vld [vmem:[#allocation8 + $0x38] ss:$12 sps:$4 sm:$0xff]   ;;  %8858 = vst [vmem:[#allocation25_spill] sm:$0xff] %v7644_v45 }
 0xd54   :  { %8857 = vst [vmem:[#allocation24_spill] sm:$0xff] %v7640_v2 }
 0xd60   :  { %v5168_v50 = vpop.eup %5167 }
 0xd61   :  { %v3592_v48 = vmul.f32 %v5168_v50, %v3591_v49  ;;  %v7648_v49 = vld [vmem:[#allocation8 + $0x8] ss:$12 sps:$4 sm:$0xff]  }
 0xd62   :  { %v5442_v50 = vld [vmem:[#allocation6 + $0x15c] ss:$24 sps:$4 sm:$0xff]  }
 0xd63   :  { %v7607_v5 = vadd.f32 %v3593_v10, %v3592_v48  ;;  %v5443_v48 = vld [vmem:[#allocation6 + $0x158] ss:$24 sps:$4 sm:$0xff]   ;;  %v5444_v10 = vld [vmem:[#allocation6 + $0x12c] ss:$24 sps:$4 sm:$0xff]  }
 0xd65   :  { %v7611_v34 = vpack.c.bf16 %v7607_v5, %v7607_v5 }
 0xd67   :  { %3629 = vmatmul.mubr.bf16.vlgmr.msra.gmra.mxu1 %v7611_v34 }
 0xd68   :  { %4737 = vmatpush3.bf16.msra.mxu1 %v7614_v35  ;;  %4752 = vmatprep.mubr.msk.bf16.mxu1 %vm5551_vm1, %v8367_v44 }
 0xd69   :  { %4738 = vmatprep.subr.bf16.mxu1 %v8367_v44 }
 0xd6c   :  { %v7620_v23 = vpop.f32.mrf.mxu0  ;;  %4739 = vmatpush3.bf16.msra.mxu1 %v7622_v37 }
 0xd6d   :  { %4740 = vmatprep.subr.bf16.mxu1 %v8367_v44 }
 0xd6e   :  { %v7626_v13 = vpop.f32.mrf.mxu0 }
 0xd70   :  { %v3565_v51 = vpop.f32.mrf.mxu0  ;;  %4741 = vmatpush3.bf16.msra.mxu1 %v7628_v4 }
 0xd71   :  { %4742 = vmatprep.subr.bf16.mxu1 %v8367_v44  ;;  %v5445_v51 = vld [vmem:[#allocation6 + $0x128] ss:$24 sps:$4 sm:$0xff]  }
 0xd72   :  { %v3566_v15 = vpop.f32.mrf.mxu0 }
 0xd73   :  { %v5446_v15 = vld [vmem:[#allocation6 + $0xfc] ss:$24 sps:$4 sm:$0xff]  }
 0xd74   :  { %4743 = vmatpush3.bf16.msra.mxu1 %v7632_v18  ;;  %v5450_v18 = vld [vmem:[#allocation6 + $0x9c] ss:$24 sps:$4 sm:$0xff]  }
 0xd75   :  { %4744 = vmatprep.subr.bf16.mxu1 %v8367_v44 }
 0xd78   :  { %4745 = vmatpush3.bf16.msra.mxu1 %v7636_v25  ;;  %v5449_v25 = vld [vmem:[#allocation6 + $0xc8] ss:$24 sps:$4 sm:$0xff]  }
 0xd79   :  { %4746 = vmatprep.subr.bf16.mxu1 %v8367_v44 }
 0xd7c   :  { %4747 = vmatpush3.bf16.msra.mxu1 %v7640_v2  ;;  %v5447_v2 = vld [vmem:[#allocation6 + $0xf8] ss:$24 sps:$4 sm:$0xff]  }
 0xd7d   :  { %4748 = vmatprep.subr.bf16.mxu1 %v8367_v44 }
 0xd80   :  { %4749 = vmatpush3.bf16.msra.mxu1 %v7644_v45  ;;  %v5448_v45 = vld [vmem:[#allocation6 + $0xcc] ss:$24 sps:$4 sm:$0xff]  }
 0xd81   :  { %4750 = vmatprep.subr.bf16.mxu1 %v8367_v44 }
 0xd84   :  { %4751 = vmatpush3.bf16.msra.mxu1 %v7648_v49 }
 0xd85   :  { %3742 = vmatprep.subr.bf16.mxu1 %v5442_v50 }
 0xd87   :  { %4753 = vmatmul.mubr.bf16.vlgmr.msra.gmra.mxu1 %v7611_v34 }
 0xd88   :  { %3743 = vmatpush1.bf16.msra.mxu1 %v5443_v48 }
 0xd89   :  { %3744 = vmatprep.subr.bf16.mxu1 %v5444_v10 }
 0xd8c   :  { %3745 = vmatpush1.bf16.msra.mxu1 %v5445_v51 }
 0xd8d   :  { %3746 = vmatprep.subr.bf16.mxu1 %v5446_v15 }
 0xd90   :  { %3747 = vmatpush1.bf16.msra.mxu1 %v5447_v2 }
 0xd91   :  { %3748 = vmatprep.subr.bf16.mxu1 %v5448_v45 }
 0xd94   :  { %3749 = vmatpush1.bf16.msra.mxu1 %v5449_v25 }
 0xd95   :  { %3750 = vmatprep.subr.bf16.mxu1 %v5450_v18 }
 0xd98   :  { %3751 = vmatpush1.bf16.msra.mxu1 %v8771_v16  ;;  %v8859_v16 = vld [vmem:[#allocation56_spill] sm:$0xff] }
 0xd99   :  { %3752 = vmatprep.subr.bf16.mxu1 %v8772_v33  ;;  %v8860_v33 = vld [vmem:[#allocation41_spill] sm:$0xff] }
 0xd9c   :  { %3753 = vmatpush1.bf16.msra.mxu1 %v8773_v39  ;;  %v8861_v39 = vld [vmem:[#allocation51_spill] sm:$0xff] }
 0xd9d   :  { %3754 = vmatprep.subr.bf16.mxu1 %v8774_v53  ;;  %v8862_v53 = vld [vmem:[#allocation53_spill] sm:$0xff] }
 0xda0   :  { %3755 = vmatpush1.bf16.msra.mxu1 %v8775_v62  ;;  %v8863_v62 = vld [vmem:[#allocation78_spill] sm:$0xff] }
 0xda1   :  { %3756 = vmatprep.subr.bf16.mxu1 %v8776_v59  ;;  %v8864_v59 = vld [vmem:[#allocation65_spill] sm:$0xff] }
 0xda4   :  { %3757 = vmatpush1.bf16.msra.mxu1 %v8777_v30  ;;  %v8865_v30 = vld [vmem:[#allocation67_spill] sm:$0xff] }
 0xda5   :  { %3758 = vmatprep.subr.bf16.mxu1 %v8778_v46 }
 0xda8   :  { %3759 = vmatpush2.bf16.msra.mxu1 %v8779_v17 }
 0xda9   :  { %3760 = vmatprep.subr.bf16.mxu1 %v8780_v21 }
 0xdac   :  { %3761 = vmatpush2.bf16.msra.mxu1 %v8781_v60 }
 0xdad   :  { %3762 = vmatprep.subr.bf16.mxu1 %v8782_v36 }
 0xdb0   :  { %3763 = vmatpush2.bf16.msra.mxu1 %v8783_v54 }
 0xdb1   :  { %3764 = vmatprep.subr.bf16.mxu1 %v8784_v19 }
 0xdb4   :  { %3765 = vmatpush2.bf16.msra.mxu1 %v8785_v40 }
 0xdb5   :  { %3766 = vmatprep.subr.bf16.mxu1 %v8786_v1 }
 0xdb8   :  { %3767 = vmatpush2.bf16.msra.mxu1 %v8787_v20 }
 0xdb9   :  { %3768 = vmatprep.subr.bf16.mxu1 %v8859_v16 }
 0xdbc   :  { %3769 = vmatpush2.bf16.msra.mxu1 %v8860_v33 }
 0xdbd   :  { %3770 = vmatprep.subr.bf16.mxu1 %v8861_v39 }
 0xdc0   :  { %3771 = vmatpush2.bf16.msra.mxu1 %v8862_v53 }
 0xdc1   :  { %3772 = vmatprep.subr.bf16.mxu1 %v8863_v62 }
 0xdc4   :  { %3773 = vmatpush2.bf16.msra.mxu1 %v8864_v59 }
 0xdc5   :  { %3852 = vmatprep.subr.bf16.mxu1 %v8865_v30 }
 0xe27   :  { %v3630_v46 = vpop.f32.mrf.mxu1 }
 0xe28   :  { %v3631_v17 = vadd.f32 %v3630_v46, %v6232_v22 }
 0xe29   :  { %v3632_v21 = vpop.f32.mrf.mxu1 }
 0xe2a   :  { %v3677_v60 = vadd.f32 %v3631_v17, %v7598_v57  ;;  %v3633_v19 = vadd.f32 %v3632_v21, %v6235_v32  ;;  %v7683_v57 = vld [vmem:[%s7882_s7] ss:$0 sm:$0xff]  ;;  %v3699_v21 = vld [vmem:[#allocation2 + $0x2a] sm:$0x3f] }
 0xe2b   :  { %v3634_v36 = vpop.f32.mrf.mxu1  ;;  %v3691_v10 = vadd.f32 %v7683_v57, %v7626_v13 }
 0xe2c   :  { %v4491_v54 = vmul.f32 -1.442695, %v3677_v60  ;;  %v3684_v1 = vadd.f32 %v3633_v19, %v7620_v23 }
 0xe2d   :  { %v3635_v40 = vpop.f32.mrf.mxu1 }
 0xe2e   :  { %5169 = vpow2.f32 %v4491_v54  ;;  %v4492_v20 = vmul.f32 -1.442695, %v3684_v1 }
 0xe30   :  { %5171 = vpow2.f32 %v4492_v20 }
 0xe3b   :  { %v5170_v18 = vpop.eup %5169 }
 0xe3c   :  { %v3681_v25 = vadd.f32 1.0, %v5170_v18 }
 0xe3d   :  { %v5172_v2 = vpop.eup %5171 }
 0xe3e   :  { %5173 = vrcp.f32 %v3681_v25  ;;  %v3688_v50 = vadd.f32 1.0, %v5172_v2  ;;  %v3832_v25 = vrot.slane %v3699_v21, 2 }
 0xe40   :  { %5175 = vrcp.f32 %v3688_v50 }
 0xe47   :  { %v3671_v45 = vpop.f32.mrf.mxu1 }
 0xe48   :  { %v3672_v23 = vadd.f32 %v3671_v45, %v6246_v12 }
 0xe49   :  { %v4754_v48 = vpop.f32.mrf.mxu1 }
 0xe4b   :  { %v5174_v51 = vpop.eup %5173  ;;  %v3674_v15 = vpop.f32.mrf.mxu1 }
 0xe4c   :  { %v3692_v16 = vmul.f32 %v5174_v51, %v3691_v10 }
 0xe4d   :  { %v4755_v33 = vpop.f32.mrf.mxu1  ;;  %v5176_v53 = vpop.eup %5175 }
 0xe4e   :  { %v3693_v39 = vadd.f32 %v3692_v16, %v3672_v23  ;;  %v3695_v62 = vsub.f32 1.0, %v5176_v53  ;;  %v3697_v46 = vmul.f32 %v5176_v53, %v7508_v61  ;;  %v8879_v61 = vld [vmem:[#allocation98_spill] sm:$0xff]  ;;  %v3843_v33 = vrot.slane %v3699_v21, 4 }
 0xe50   :  { %5177 = vtanh.f32 %v3693_v39 }
 0xe5d   :  { %v5178_v59 = vpop.eup %5177 }
 0xe5e   :  { %v3696_v30 = vmul.f32 %v5178_v59, %v3695_v62 }
 0xe60   :  { %v7689_v17 = vadd.f32 %v3697_v46, %v3696_v30 }
 0xe62   :  { %v3700_v13 = vpack.c.bf16 %v7689_v17, %v7689_v17 }
 0xe64   :  { %3733 = vmatprep.mubr.bf16.mxu0 %v3700_v13  ;;  %3774 = vmatprep.mubr.bf16.mxu1 %v3700_v13 }
 0xe65   :  { %3734 = vmatmul.mubr.bf16.vlgmr.msra.gmra.mxu0 %v7611_v34  ;;  %3775 = vmatmul.mubr.bf16.vlgmr.msra.gmra.mxu1 %v7611_v34 }
 0xe66   :  { %3784 = vmatpush1.bf16.msra.mxu0 %v7263_v11  ;;  %3815 = vmatprep.mubr.bf16.mxu0 %v3700_v13  ;;  %v8867_v11 = vld [vmem:[#allocation86_spill] sm:$0xff] }
 0xe67   :  { %3785 = vmatprep.subr.bf16.mxu0 %v7266_v63  ;;  %3853 = vmatpush1.bf16.msra.mxu1 %v7269_v41  ;;  %v8868_v63 = vld [vmem:[#allocation87_spill] sm:$0xff]  ;;  %v8869_v41 = vld [vmem:[#allocation88_spill] sm:$0xff] }
 0xe68   :  { %3854 = vmatprep.subr.bf16.mxu1 %v7272_v24  ;;  %3884 = vmatprep.mubr.bf16.mxu1 %v8396_v31  ;;  %v8866_v31 = vld [vmem:[#allocation85_spill] sm:$0xff] }
 0xe69   :  { %v8870_v24 = vld [vmem:[#allocation89_spill] sm:$0xff] }
 0xe6a   :  { %3786 = vmatpush1.bf16.msra.mxu0 %v7276_v38  ;;  %v8871_v38 = vld [vmem:[#allocation90_spill] sm:$0xff] }
 0xe6b   :  { %3787 = vmatprep.subr.bf16.mxu0 %v7279_v43  ;;  %3855 = vmatpush1.bf16.msra.mxu1 %v7282_v56  ;;  %v8872_v43 = vld [vmem:[#allocation91_spill] sm:$0xff]  ;;  %v8873_v56 = vld [vmem:[#allocation92_spill] sm:$0xff] }
 0xe6c   :  { %3856 = vmatprep.subr.bf16.mxu1 %v7285_v52  ;;  %v8874_v52 = vld [vmem:[#allocation93_spill] sm:$0xff] }
 0xe6e   :  { %3788 = vmatpush1.bf16.msra.mxu0 %v7288_v8  ;;  %v8875_v8 = vld [vmem:[#allocation94_spill] sm:$0xff] }
 0xe6f   :  { %3789 = vmatprep.subr.bf16.mxu0 %v7291_v55  ;;  %3857 = vmatpush1.bf16.msra.mxu1 %v7294_v0  ;;  %v8876_v55 = vld [vmem:[#allocation95_spill] sm:$0xff]  ;;  %v8877_v0 = vld [vmem:[#allocation96_spill] sm:$0xff] }
 0xe70   :  { %3858 = vmatprep.subr.bf16.mxu1 %v7297_v7  ;;  %v8878_v7 = vld [vmem:[#allocation97_spill] sm:$0xff] }
 0xe72   :  { %3790 = vmatpush1.bf16.msra.mxu0 %v8795_v47  ;;  %v8880_v47 = vld [vmem:[#allocation99_spill] sm:$0xff] }
 0xe73   :  { %3791 = vmatprep.subr.bf16.mxu0 %v8796_v3  ;;  %3859 = vmatpush1.bf16.msra.mxu1 %v8797_v6  ;;  %v8881_v3 = vld [vmem:[#allocation42_spill] sm:$0xff]  ;;  %v8882_v6 = vld [vmem:[#allocation100_spill] sm:$0xff] }
 0xe74   :  { %3860 = vmatprep.subr.bf16.mxu1 %v8798_v14  ;;  %v8883_v14 = vld [vmem:[#allocation58_spill] sm:$0xff] }
 0xe76   :  { %3792 = vmatpush1.bf16.msra.mxu0 %v8799_v26  ;;  %v8884_v26 = vld [vmem:[#allocation60_spill] sm:$0xff] }
 0xe77   :  { %3793 = vmatprep.subr.bf16.mxu0 %v8800_v27  ;;  %3861 = vmatpush1.bf16.msra.mxu1 %v8801_v29  ;;  %v8885_v27 = vld [vmem:[#allocation43_spill] sm:$0xff]  ;;  %v8886_v29 = vld [vmem:[#allocation44_spill] sm:$0xff] }
 0xe78   :  { %3862 = vmatprep.subr.bf16.mxu1 %v8802_v9  ;;  %v8887_v9 = vld [vmem:[#allocation101_spill] sm:$0xff] }
 0xe7a   :  { %3794 = vmatpush1.bf16.msra.mxu0 %v8803_v58  ;;  %v8888_v58 = vld [vmem:[#allocation102_spill] sm:$0xff] }
 0xe7b   :  { %3795 = vmatprep.subr.bf16.mxu0 %v8804_v42  ;;  %3863 = vmatpush1.bf16.msra.mxu1 %v8866_v31  ;;  %v8889_v42 = vld [vmem:[#allocation62_spill] sm:$0xff] }
 0xe7c   :  { %3864 = vmatprep.subr.bf16.mxu1 %v8867_v11 }
 0xe7e   :  { %3796 = vmatpush1.bf16.msra.mxu0 %v8868_v63 }
 0xe7f   :  { %3797 = vmatprep.subr.bf16.mxu0 %v8869_v41  ;;  %3865 = vmatpush1.bf16.msra.mxu1 %v8870_v24  ;;  %v8891_v24 = vld [vmem:[#allocation23_spill] sm:$0xff] }
 0xe80   :  { %3866 = vmatprep.subr.bf16.mxu1 %v8871_v38  ;;  %v8892_v38 = vld [vmem:[#allocation24_spill] sm:$0xff] }
 0xe82   :  { %3798 = vmatpush1.bf16.msra.mxu0 %v8872_v43  ;;  %v5020_v43 = vld [vmem:[%s7883_s8 + $0x30] sm:$0xff]  }
 0xe83   :  { %3799 = vmatprep.subr.bf16.mxu0 %v8873_v56  ;;  %3867 = vmatpush1.bf16.msra.mxu1 %v8874_v52  ;;  %v5022_v56 = vld [vmem:[%s7883_s8 + $0x20] sm:$0xff]   ;;  %v5023_v52 = vld [vmem:[%s7883_s8 + $0x18] sm:$0xff]  }
 0xe84   :  { %4756 = vmatprep.subr.bf16.mxu1 %v8367_v44 }
 0xe86   :  { %3800 = vmatpush2.bf16.msra.mxu0 %v8875_v8  ;;  %v5024_v8 = vld [vmem:[%s7883_s8 + $0x10] sm:$0xff]  }
 0xe87   :  { %3801 = vmatprep.subr.bf16.mxu0 %v8876_v55  ;;  %v5025_v55 = vld [vmem:[%s7883_s8 + $0x8] sm:$0xff]  }
 0xe8a   :  { %3802 = vmatpush2.bf16.msra.mxu0 %v8877_v0  ;;  %v5026_v0 = vld [vmem:[%s7883_s8] sm:$0xff]  }
 0xe8b   :  { %3803 = vmatprep.subr.bf16.mxu0 %v8878_v7  ;;  %v5027_v7 = vld [vmem:[%s7885_s10 + $0x38] sm:$0xff]  }
 0xe8e   :  { %3804 = vmatpush2.bf16.msra.mxu0 %v8879_v61  ;;  %v5028_v61 = vld [vmem:[%s7885_s10 + $0x30] sm:$0xff]  }
 0xe8f   :  { %3805 = vmatprep.subr.bf16.mxu0 %v8880_v47  ;;  %v5029_v47 = vld [vmem:[%s7885_s10 + $0x28] sm:$0xff]  }
 0xe92   :  { %3806 = vmatpush2.bf16.msra.mxu0 %v8881_v3  ;;  %v5030_v3 = vld [vmem:[%s7885_s10 + $0x20] sm:$0xff]  }
 0xe93   :  { %3807 = vmatprep.subr.bf16.mxu0 %v8882_v6  ;;  %v5031_v6 = vld [vmem:[%s7885_s10 + $0x18] sm:$0xff]  }
 0xe96   :  { %3808 = vmatpush2.bf16.msra.mxu0 %v8883_v14  ;;  %v5032_v14 = vld [vmem:[%s7885_s10 + $0x10] sm:$0xff]  }
 0xe97   :  { %3809 = vmatprep.subr.bf16.mxu0 %v8884_v26 }
 0xe9a   :  { %3810 = vmatpush2.bf16.msra.mxu0 %v8885_v27 }
 0xe9b   :  { %3811 = vmatprep.subr.bf16.mxu0 %v8886_v29 }
 0xe9e   :  { %3812 = vmatpush2.bf16.msra.mxu0 %v8887_v9 }
 0xe9f   :  { %3813 = vmatprep.subr.bf16.mxu0 %v8888_v58 }
 0xea2   :  { %3814 = vmatpush2.bf16.msra.mxu0 %v8889_v42 }
 0xea3   :  { %4776 = vmatprep.subr.bf16.mxu0 %v8367_v44 }
 0xea5   :  { %3816 = vmatmul.mubr.bf16.vlgmr.msra.gmra.mxu0 %v7611_v34 }
 0xea6   :  { %4792 = vmatprep.mubr.msk.bf16.mxu0 %vm5551_vm1, %v8367_v44 }
 0xf25   :  { %v3735_v60 = vpop.f32.mrf.mxu0  ;;  %v3776_v36 = vpop.f32.mrf.mxu1 }
 0xf26   :  { %v3824_v54 = vadd.f32 %v3735_v60, %v3699_v21  ;;  %v3841_v23 = vadd.f32 %v7603_v28, %v3776_v36 }
 0xf27   :  { %v3737_v19 = vpop.f32.mrf.mxu0  ;;  %v7747_v40 = vpop.f32.mrf.mxu1 }
 0xf28   :  { %v4493_v1 = vmul.f32 -1.442695, %v3824_v54  ;;  %v3834_v50 = vadd.f32 %v3832_v25, %v3737_v19 }
 0xf29   :  { %v3739_v20 = vpop.f32.mrf.mxu0  ;;  %v3780_v18 = vpop.f32.mrf.mxu1 }
 0xf2a   :  { %5179 = vpow2.f32 %v4493_v1  ;;  %v4494_v48 = vmul.f32 -1.442695, %v3834_v50 }
 0xf2b   :  { %v3740_v2 = vpop.f32.mrf.mxu0  ;;  %v3781_v45 = vpop.f32.mrf.mxu1 }
 0xf2c   :  { %5181 = vpow2.f32 %v4494_v48 }
 0xf37   :  { %v5180_v34 = vpop.eup %5179 }
 0xf38   :  { %v3828_v10 = vadd.f32 1.0, %v5180_v34 }
 0xf39   :  { %v5182_v51 = vpop.eup %5181 }
 0xf3a   :  { %5183 = vrcp.f32 %v3828_v10  ;;  %v3838_v15 = vadd.f32 1.0, %v5182_v51 }
 0xf3c   :  { %5185 = vrcp.f32 %v3838_v15 }
 0xf47   :  { %v5184_v16 = vpop.eup %5183 }
 0xf48   :  { %v3842_v39 = vmul.f32 %v5184_v16, %v3841_v23 }
 0xf49   :  { %v5186_v62 = vpop.eup %5185 }
 0xf4a   :  { %v3845_v53 = vadd.f32 %v3843_v33, %v3842_v39  ;;  %v3847_v59 = vsub.f32 1.0, %v5186_v62  ;;  %v3849_v13 = vmul.f32 %v5186_v62, %v7607_v5  ;;  %v4497_v62 = vld [vmem:[%s7884_s9] ss:$0 sm:$0xff] }
 0xf4c   :  { %5187 = vtanh.f32 %v3845_v53  ;;  %v5036_v53 = vld [vmem:[%s7887_s12 + $0x10] sm:$0xff]  }
 0xf59   :  { %v5188_v30 = vpop.eup %5187 }
 0xf5a   :  { %v3848_v46 = vmul.f32 %v5188_v30, %v3847_v59 }
 0xf5c   :  { %v3850_v31 = vadd.f32 %v3849_v13, %v3848_v46 }
 0xf5e   :  { %v3851_v11 = vpack.c.bf16 %v3850_v31, %v3850_v31 }
 0xf60   :  { %3885 = vmatmul.mubr.bf16.vlgmr.msra.gmra.mxu1 %v3851_v11 }
 0xf61   :  { %4757 = vmatpush3.bf16.msra.mxu1 %v7614_v35  ;;  %4772 = vmatprep.mubr.msk.bf16.mxu1 %vm5551_vm1, %v8367_v44  ;;  %v8890_v35 = vld [vmem:[#allocation64_spill] sm:$0xff] }
 0xf62   :  { %4758 = vmatprep.subr.bf16.mxu1 %v8367_v44 }
 0xf65   :  { %v7755_v28 = vpop.f32.mrf.mxu0  ;;  %4759 = vmatpush3.bf16.msra.mxu1 %v7622_v37  ;;  %v8893_v37 = vld [vmem:[#allocation25_spill] sm:$0xff] }
 0xf66   :  { %4760 = vmatprep.subr.bf16.mxu1 %v8367_v44 }
 0xf67   :  { %v7759_v63 = vpop.f32.mrf.mxu0 }
 0xf69   :  { %v3821_v41 = vpop.f32.mrf.mxu0  ;;  %4761 = vmatpush3.bf16.msra.mxu1 %v7628_v4  ;;  %v5019_v4 = vld [vmem:[%s7883_s8 + $0x38] sm:$0xff]  }
 0xf6a   :  { %4762 = vmatprep.subr.bf16.mxu1 %v8367_v44  ;;  %4777 = vmatpush3.bf16.msra.mxu0 %v5019_v4  ;;  %v5038_v41 = vld [vmem:[%s7887_s12] sm:$0xff]  }
 0xf6b   :  { %v3822_v5 = vpop.f32.mrf.mxu0  ;;  %4778 = vmatprep.subr.bf16.mxu0 %v8367_v44 }
 0xf6c   :  { %v4506_v5 = vld [vmem:[%s7886_s11] ss:$0 sm:$0xff] }
 0xf6d   :  { %4763 = vmatpush3.bf16.msra.mxu1 %v8890_v35 }
 0xf6e   :  { %4764 = vmatprep.subr.bf16.mxu1 %v8367_v44  ;;  %4779 = vmatpush3.bf16.msra.mxu0 %v5020_v43 }
 0xf6f   :  { %4780 = vmatprep.subr.bf16.mxu0 %v8367_v44 }
 0xf71   :  { %4765 = vmatpush3.bf16.msra.mxu1 %v8891_v24 }
 0xf72   :  { %4766 = vmatprep.subr.bf16.mxu1 %v8367_v44 }
 0xf75   :  { %4767 = vmatpush3.bf16.msra.mxu1 %v8892_v38 }
 0xf76   :  { %4768 = vmatprep.subr.bf16.mxu1 %v8367_v44 }
 0xf79   :  { %4769 = vmatpush3.bf16.msra.mxu1 %v8893_v37 }
 0xf7a   :  { %4770 = vmatprep.subr.bf16.mxu1 %v8367_v44 }
 0xf7d   :  { %4771 = vmatpush3.bf16.msra.mxu1 %v7648_v49  ;;  %v5021_v49 = vld [vmem:[%s7883_s8 + $0x28] sm:$0xff]  }
 0xf7e   :  { %4796 = vmatprep.subr.bf16.mxu1 %v8367_v44  ;;  %4781 = vmatpush3.bf16.msra.mxu0 %v5021_v49 }
 0xf7f   :  { %4782 = vmatprep.subr.bf16.mxu0 %v8367_v44 }
 0xf80   :  { %4773 = vmatmul.mubr.bf16.vlgmr.msra.gmra.mxu1 %v3851_v11 }
 0xf81   :  { %4812 = vmatprep.mubr.msk.bf16.mxu1 %vm5551_vm1, %v8367_v44  ;;  %4797 = vmatpush3.bf16.msra.mxu1 %v5027_v7 }
 0xf82   :  { %4783 = vmatpush3.bf16.msra.mxu0 %v5022_v56  ;;  %4798 = vmatprep.subr.bf16.mxu1 %v8367_v44 }
 0xf83   :  { %4784 = vmatprep.subr.bf16.mxu0 %v8367_v44 }
 0xf85   :  { %4799 = vmatpush3.bf16.msra.mxu1 %v5028_v61 }
 0xf86   :  { %4785 = vmatpush3.bf16.msra.mxu0 %v5023_v52  ;;  %4800 = vmatprep.subr.bf16.mxu1 %v8367_v44 }
 0xf87   :  { %4786 = vmatprep.subr.bf16.mxu0 %v8367_v44 }
 0xf89   :  { %4801 = vmatpush3.bf16.msra.mxu1 %v5029_v47 }
 0xf8a   :  { %4787 = vmatpush3.bf16.msra.mxu0 %v5024_v8  ;;  %4802 = vmatprep.subr.bf16.mxu1 %v8367_v44 }
 0xf8b   :  { %4788 = vmatprep.subr.bf16.mxu0 %v8367_v44 }
 0xf8d   :  { %4803 = vmatpush3.bf16.msra.mxu1 %v5030_v3 }
 0xf8e   :  { %4789 = vmatpush3.bf16.msra.mxu0 %v5025_v55  ;;  %4804 = vmatprep.subr.bf16.mxu1 %v8367_v44 }
 0xf8f   :  { %4790 = vmatprep.subr.bf16.mxu0 %v8367_v44 }
 0xf91   :  { %4805 = vmatpush3.bf16.msra.mxu1 %v5031_v6 }
 0xf92   :  { %4791 = vmatpush3.bf16.msra.mxu0 %v5026_v0  ;;  %4806 = vmatprep.subr.bf16.mxu1 %v8367_v44 }
 0xf93   :  { %4816 = vmatprep.subr.bf16.mxu0 %v8367_v44 }
 0xf95   :  { %4807 = vmatpush3.bf16.msra.mxu1 %v5032_v14 }
 0xf96   :  { %4808 = vmatprep.subr.bf16.mxu1 %v8367_v44 }
0x1020   :  { %v3886_v26 = vpop.f32.mrf.mxu1 }
0x1021   :  { %v3887_v27 = vadd.f32 %v3886_v26, %v6232_v22 }
0x1022   :  { %v3888_v29 = vpop.f32.mrf.mxu1 }
0x1023   :  { %v3933_v9 = vadd.f32 %v3887_v27, %v7747_v40  ;;  %v3889_v21 = vadd.f32 %v3888_v29, %v6235_v32  ;;  %v3947_v40 = vadd.f32 %v7683_v57, %v7759_v63  ;;  %v5034_v57 = vld [vmem:[%s7885_s10] sm:$0xff]   ;;  %v5037_v63 = vld [vmem:[%s7887_s12 + $0x8] sm:$0xff]  }
0x1024   :  { %v3890_v58 = vpop.f32.mrf.mxu1 }
0x1025   :  { %v4495_v42 = vmul.f32 -1.442695, %v3933_v9  ;;  %v3940_v36 = vadd.f32 %v3889_v21, %v7755_v28 }
0x1026   :  { %v3891_v60 = vpop.f32.mrf.mxu1 }
0x1027   :  { %5189 = vpow2.f32 %v4495_v42  ;;  %v4496_v54 = vmul.f32 -1.442695, %v3940_v36 }
0x1029   :  { %5191 = vpow2.f32 %v4496_v54 }
0x1034   :  { %v5190_v19 = vpop.eup %5189 }
0x1035   :  { %v3937_v1 = vadd.f32 1.0, %v5190_v19 }
0x1036   :  { %v5192_v20 = vpop.eup %5191 }
0x1037   :  { %5193 = vrcp.f32 %v3937_v1  ;;  %v3944_v25 = vadd.f32 1.0, %v5192_v20 }
0x1039   :  { %5195 = vrcp.f32 %v3944_v25 }
0x1040   :  { %v3927_v18 = vpop.f32.mrf.mxu1 }
0x1041   :  { %v3928_v32 = vadd.f32 %v3927_v18, %v6246_v12  ;;  %v5033_v12 = vld [vmem:[%s7885_s10 + $0x8] sm:$0xff]  }
0x1042   :  { %v4774_v22 = vpop.f32.mrf.mxu1  ;;  %4809 = vmatpush3.bf16.msra.mxu1 %v5033_v12 }
0x1043   :  { %4810 = vmatprep.subr.bf16.mxu1 %v8367_v44 }
0x1044   :  { %v5194_v2 = vpop.eup %5193  ;;  %v3930_v45 = vpop.f32.mrf.mxu1 }
0x1045   :  { %v3948_v50 = vmul.f32 %v5194_v2, %v3947_v40 }
0x1046   :  { %v4775_v48 = vpop.f32.mrf.mxu1  ;;  %v5196_v10 = vpop.eup %5195  ;;  %4811 = vmatpush3.bf16.msra.mxu1 %v5034_v57 }
0x1047   :  { %v3949_v34 = vadd.f32 %v3948_v50, %v3928_v32  ;;  %v3951_v51 = vsub.f32 1.0, %v5196_v10  ;;  %v3953_v16 = vmul.f32 %v5196_v10, %v7689_v17  ;;  %v5035_v17 = vld [vmem:[%s7887_s12 + $0x18] sm:$0xff]   ;;  %s4273_s12 = sshll.u32 %s5552_s3, 4  ;;  %s4274_s12 = int_to_ptr.vmem [resolvable:$true] %s4273_s12 }
0x1048   :  { %s5512_s11 = scalar_lea.vmem %s4274_s12, 32  ;;  %p5517_p2 = scmp.lt.s32.totalorder %s4274_s12, %s4274_s12 }
0x1049   :  { %5197 = vtanh.f32 %v3949_v34  ;;  %p5513_p1 = scmp.ne.s32.totalorder %s4274_s12, %s5512_s11  ;;  %p5518_p3 = scmp.lt.s32.totalorder %s5512_s11, %s5512_s11 }
0x104b   :  { %p5519_p4 = por %p5518_p3, %p5517_p2 }
0x104d   :  { %p5520_p5 = pnand %p5519_p4, %p5513_p1 }
0x1056   :  { %v5198_v15 = vpop.eup %5197 }
0x1057   :  { %v3952_v23 = vmul.f32 %v5198_v15, %v3951_v51 }
0x1059   :  { %v3954_v33 = vadd.f32 %v3953_v16, %v3952_v23 }
0x105b   :  { %v3955_v39 = vpack.c.bf16 %v3954_v33, %v3954_v33 }
0x105d   :  { %4793 = vmatmul.mubr.bf16.vlgmr.msra.gmra.mxu0 %v3955_v39 }
0x105e   :  { %4824 = vmatprep.mubr.msk.bf16.mxu0 %vm5551_vm1, %v8367_v44  ;;  %4817 = vmatpush3.bf16.msra.mxu0 %v5035_v17 }
0x105f   :  { %4818 = vmatprep.subr.bf16.mxu0 %v8367_v44 }
0x1062   :  { %4819 = vmatpush3.bf16.msra.mxu0 %v5036_v53 }
0x1063   :  { %4820 = vmatprep.subr.bf16.mxu0 %v8367_v44 }
0x1066   :  { %4821 = vmatpush3.bf16.msra.mxu0 %v5037_v63 }
0x1067   :  { %4822 = vmatprep.subr.bf16.mxu0 %v8367_v44  ;;  %v4515_v44 = vld [vmem:[%s7888_s13] ss:$0 sm:$0xff] }
0x106a   :  { %4823 = vmatpush3.bf16.msra.mxu0 %v5038_v41 }
0x111d   :  { %v4061_v59 = vpop.f32.mrf.mxu0 }
0x111e   :  { %v4062_v30 = vadd.f32 %v4497_v62, %v4061_v59 }
0x111f   :  { %v4794_v46 = vpop.f32.mrf.mxu0 }
0x1120   :  { %v4067_v13 = vmax.f32 %v4062_v30, 0.0 }
0x1121   :  { %v4064_v31 = vpop.f32.mrf.mxu0 }
0x1122   :  { %v4068_v11 = vpack.c.bf16 %v4067_v13, %v4067_v13 }
0x1123   :  { %v4795_v28 = vpop.f32.mrf.mxu0 }
0x1124   :  { %4813 = vmatmul.mubr.bf16.vlgmr.msra.gmra.mxu1 %v4068_v11 }
0x11e4   :  { %v4174_v35 = vpop.f32.mrf.mxu1 }
0x11e5   :  { %v4175_v24 = vadd.f32 %v4506_v5, %v4174_v35 }
0x11e6   :  { %v4814_v38 = vpop.f32.mrf.mxu1 }
0x11e7   :  { %v4180_v37 = vmax.f32 %v4175_v24, 0.0 }
0x11e8   :  { %v4177_v4 = vpop.f32.mrf.mxu1 }
0x11e9   :  { %v4181_v43 = vpack.c.bf16 %v4180_v37, %v4180_v37 }
0x11ea   :  { %v4815_v49 = vpop.f32.mrf.mxu1 }
0x11eb   :  { %4825 = vmatmul.mubr.msk.bf16.vlgmr.msra.gmra.mxu0 %vm4221_vm2, %v4181_v43 }
0x12ab   :  { %v4259_v56 = vpop.f32.mrf.mxu0 }
0x12ac   :  { %v4260_v52 = vadd.f32 %v4515_v44, %v4259_v56 }
0x12ad   :  { %v4826_v8 = vpop.f32.mrf.mxu0 }
0x12ae   :  { %4266 = vst.msk [vmem:[#allocation9] sm:$0x3] %vm4265_vm3, %v4260_v52 }
0x12af   :  { %v4262_v55 = vpop.f32.mrf.mxu0 }
0x12b0   :  { %5523 = shalt.err (!%p5520_p5)
}
0x12b1   :  { %4276 = dma.vmem_to_hbm [thread:$0]  %s4274_s12, 32, %s7889_s14, [#allocation5]   ;;  %v4827_v0 = vpop.f32.mrf.mxu0 }
0x12b2   :  { %5536 = dma.done.wait [#allocation5], 32  }
0x12b3   :  { %5537 = vsyncadd [#allocation5], 4294967264 }
0x12b4   :  { %4280 = vsyncpa [#allocation4], 1 }
0x12b5   :  { %4281 = vsyncpa [#allocation7], 1 }
0x12b6   :  { %4282 = vsyncpa [#allocation5], 1 }

</bundles_post_ra>
